<compile_context>
chip_gen: v6e
topology: v6e:2x2x1
jax: 0.10.0
libtpu: 0.0.40
codegen_flags: <defaults>
</compile_context>

<pallas_src>
import functools

import jax
import jax.numpy as jnp
from jax.experimental import pallas as pl
from jax.experimental.pallas import tpu as pltpu

EPS = 1e-5  # PyTorch GroupNorm default eps


# ----------------------------------------------------------------------------
# Kernel: one batch-block (b_blk images) per grid step
# ----------------------------------------------------------------------------
def linear_attn_kernel(x_ref, gsum_ref, gbc_ref, gn_w_ref, gn_b_ref,
                       wqkv_ref, wout_ref, bout_ref, gn2_w_ref, gn2_b_ref,
                       hmask_ref, o_ref, *, heads, dim_head, inv_n):
    f32 = jnp.float32
    bf16 = jnp.bfloat16
    hidden = heads * dim_head
    b_blk = x_ref.shape[0]

    for b in range(b_blk):                      # static unroll, b_blk <= 4
        x = x_ref[b].astype(f32)                                   # (C, N)
        C, N = x.shape

        # ---- GroupNorm(numgroups, C): lane-reduce first ---------------------
        # Per-channel mean via exact f32 lane sums, then tiny group combine:
        # gsum (G,C) averages channels within a group, gbc (C,G) broadcasts
        # the group stat back to every channel.
        s = jnp.sum(x, axis=1, keepdims=True) * inv_n              # (C, 1)
        mean_c = jnp.dot(
            gbc_ref[...],
            jnp.dot(gsum_ref[...], s, preferred_element_type=f32),
            preferred_element_type=f32)                            # (C, 1)
        xc = x - mean_c
        s2 = jnp.sum(xc * xc, axis=1, keepdims=True) * inv_n       # (C, 1)
        var_c = jnp.dot(
            gbc_ref[...],
            jnp.dot(gsum_ref[...], s2, preferred_element_type=f32),
            preferred_element_type=f32)                            # (C, 1)
        xn = xc * jax.lax.rsqrt(var_c + EPS) * gn_w_ref[...] + gn_b_ref[...]

        # ---- to_qkv: 1x1 conv == (3*hidden, C) @ (C, N), bf16 on the MXU ----
        qkv = jnp.dot(wqkv_ref[...], xn.astype(bf16),
                      preferred_element_type=f32)                  # (3h, N)
        qf = qkv[0 * hidden:1 * hidden]                            # (h*D, N)
        kf = qkv[1 * hidden:2 * hidden]
        vf = qkv[2 * hidden:3 * hidden]

        # torch: q.softmax(dim=-2) -> over dim_head; use the (heads, D, N)
        # view only for the sublane-local reduction (sublane-only reshape).
        q3 = qf.reshape(heads, dim_head, N)
        q3 = jnp.exp(q3 - jnp.max(q3, axis=1, keepdims=True))
        q3 = q3 * pl.reciprocal(jnp.sum(q3, axis=1, keepdims=True), approx=True)
        qf = q3.reshape(hidden, N)

        # torch: k.softmax(dim=-1) -> over tokens (lane axis), no reshape.
        kf = jnp.exp(kf - jnp.max(kf, axis=1, keepdims=True))
        kf = kf * pl.reciprocal(jnp.sum(kf, axis=1, keepdims=True), approx=True)

        # ---- merged-head linear attention -----------------------------------
        # ctx[(h,e),(h',d)] = sum_n v[(h,e),n] * k[(h',d),n]; mask keeps h==h'
        # blocks and folds in the attention scale.
        ctx = jax.lax.dot_general(vf.astype(bf16), kf.astype(bf16),
                                  (((1,), (1,)), ((), ())),
                                  preferred_element_type=f32)      # (h*D, h*D)
        ctx = ctx * hmask_ref[...]
        # out[(h,e), n] = sum_d ctx[(h,e),(h,d)] * q[(h,d), n]  -> already
        # '(h c)' channel order, no concat / reshape needed.
        out = jnp.dot(ctx.astype(bf16), qf.astype(bf16),
                      preferred_element_type=f32)                  # (h*D, N)

        # ---- to_out: 1x1 conv + GroupNorm(1, C) ------------------------------
        y = jnp.dot(wout_ref[...], out.astype(bf16),
                    preferred_element_type=f32) + bout_ref[...]    # (C, N)
        m = jnp.mean(y, axis=(0, 1), keepdims=True)
        yc = y - m
        var = jnp.mean(yc * yc, axis=(0, 1), keepdims=True)
        o_ref[b] = (yc * jax.lax.rsqrt(var + EPS) * gn2_w_ref[...]
                    + gn2_b_ref[...]).astype(o_ref.dtype)


# ----------------------------------------------------------------------------
# pallas_call wrapper
# ----------------------------------------------------------------------------
def _const_spec(shape):
    # Full-array block whose index_map never moves (weights / norm params).
    return pl.BlockSpec(shape, lambda b: (0,) * len(shape))


def _pick_batch_block(B, max_blk=4):
    """Largest batch block <= max_blk dividing B, preferring grid length >= 2
    (keeps both v7x TensorCores busy); otherwise take the whole batch."""
    for d in range(min(B, max_blk), 0, -1):
        if B % d == 0 and B // d >= 2:
            return d
    for d in range(min(B, max_blk), 0, -1):
        if B % d == 0:
            return d
    return 1


def _run_linear_attention(x_cn, params, heads, dim_head, b_blk):
    B, C, N = x_cn.shape
    hidden = heads * dim_head
    kernel = functools.partial(linear_attn_kernel, heads=heads,
                               dim_head=dim_head, inv_n=1.0 / N)
    in_specs = [
        pl.BlockSpec((b_blk, C, N), lambda b: (b, 0, 0)),
        _const_spec(params["g_sum"].shape),
        _const_spec(params["g_bcast"].shape),
        _const_spec(params["gn_w"].shape),
        _const_spec(params["gn_b"].shape),
        _const_spec(params["wqkv"].shape),
        _const_spec(params["wout"].shape),
        _const_spec(params["bout"].shape),
        _const_spec(params["gn2_w"].shape),
        _const_spec(params["gn2_b"].shape),
        _const_spec(params["head_mask"].shape),
    ]
    # Advisory cost estimate so XLA schedules surrounding ops correctly.
    flops = B * 2 * N * (3 * hidden * C + 2 * hidden * hidden + C * hidden)
    transcendentals = B * 2 * hidden * N
    bytes_accessed = (2 * B * C * N * x_cn.dtype.itemsize
                      + params["wqkv"].size * 2 + params["wout"].size * 2
                      + params["head_mask"].size * 4)
    return pl.pallas_call(
        kernel,
        out_shape=jax.ShapeDtypeStruct((B, C, N), jnp.bfloat16),
        grid=(B // b_blk,),
        in_specs=in_specs,
        out_specs=pl.BlockSpec((b_blk, C, N), lambda b: (b, 0, 0)),
        compiler_params=pltpu.CompilerParams(
            dimension_semantics=("parallel",),
            # NOTE: re-derive for real U-Net widths (C=512, N=64*64) on v7x;
            # at these shapes the working set is tiny.
            vmem_limit_bytes=32 * 1024 * 1024,
        ),
        cost_estimate=pl.CostEstimate(flops=flops,
                                      transcendentals=transcendentals,
                                      bytes_accessed=bytes_accessed),
    )(x_cn, params["g_sum"], params["g_bcast"], params["gn_w"],
      params["gn_b"], params["wqkv"], params["wout"], params["bout"],
      params["gn2_w"], params["gn2_b"], params["head_mask"])


class LinearAttentionJAX:
    """JAX/Pallas port of LinearAttention (GroupNorm -> qkv -> linear attn -> to_out)."""

    def __init__(self, dim, heads=4, dim_head=32, numgroups=8, *, key):
        self.dim = dim
        self.heads = heads
        self.dim_head = dim_head
        self.numgroups = numgroups
        hidden = heads * dim_head
        k0, k1, k2 = jax.random.split(key, 3)
        group_id = jnp.arange(dim) // (dim // numgroups)
        same_group = (jnp.arange(numgroups)[:, None] == group_id[None, :])  # (G, C)
        head_id = jnp.arange(hidden) // dim_head
        self.params = {
            # 1x1 conv weights, channel-major (Cout, Cin); bf16 for the MXU.
            "wqkv": (0.05 * jax.random.normal(k0, (3 * hidden, dim),
                                              jnp.float32)).astype(jnp.bfloat16),
            "wout": (0.05 * jax.random.normal(k1, (dim, hidden),
                                              jnp.float32)).astype(jnp.bfloat16),
            "bout": 0.05 * jax.random.normal(k2, (dim, 1), jnp.float32),
            "gn_w": jnp.ones((dim, 1), jnp.float32),
            "gn_b": jnp.zeros((dim, 1), jnp.float32),
            "gn2_w": jnp.ones((dim, 1), jnp.float32),
            "gn2_b": jnp.zeros((dim, 1), jnp.float32),
            # (G, C) channel->group averaging matrix and (C, G) broadcast-back
            # indicator.  Resolution-independent (the 1/N factor is folded
            # into the kernel's lane reduction).
            "g_sum": same_group.astype(jnp.float32) / (dim // numgroups),
            "g_bcast": same_group.T.astype(jnp.float32),
            # Block-diagonal head mask with the attention scale folded in.
            "head_mask": (head_id[:, None] == head_id[None, :]
                          ).astype(jnp.float32) * (dim_head ** -0.5),
        }

    def __call__(self, x_nchw):
        B, C, H, W = x_nchw.shape
        N = H * W
        # Pure reshape (no transpose) + bf16 cast: bf16 I/O halves HBM traffic.
        x_cn = x_nchw.reshape(B, C, N).astype(jnp.bfloat16)
        b_blk = _pick_batch_block(B)
        y = _run_linear_attention(x_cn, self.params, self.heads,
                                  self.dim_head, b_blk)
        return y.reshape(B, C, H, W)


# ----------------------------------------------------------------------------
# Pure-JAX reference (mirrors the PyTorch math, f32 activations)
# ----------------------------------------------------------------------------
def ref_forward(x, params, heads, dim_head, numgroups=8):
    B, C, H, W = x.shape
    N = H * W
    D = dim_head
    hidden = heads * D
    scale = D ** -0.5
    xr = x.reshape(B, numgroups, C // numgroups, H, W)
    m = xr.mean(axis=(2, 3, 4), keepdims=True)
    v = ((xr - m) ** 2).mean(axis=(2, 3, 4), keepdims=True)
    xn = ((xr - m) / jnp.sqrt(v + EPS)).reshape(B, C, H, W)
    xn = (xn * params["gn_w"].reshape(1, C, 1, 1)
          + params["gn_b"].reshape(1, C, 1, 1))
    wqkv = params["wqkv"].astype(jnp.float32)            # (3*hidden, C)
    qkv = jnp.einsum("oc,bchw->bohw", wqkv, xn).reshape(B, 3, heads, D, N)
    q, k, vv = qkv[:, 0], qkv[:, 1], qkv[:, 2]           # (B, h, D, N)
    q = jax.nn.softmax(q, axis=2)                        # torch softmax(dim=-2)
    k = jax.nn.softmax(k, axis=3)                        # torch softmax(dim=-1)
    q = q * scale
    context = jnp.einsum("bhdn,bhen->bhde", k, vv)
    out = jnp.einsum("bhde,bhdn->bhen", context, q).reshape(B, hidden, N)
    wout = params["wout"].astype(jnp.float32)            # (C, hidden)
    y = jnp.einsum("co,bon->bcn", wout, out) + params["bout"].reshape(1, C, 1)
    m2 = y.mean(axis=(1, 2), keepdims=True)
    v2 = ((y - m2) ** 2).mean(axis=(1, 2), keepdims=True)
    y = (y - m2) / jnp.sqrt(v2 + EPS)
    y = (y * params["gn2_w"].reshape(1, C, 1)
         + params["gn2_b"].reshape(1, C, 1))
    return y.reshape(B, C, H, W)


# ----------------------------------------------------------------------------
if __name__ == "__main__":
    key = jax.random.PRNGKey(0)
    kx, kp = jax.random.split(key)
    # B=4 so batch blocking (b_blk=2) is exercised while grid length stays 2.
    B, C, H, W = 4, 32, 16, 16                 # dim=32 divisible by numgroups=8
    heads, dim_head, numgroups = 4, 32, 8
    x = jax.random.normal(kx, (B, C, H, W), jnp.float32)

    block = LinearAttentionJAX(C, heads=heads, dim_head=dim_head,
                               numgroups=numgroups, key=kp)
    y = block(x)
    jax.block_until_ready(y)
    assert y.shape == (B, C, H, W)

    # Reference computed on the bf16-rounded input (kernel I/O is bf16); the
    # remaining divergence is bf16 MXU operands (f32 accumulate), the EUP
    # approximate reciprocals, and the bf16 output store.
    x_q = x.astype(jnp.bfloat16).astype(jnp.float32)
    y_ref = ref_forward(x_q, block.params, heads, dim_head, numgroups)
    y_f32 = y.astype(jnp.float32)
    err = float(jnp.max(jnp.abs(y_f32 - y_ref)))
    assert jnp.allclose(y_f32, y_ref, atol=2.5e-2, rtol=2.5e-2), (
        f"max abs err = {err}")
    print("KERNEL_OK")
</pallas_src>

<mosaic_0001>
module attributes {stable_mosaic.version = 11 : i64} {
  func.func @linear_attn_kernel(%arg0: i32, %arg1: memref<2x32x256xbf16, #tpu.memory_space<vmem>>, %arg2: memref<8x32xf32, #tpu.memory_space<vmem>>, %arg3: memref<32x8xf32, #tpu.memory_space<vmem>>, %arg4: memref<32x1xf32, #tpu.memory_space<vmem>>, %arg5: memref<32x1xf32, #tpu.memory_space<vmem>>, %arg6: memref<384x32xbf16, #tpu.memory_space<vmem>>, %arg7: memref<32x128xbf16, #tpu.memory_space<vmem>>, %arg8: memref<32x1xf32, #tpu.memory_space<vmem>>, %arg9: memref<32x1xf32, #tpu.memory_space<vmem>>, %arg10: memref<32x1xf32, #tpu.memory_space<vmem>>, %arg11: memref<128x128xf32, #tpu.memory_space<vmem>>, %arg12: memref<2x32x256xbf16, #tpu.memory_space<vmem>>) attributes {dimension_semantics = [#tpu.dimension_semantics<parallel>], iteration_bounds = array<i64: 2>, scalar_prefetch = 0 : i64, scratch_operands = 0 : i64, tpu.core_type = #tpu.core_type<tc>, window_params = [{transform_indices = @transform_0, window_bounds = array<i64: 2, 32, 256>}, {pipeline_mode = #tpu.pipeline_mode<synchronous>, transform_indices = @transform_1, window_bounds = array<i64: 8, 32>}, {pipeline_mode = #tpu.pipeline_mode<synchronous>, transform_indices = @transform_2, window_bounds = array<i64: 32, 8>}, {pipeline_mode = #tpu.pipeline_mode<synchronous>, transform_indices = @transform_3, window_bounds = array<i64: 32, 1>}, {pipeline_mode = #tpu.pipeline_mode<synchronous>, transform_indices = @transform_4, window_bounds = array<i64: 32, 1>}, {pipeline_mode = #tpu.pipeline_mode<synchronous>, transform_indices = @transform_5, window_bounds = array<i64: 384, 32>}, {pipeline_mode = #tpu.pipeline_mode<synchronous>, transform_indices = @transform_6, window_bounds = array<i64: 32, 128>}, {pipeline_mode = #tpu.pipeline_mode<synchronous>, transform_indices = @transform_7, window_bounds = array<i64: 32, 1>}, {pipeline_mode = #tpu.pipeline_mode<synchronous>, transform_indices = @transform_8, window_bounds = array<i64: 32, 1>}, {pipeline_mode = #tpu.pipeline_mode<synchronous>, transform_indices = @transform_9, window_bounds = array<i64: 32, 1>}, {pipeline_mode = #tpu.pipeline_mode<synchronous>, transform_indices = @transform_10, window_bounds = array<i64: 128, 128>}, {transform_indices = @transform_11, window_bounds = array<i64: 2, 32, 256>}]} {
    %c0 = arith.constant 0 : index
    %c0_0 = arith.constant 0 : index
    %c0_1 = arith.constant 0 : index
    %0 = vector.load %arg1[%c0, %c0_0, %c0_1] : memref<2x32x256xbf16, #tpu.memory_space<vmem>>, vector<1x32x256xbf16>
    %1 = vector.shape_cast %0 : vector<1x32x256xbf16> to vector<32x256xbf16>
    %2 = arith.extf %1 : vector<32x256xbf16> to vector<32x256xf32>
    %cst = arith.constant dense<0.000000e+00> : vector<32xf32>
    %3 = vector.multi_reduction <add>, %2, %cst [1] : vector<32x256xf32> to vector<32xf32>
    %4 = vector.shape_cast %3 : vector<32xf32> to vector<32x1xf32>
    %cst_2 = arith.constant 3.906250e-03 : f32
    %5 = vector.broadcast %cst_2 : f32 to vector<32x1xf32>
    %6 = arith.mulf %4, %5 : vector<32x1xf32>
    %c0_3 = arith.constant 0 : index
    %c0_4 = arith.constant 0 : index
    %7 = vector.load %arg3[%c0_3, %c0_4] : memref<32x8xf32, #tpu.memory_space<vmem>>, vector<32x8xf32>
    %c0_5 = arith.constant 0 : index
    %c0_6 = arith.constant 0 : index
    %8 = vector.load %arg2[%c0_5, %c0_6] : memref<8x32xf32, #tpu.memory_space<vmem>>, vector<8x32xf32>
    %cst_7 = arith.constant dense<0.000000e+00> : vector<8x1xf32>
    %9 = tpu.matmul %8, %6, %cst_7 {dimension_numbers = #tpu.dot_dimension_numbers<[1], [0], [0], [1], [0, 0, 1, 1], [], []>} : vector<8x32xf32>, vector<32x1xf32>, vector<8x1xf32> -> vector<8x1xf32>
    %cst_8 = arith.constant dense<0.000000e+00> : vector<32x1xf32>
    %10 = tpu.matmul %7, %9, %cst_8 {dimension_numbers = #tpu.dot_dimension_numbers<[1], [0], [0], [1], [0, 0, 1, 1], [], []>} : vector<32x8xf32>, vector<8x1xf32>, vector<32x1xf32> -> vector<32x1xf32>
    %11 = vector.broadcast %10 : vector<32x1xf32> to vector<32x256xf32>
    %12 = arith.subf %2, %11 : vector<32x256xf32>
    %13 = arith.mulf %12, %12 : vector<32x256xf32>
    %cst_9 = arith.constant dense<0.000000e+00> : vector<32xf32>
    %14 = vector.multi_reduction <add>, %13, %cst_9 [1] : vector<32x256xf32> to vector<32xf32>
    %15 = vector.shape_cast %14 : vector<32xf32> to vector<32x1xf32>
    %cst_10 = arith.constant 3.906250e-03 : f32
    %16 = vector.broadcast %cst_10 : f32 to vector<32x1xf32>
    %17 = arith.mulf %15, %16 : vector<32x1xf32>
    %c0_11 = arith.constant 0 : index
    %c0_12 = arith.constant 0 : index
    %18 = vector.load %arg3[%c0_11, %c0_12] : memref<32x8xf32, #tpu.memory_space<vmem>>, vector<32x8xf32>
    %c0_13 = arith.constant 0 : index
    %c0_14 = arith.constant 0 : index
    %19 = vector.load %arg2[%c0_13, %c0_14] : memref<8x32xf32, #tpu.memory_space<vmem>>, vector<8x32xf32>
    %cst_15 = arith.constant dense<0.000000e+00> : vector<8x1xf32>
    %20 = tpu.matmul %19, %17, %cst_15 {dimension_numbers = #tpu.dot_dimension_numbers<[1], [0], [0], [1], [0, 0, 1, 1], [], []>} : vector<8x32xf32>, vector<32x1xf32>, vector<8x1xf32> -> vector<8x1xf32>
    %cst_16 = arith.constant dense<0.000000e+00> : vector<32x1xf32>
    %21 = tpu.matmul %18, %20, %cst_16 {dimension_numbers = #tpu.dot_dimension_numbers<[1], [0], [0], [1], [0, 0, 1, 1], [], []>} : vector<32x8xf32>, vector<8x1xf32>, vector<32x1xf32> -> vector<32x1xf32>
    %cst_17 = arith.constant 9.99999974E-6 : f32
    %22 = vector.broadcast %cst_17 : f32 to vector<32x1xf32>
    %23 = arith.addf %21, %22 : vector<32x1xf32>
    %24 = math.rsqrt %23 : vector<32x1xf32>
    %25 = vector.broadcast %24 : vector<32x1xf32> to vector<32x256xf32>
    %26 = arith.mulf %12, %25 : vector<32x256xf32>
    %c0_18 = arith.constant 0 : index
    %c0_19 = arith.constant 0 : index
    %27 = vector.load %arg4[%c0_18, %c0_19] : memref<32x1xf32, #tpu.memory_space<vmem>>, vector<32x1xf32>
    %28 = vector.broadcast %27 : vector<32x1xf32> to vector<32x256xf32>
    %29 = arith.mulf %26, %28 : vector<32x256xf32>
    %c0_20 = arith.constant 0 : index
    %c0_21 = arith.constant 0 : index
    %30 = vector.load %arg5[%c0_20, %c0_21] : memref<32x1xf32, #tpu.memory_space<vmem>>, vector<32x1xf32>
    %31 = vector.broadcast %30 : vector<32x1xf32> to vector<32x256xf32>
    %32 = arith.addf %29, %31 : vector<32x256xf32>
    %c0_22 = arith.constant 0 : index
    %c0_23 = arith.constant 0 : index
    %33 = vector.load %arg6[%c0_22, %c0_23] : memref<384x32xbf16, #tpu.memory_space<vmem>>, vector<384x32xbf16>
    %34 = arith.truncf %32 : vector<32x256xf32> to vector<32x256xbf16>
    %cst_24 = arith.constant dense<0.000000e+00> : vector<384x256xf32>
    %35 = tpu.matmul %33, %34, %cst_24 {dimension_numbers = #tpu.dot_dimension_numbers<[1], [0], [0], [1], [0, 0, 1, 1], [], []>} : vector<384x32xbf16>, vector<32x256xbf16>, vector<384x256xf32> -> vector<384x256xf32>
    %36 = vector.extract_strided_slice %35 {offsets = [0, 0], sizes = [128, 256], strides = [1, 1]} : vector<384x256xf32> to vector<128x256xf32>
    %37 = vector.extract_strided_slice %35 {offsets = [128, 0], sizes = [128, 256], strides = [1, 1]} : vector<384x256xf32> to vector<128x256xf32>
    %38 = vector.extract_strided_slice %35 {offsets = [256, 0], sizes = [128, 256], strides = [1, 1]} : vector<384x256xf32> to vector<128x256xf32>
    %39 = vector.shape_cast %36 : vector<128x256xf32> to vector<4x32x256xf32>
    %cst_25 = arith.constant dense<0xFF800000> : vector<4x256xf32>
    %40 = vector.multi_reduction <maximumf>, %39, %cst_25 [1] : vector<4x32x256xf32> to vector<4x256xf32>
    %41 = vector.shape_cast %40 : vector<4x256xf32> to vector<4x1x256xf32>
    %42 = vector.broadcast %41 : vector<4x1x256xf32> to vector<4x32x256xf32>
    %43 = arith.subf %39, %42 : vector<4x32x256xf32>
    %44 = math.exp %43 : vector<4x32x256xf32>
    %cst_26 = arith.constant dense<0.000000e+00> : vector<4x256xf32>
    %45 = vector.multi_reduction <add>, %44, %cst_26 [1] : vector<4x32x256xf32> to vector<4x256xf32>
    %46 = vector.shape_cast %45 : vector<4x256xf32> to vector<4x1x256xf32>
    %47 = tpu.reciprocal %46 {approx = true} : vector<4x1x256xf32> -> vector<4x1x256xf32>
    %48 = vector.broadcast %47 : vector<4x1x256xf32> to vector<4x32x256xf32>
    %49 = arith.mulf %44, %48 : vector<4x32x256xf32>
    %50 = vector.shape_cast %49 : vector<4x32x256xf32> to vector<128x256xf32>
    %cst_27 = arith.constant dense<0xFF800000> : vector<128xf32>
    %51 = vector.multi_reduction <maximumf>, %37, %cst_27 [1] : vector<128x256xf32> to vector<128xf32>
    %52 = vector.shape_cast %51 : vector<128xf32> to vector<128x1xf32>
    %53 = vector.broadcast %52 : vector<128x1xf32> to vector<128x256xf32>
    %54 = arith.subf %37, %53 : vector<128x256xf32>
    %55 = math.exp %54 : vector<128x256xf32>
    %cst_28 = arith.constant dense<0.000000e+00> : vector<128xf32>
    %56 = vector.multi_reduction <add>, %55, %cst_28 [1] : vector<128x256xf32> to vector<128xf32>
    %57 = vector.shape_cast %56 : vector<128xf32> to vector<128x1xf32>
    %58 = tpu.reciprocal %57 {approx = true} : vector<128x1xf32> -> vector<128x1xf32>
    %59 = vector.broadcast %58 : vector<128x1xf32> to vector<128x256xf32>
    %60 = arith.mulf %55, %59 : vector<128x256xf32>
    %61 = arith.truncf %38 : vector<128x256xf32> to vector<128x256xbf16>
    %62 = arith.truncf %60 : vector<128x256xf32> to vector<128x256xbf16>
    %cst_29 = arith.constant dense<0.000000e+00> : vector<128x128xf32>
    %63 = tpu.matmul %61, %62, %cst_29 {dimension_numbers = #tpu.dot_dimension_numbers<[1], [1], [0], [0], [0, 0, 1, 0], [], []>} : vector<128x256xbf16>, vector<128x256xbf16>, vector<128x128xf32> -> vector<128x128xf32>
    %c0_30 = arith.constant 0 : index
    %c0_31 = arith.constant 0 : index
    %64 = vector.load %arg11[%c0_30, %c0_31] : memref<128x128xf32, #tpu.memory_space<vmem>>, vector<128x128xf32>
    %65 = arith.mulf %63, %64 : vector<128x128xf32>
    %66 = arith.truncf %65 : vector<128x128xf32> to vector<128x128xbf16>
    %67 = arith.truncf %50 : vector<128x256xf32> to vector<128x256xbf16>
    %cst_32 = arith.constant dense<0.000000e+00> : vector<128x256xf32>
    %68 = tpu.matmul %66, %67, %cst_32 {dimension_numbers = #tpu.dot_dimension_numbers<[1], [0], [0], [1], [0, 0, 1, 1], [], []>} : vector<128x128xbf16>, vector<128x256xbf16>, vector<128x256xf32> -> vector<128x256xf32>
    %c0_33 = arith.constant 0 : index
    %c0_34 = arith.constant 0 : index
    %69 = vector.load %arg7[%c0_33, %c0_34] : memref<32x128xbf16, #tpu.memory_space<vmem>>, vector<32x128xbf16>
    %70 = arith.truncf %68 : vector<128x256xf32> to vector<128x256xbf16>
    %cst_35 = arith.constant dense<0.000000e+00> : vector<32x256xf32>
    %71 = tpu.matmul %69, %70, %cst_35 {dimension_numbers = #tpu.dot_dimension_numbers<[1], [0], [0], [1], [0, 0, 1, 1], [], []>} : vector<32x128xbf16>, vector<128x256xbf16>, vector<32x256xf32> -> vector<32x256xf32>
    %c0_36 = arith.constant 0 : index
    %c0_37 = arith.constant 0 : index
    %72 = vector.load %arg8[%c0_36, %c0_37] : memref<32x1xf32, #tpu.memory_space<vmem>>, vector<32x1xf32>
    %73 = vector.broadcast %72 : vector<32x1xf32> to vector<32x256xf32>
    %74 = arith.addf %71, %73 : vector<32x256xf32>
    %75 = vector.shape_cast %74 : vector<32x256xf32> to vector<1x32x256xf32>
    %cst_38 = arith.constant dense<0.000000e+00> : vector<1xf32>
    %76 = vector.multi_reduction <add>, %75, %cst_38 [1, 2] : vector<1x32x256xf32> to vector<1xf32>
    %77 = vector.shape_cast %76 : vector<1xf32> to vector<1x1x1xf32>
    %78 = vector.extract %77[0, 0, 0] : f32 from vector<1x1x1xf32>
    %79 = vector.broadcast %78 : f32 to vector<1x1xf32>
    %cst_39 = arith.constant 8.192000e+03 : f32
    %80 = vector.broadcast %cst_39 : f32 to vector<1x1xf32>
    %81 = arith.divf %79, %80 : vector<1x1xf32>
    %82 = vector.broadcast %81 : vector<1x1xf32> to vector<32x256xf32>
    %83 = arith.subf %74, %82 : vector<32x256xf32>
    %84 = arith.mulf %83, %83 : vector<32x256xf32>
    %85 = vector.shape_cast %84 : vector<32x256xf32> to vector<1x32x256xf32>
    %cst_40 = arith.constant dense<0.000000e+00> : vector<1xf32>
    %86 = vector.multi_reduction <add>, %85, %cst_40 [1, 2] : vector<1x32x256xf32> to vector<1xf32>
    %87 = vector.shape_cast %86 : vector<1xf32> to vector<1x1x1xf32>
    %88 = vector.extract %87[0, 0, 0] : f32 from vector<1x1x1xf32>
    %89 = vector.broadcast %88 : f32 to vector<1x1xf32>
    %cst_41 = arith.constant 8.192000e+03 : f32
    %90 = vector.broadcast %cst_41 : f32 to vector<1x1xf32>
    %91 = arith.divf %89, %90 : vector<1x1xf32>
    %cst_42 = arith.constant 9.99999974E-6 : f32
    %92 = vector.broadcast %cst_42 : f32 to vector<1x1xf32>
    %93 = arith.addf %91, %92 : vector<1x1xf32>
    %94 = math.rsqrt %93 : vector<1x1xf32>
    %95 = vector.broadcast %94 : vector<1x1xf32> to vector<32x256xf32>
    %96 = arith.mulf %83, %95 : vector<32x256xf32>
    %c0_43 = arith.constant 0 : index
    %c0_44 = arith.constant 0 : index
    %97 = vector.load %arg9[%c0_43, %c0_44] : memref<32x1xf32, #tpu.memory_space<vmem>>, vector<32x1xf32>
    %98 = vector.broadcast %97 : vector<32x1xf32> to vector<32x256xf32>
    %99 = arith.mulf %96, %98 : vector<32x256xf32>
    %c0_45 = arith.constant 0 : index
    %c0_46 = arith.constant 0 : index
    %100 = vector.load %arg10[%c0_45, %c0_46] : memref<32x1xf32, #tpu.memory_space<vmem>>, vector<32x1xf32>
    %101 = vector.broadcast %100 : vector<32x1xf32> to vector<32x256xf32>
    %102 = arith.addf %99, %101 : vector<32x256xf32>
    %103 = arith.truncf %102 : vector<32x256xf32> to vector<32x256xbf16>
    %c0_47 = arith.constant 0 : index
    %c0_48 = arith.constant 0 : index
    %c0_49 = arith.constant 0 : index
    %104 = vector.load %arg12[%c0_47, %c0_48, %c0_49] : memref<2x32x256xbf16, #tpu.memory_space<vmem>>, vector<1x32x256xbf16>
    %105 = vector.shape_cast %104 : vector<1x32x256xbf16> to vector<32x256xbf16>
    %106 = vector.shape_cast %103 : vector<32x256xbf16> to vector<1x32x256xbf16>
    tpu.vector_store %arg12[%c0_47, %c0_48, %c0_49], %106 {strides = array<i32>} : memref<2x32x256xbf16, #tpu.memory_space<vmem>>, vector<1x32x256xbf16>,
    %c1 = arith.constant 1 : index
    %c0_50 = arith.constant 0 : index
    %c0_51 = arith.constant 0 : index
    %107 = vector.load %arg1[%c1, %c0_50, %c0_51] : memref<2x32x256xbf16, #tpu.memory_space<vmem>>, vector<1x32x256xbf16>
    %108 = vector.shape_cast %107 : vector<1x32x256xbf16> to vector<32x256xbf16>
    %109 = arith.extf %108 : vector<32x256xbf16> to vector<32x256xf32>
    %cst_52 = arith.constant dense<0.000000e+00> : vector<32xf32>
    %110 = vector.multi_reduction <add>, %109, %cst_52 [1] : vector<32x256xf32> to vector<32xf32>
    %111 = vector.shape_cast %110 : vector<32xf32> to vector<32x1xf32>
    %cst_53 = arith.constant 3.906250e-03 : f32
    %112 = vector.broadcast %cst_53 : f32 to vector<32x1xf32>
    %113 = arith.mulf %111, %112 : vector<32x1xf32>
    %c0_54 = arith.constant 0 : index
    %c0_55 = arith.constant 0 : index
    %114 = vector.load %arg3[%c0_54, %c0_55] : memref<32x8xf32, #tpu.memory_space<vmem>>, vector<32x8xf32>
    %c0_56 = arith.constant 0 : index
    %c0_57 = arith.constant 0 : index
    %115 = vector.load %arg2[%c0_56, %c0_57] : memref<8x32xf32, #tpu.memory_space<vmem>>, vector<8x32xf32>
    %cst_58 = arith.constant dense<0.000000e+00> : vector<8x1xf32>
    %116 = tpu.matmul %115, %113, %cst_58 {dimension_numbers = #tpu.dot_dimension_numbers<[1], [0], [0], [1], [0, 0, 1, 1], [], []>} : vector<8x32xf32>, vector<32x1xf32>, vector<8x1xf32> -> vector<8x1xf32>
    %cst_59 = arith.constant dense<0.000000e+00> : vector<32x1xf32>
    %117 = tpu.matmul %114, %116, %cst_59 {dimension_numbers = #tpu.dot_dimension_numbers<[1], [0], [0], [1], [0, 0, 1, 1], [], []>} : vector<32x8xf32>, vector<8x1xf32>, vector<32x1xf32> -> vector<32x1xf32>
    %118 = vector.broadcast %117 : vector<32x1xf32> to vector<32x256xf32>
    %119 = arith.subf %109, %118 : vector<32x256xf32>
    %120 = arith.mulf %119, %119 : vector<32x256xf32>
    %cst_60 = arith.constant dense<0.000000e+00> : vector<32xf32>
    %121 = vector.multi_reduction <add>, %120, %cst_60 [1] : vector<32x256xf32> to vector<32xf32>
    %122 = vector.shape_cast %121 : vector<32xf32> to vector<32x1xf32>
    %cst_61 = arith.constant 3.906250e-03 : f32
    %123 = vector.broadcast %cst_61 : f32 to vector<32x1xf32>
    %124 = arith.mulf %122, %123 : vector<32x1xf32>
    %c0_62 = arith.constant 0 : index
    %c0_63 = arith.constant 0 : index
    %125 = vector.load %arg3[%c0_62, %c0_63] : memref<32x8xf32, #tpu.memory_space<vmem>>, vector<32x8xf32>
    %c0_64 = arith.constant 0 : index
    %c0_65 = arith.constant 0 : index
    %126 = vector.load %arg2[%c0_64, %c0_65] : memref<8x32xf32, #tpu.memory_space<vmem>>, vector<8x32xf32>
    %cst_66 = arith.constant dense<0.000000e+00> : vector<8x1xf32>
    %127 = tpu.matmul %126, %124, %cst_66 {dimension_numbers = #tpu.dot_dimension_numbers<[1], [0], [0], [1], [0, 0, 1, 1], [], []>} : vector<8x32xf32>, vector<32x1xf32>, vector<8x1xf32> -> vector<8x1xf32>
    %cst_67 = arith.constant dense<0.000000e+00> : vector<32x1xf32>
    %128 = tpu.matmul %125, %127, %cst_67 {dimension_numbers = #tpu.dot_dimension_numbers<[1], [0], [0], [1], [0, 0, 1, 1], [], []>} : vector<32x8xf32>, vector<8x1xf32>, vector<32x1xf32> -> vector<32x1xf32>
    %cst_68 = arith.constant 9.99999974E-6 : f32
    %129 = vector.broadcast %cst_68 : f32 to vector<32x1xf32>
    %130 = arith.addf %128, %129 : vector<32x1xf32>
    %131 = math.rsqrt %130 : vector<32x1xf32>
    %132 = vector.broadcast %131 : vector<32x1xf32> to vector<32x256xf32>
    %133 = arith.mulf %119, %132 : vector<32x256xf32>
    %c0_69 = arith.constant 0 : index
    %c0_70 = arith.constant 0 : index
    %134 = vector.load %arg4[%c0_69, %c0_70] : memref<32x1xf32, #tpu.memory_space<vmem>>, vector<32x1xf32>
    %135 = vector.broadcast %134 : vector<32x1xf32> to vector<32x256xf32>
    %136 = arith.mulf %133, %135 : vector<32x256xf32>
    %c0_71 = arith.constant 0 : index
    %c0_72 = arith.constant 0 : index
    %137 = vector.load %arg5[%c0_71, %c0_72] : memref<32x1xf32, #tpu.memory_space<vmem>>, vector<32x1xf32>
    %138 = vector.broadcast %137 : vector<32x1xf32> to vector<32x256xf32>
    %139 = arith.addf %136, %138 : vector<32x256xf32>
    %c0_73 = arith.constant 0 : index
    %c0_74 = arith.constant 0 : index
    %140 = vector.load %arg6[%c0_73, %c0_74] : memref<384x32xbf16, #tpu.memory_space<vmem>>, vector<384x32xbf16>
    %141 = arith.truncf %139 : vector<32x256xf32> to vector<32x256xbf16>
    %cst_75 = arith.constant dense<0.000000e+00> : vector<384x256xf32>
    %142 = tpu.matmul %140, %141, %cst_75 {dimension_numbers = #tpu.dot_dimension_numbers<[1], [0], [0], [1], [0, 0, 1, 1], [], []>} : vector<384x32xbf16>, vector<32x256xbf16>, vector<384x256xf32> -> vector<384x256xf32>
    %143 = vector.extract_strided_slice %142 {offsets = [0, 0], sizes = [128, 256], strides = [1, 1]} : vector<384x256xf32> to vector<128x256xf32>
    %144 = vector.extract_strided_slice %142 {offsets = [128, 0], sizes = [128, 256], strides = [1, 1]} : vector<384x256xf32> to vector<128x256xf32>
    %145 = vector.extract_strided_slice %142 {offsets = [256, 0], sizes = [128, 256], strides = [1, 1]} : vector<384x256xf32> to vector<128x256xf32>
    %146 = vector.shape_cast %143 : vector<128x256xf32> to vector<4x32x256xf32>
    %cst_76 = arith.constant dense<0xFF800000> : vector<4x256xf32>
    %147 = vector.multi_reduction <maximumf>, %146, %cst_76 [1] : vector<4x32x256xf32> to vector<4x256xf32>
    %148 = vector.shape_cast %147 : vector<4x256xf32> to vector<4x1x256xf32>
    %149 = vector.broadcast %148 : vector<4x1x256xf32> to vector<4x32x256xf32>
    %150 = arith.subf %146, %149 : vector<4x32x256xf32>
    %151 = math.exp %150 : vector<4x32x256xf32>
    %cst_77 = arith.constant dense<0.000000e+00> : vector<4x256xf32>
    %152 = vector.multi_reduction <add>, %151, %cst_77 [1] : vector<4x32x256xf32> to vector<4x256xf32>
    %153 = vector.shape_cast %152 : vector<4x256xf32> to vector<4x1x256xf32>
    %154 = tpu.reciprocal %153 {approx = true} : vector<4x1x256xf32> -> vector<4x1x256xf32>
    %155 = vector.broadcast %154 : vector<4x1x256xf32> to vector<4x32x256xf32>
    %156 = arith.mulf %151, %155 : vector<4x32x256xf32>
    %157 = vector.shape_cast %156 : vector<4x32x256xf32> to vector<128x256xf32>
    %cst_78 = arith.constant dense<0xFF800000> : vector<128xf32>
    %158 = vector.multi_reduction <maximumf>, %144, %cst_78 [1] : vector<128x256xf32> to vector<128xf32>
    %159 = vector.shape_cast %158 : vector<128xf32> to vector<128x1xf32>
    %160 = vector.broadcast %159 : vector<128x1xf32> to vector<128x256xf32>
    %161 = arith.subf %144, %160 : vector<128x256xf32>
    %162 = math.exp %161 : vector<128x256xf32>
    %cst_79 = arith.constant dense<0.000000e+00> : vector<128xf32>
    %163 = vector.multi_reduction <add>, %162, %cst_79 [1] : vector<128x256xf32> to vector<128xf32>
    %164 = vector.shape_cast %163 : vector<128xf32> to vector<128x1xf32>
    %165 = tpu.reciprocal %164 {approx = true} : vector<128x1xf32> -> vector<128x1xf32>
    %166 = vector.broadcast %165 : vector<128x1xf32> to vector<128x256xf32>
    %167 = arith.mulf %162, %166 : vector<128x256xf32>
    %168 = arith.truncf %145 : vector<128x256xf32> to vector<128x256xbf16>
    %169 = arith.truncf %167 : vector<128x256xf32> to vector<128x256xbf16>
    %cst_80 = arith.constant dense<0.000000e+00> : vector<128x128xf32>
    %170 = tpu.matmul %168, %169, %cst_80 {dimension_numbers = #tpu.dot_dimension_numbers<[1], [1], [0], [0], [0, 0, 1, 0], [], []>} : vector<128x256xbf16>, vector<128x256xbf16>, vector<128x128xf32> -> vector<128x128xf32>
    %c0_81 = arith.constant 0 : index
    %c0_82 = arith.constant 0 : index
    %171 = vector.load %arg11[%c0_81, %c0_82] : memref<128x128xf32, #tpu.memory_space<vmem>>, vector<128x128xf32>
    %172 = arith.mulf %170, %171 : vector<128x128xf32>
    %173 = arith.truncf %172 : vector<128x128xf32> to vector<128x128xbf16>
    %174 = arith.truncf %157 : vector<128x256xf32> to vector<128x256xbf16>
    %cst_83 = arith.constant dense<0.000000e+00> : vector<128x256xf32>
    %175 = tpu.matmul %173, %174, %cst_83 {dimension_numbers = #tpu.dot_dimension_numbers<[1], [0], [0], [1], [0, 0, 1, 1], [], []>} : vector<128x128xbf16>, vector<128x256xbf16>, vector<128x256xf32> -> vector<128x256xf32>
    %c0_84 = arith.constant 0 : index
    %c0_85 = arith.constant 0 : index
    %176 = vector.load %arg7[%c0_84, %c0_85] : memref<32x128xbf16, #tpu.memory_space<vmem>>, vector<32x128xbf16>
    %177 = arith.truncf %175 : vector<128x256xf32> to vector<128x256xbf16>
    %cst_86 = arith.constant dense<0.000000e+00> : vector<32x256xf32>
    %178 = tpu.matmul %176, %177, %cst_86 {dimension_numbers = #tpu.dot_dimension_numbers<[1], [0], [0], [1], [0, 0, 1, 1], [], []>} : vector<32x128xbf16>, vector<128x256xbf16>, vector<32x256xf32> -> vector<32x256xf32>
    %c0_87 = arith.constant 0 : index
    %c0_88 = arith.constant 0 : index
    %179 = vector.load %arg8[%c0_87, %c0_88] : memref<32x1xf32, #tpu.memory_space<vmem>>, vector<32x1xf32>
    %180 = vector.broadcast %179 : vector<32x1xf32> to vector<32x256xf32>
    %181 = arith.addf %178, %180 : vector<32x256xf32>
    %182 = vector.shape_cast %181 : vector<32x256xf32> to vector<1x32x256xf32>
    %cst_89 = arith.constant dense<0.000000e+00> : vector<1xf32>
    %183 = vector.multi_reduction <add>, %182, %cst_89 [1, 2] : vector<1x32x256xf32> to vector<1xf32>
    %184 = vector.shape_cast %183 : vector<1xf32> to vector<1x1x1xf32>
    %185 = vector.extract %184[0, 0, 0] : f32 from vector<1x1x1xf32>
    %186 = vector.broadcast %185 : f32 to vector<1x1xf32>
    %cst_90 = arith.constant 8.192000e+03 : f32
    %187 = vector.broadcast %cst_90 : f32 to vector<1x1xf32>
    %188 = arith.divf %186, %187 : vector<1x1xf32>
    %189 = vector.broadcast %188 : vector<1x1xf32> to vector<32x256xf32>
    %190 = arith.subf %181, %189 : vector<32x256xf32>
    %191 = arith.mulf %190, %190 : vector<32x256xf32>
    %192 = vector.shape_cast %191 : vector<32x256xf32> to vector<1x32x256xf32>
    %cst_91 = arith.constant dense<0.000000e+00> : vector<1xf32>
    %193 = vector.multi_reduction <add>, %192, %cst_91 [1, 2] : vector<1x32x256xf32> to vector<1xf32>
    %194 = vector.shape_cast %193 : vector<1xf32> to vector<1x1x1xf32>
    %195 = vector.extract %194[0, 0, 0] : f32 from vector<1x1x1xf32>
    %196 = vector.broadcast %195 : f32 to vector<1x1xf32>
    %cst_92 = arith.constant 8.192000e+03 : f32
    %197 = vector.broadcast %cst_92 : f32 to vector<1x1xf32>
    %198 = arith.divf %196, %197 : vector<1x1xf32>
    %cst_93 = arith.constant 9.99999974E-6 : f32
    %199 = vector.broadcast %cst_93 : f32 to vector<1x1xf32>
    %200 = arith.addf %198, %199 : vector<1x1xf32>
    %201 = math.rsqrt %200 : vector<1x1xf32>
    %202 = vector.broadcast %201 : vector<1x1xf32> to vector<32x256xf32>
    %203 = arith.mulf %190, %202 : vector<32x256xf32>
    %c0_94 = arith.constant 0 : index
    %c0_95 = arith.constant 0 : index
    %204 = vector.load %arg9[%c0_94, %c0_95] : memref<32x1xf32, #tpu.memory_space<vmem>>, vector<32x1xf32>
    %205 = vector.broadcast %204 : vector<32x1xf32> to vector<32x256xf32>
    %206 = arith.mulf %203, %205 : vector<32x256xf32>
    %c0_96 = arith.constant 0 : index
    %c0_97 = arith.constant 0 : index
    %207 = vector.load %arg10[%c0_96, %c0_97] : memref<32x1xf32, #tpu.memory_space<vmem>>, vector<32x1xf32>
    %208 = vector.broadcast %207 : vector<32x1xf32> to vector<32x256xf32>
    %209 = arith.addf %206, %208 : vector<32x256xf32>
    %210 = arith.truncf %209 : vector<32x256xf32> to vector<32x256xbf16>
    %c1_98 = arith.constant 1 : index
    %c0_99 = arith.constant 0 : index
    %c0_100 = arith.constant 0 : index
    %211 = vector.load %arg12[%c1_98, %c0_99, %c0_100] : memref<2x32x256xbf16, #tpu.memory_space<vmem>>, vector<1x32x256xbf16>
    %212 = vector.shape_cast %211 : vector<1x32x256xbf16> to vector<32x256xbf16>
    %213 = vector.shape_cast %210 : vector<32x256xbf16> to vector<1x32x256xbf16>
    tpu.vector_store %arg12[%c1_98, %c0_99, %c0_100], %213 {strides = array<i32>} : memref<2x32x256xbf16, #tpu.memory_space<vmem>>, vector<1x32x256xbf16>,
    return
  }
  func.func @transform_0(%arg0: i32) -> (i32, i32, i32) {
    %c0_i32 = arith.constant 0 : i32
    %c0_i32_0 = arith.constant 0 : i32
    %c0_i32_1 = arith.constant 0 : i32
    return %arg0, %c0_i32, %c0_i32_0 : i32, i32, i32
  }
  func.func @transform_1(%arg0: i32) -> (i32, i32) {
    %c0_i32 = arith.constant 0 : i32
    %c0_i32_0 = arith.constant 0 : i32
    %c0_i32_1 = arith.constant 0 : i32
    return %c0_i32, %c0_i32_0 : i32, i32
  }
  func.func @transform_2(%arg0: i32) -> (i32, i32) {
    %c0_i32 = arith.constant 0 : i32
    %c0_i32_0 = arith.constant 0 : i32
    %c0_i32_1 = arith.constant 0 : i32
    return %c0_i32, %c0_i32_0 : i32, i32
  }
  func.func @transform_3(%arg0: i32) -> (i32, i32) {
    %c0_i32 = arith.constant 0 : i32
    %c0_i32_0 = arith.constant 0 : i32
    %c0_i32_1 = arith.constant 0 : i32
    return %c0_i32, %c0_i32_0 : i32, i32
  }
  func.func @transform_4(%arg0: i32) -> (i32, i32) {
    %c0_i32 = arith.constant 0 : i32
    %c0_i32_0 = arith.constant 0 : i32
    %c0_i32_1 = arith.constant 0 : i32
    return %c0_i32, %c0_i32_0 : i32, i32
  }
  func.func @transform_5(%arg0: i32) -> (i32, i32) {
    %c0_i32 = arith.constant 0 : i32
    %c0_i32_0 = arith.constant 0 : i32
    %c0_i32_1 = arith.constant 0 : i32
    return %c0_i32, %c0_i32_0 : i32, i32
  }
  func.func @transform_6(%arg0: i32) -> (i32, i32) {
    %c0_i32 = arith.constant 0 : i32
    %c0_i32_0 = arith.constant 0 : i32
    %c0_i32_1 = arith.constant 0 : i32
    return %c0_i32, %c0_i32_0 : i32, i32
  }
  func.func @transform_7(%arg0: i32) -> (i32, i32) {
    %c0_i32 = arith.constant 0 : i32
    %c0_i32_0 = arith.constant 0 : i32
    %c0_i32_1 = arith.constant 0 : i32
    return %c0_i32, %c0_i32_0 : i32, i32
  }
  func.func @transform_8(%arg0: i32) -> (i32, i32) {
    %c0_i32 = arith.constant 0 : i32
    %c0_i32_0 = arith.constant 0 : i32
    %c0_i32_1 = arith.constant 0 : i32
    return %c0_i32, %c0_i32_0 : i32, i32
  }
  func.func @transform_9(%arg0: i32) -> (i32, i32) {
    %c0_i32 = arith.constant 0 : i32
    %c0_i32_0 = arith.constant 0 : i32
    %c0_i32_1 = arith.constant 0 : i32
    return %c0_i32, %c0_i32_0 : i32, i32
  }
  func.func @transform_10(%arg0: i32) -> (i32, i32) {
    %c0_i32 = arith.constant 0 : i32
    %c0_i32_0 = arith.constant 0 : i32
    %c0_i32_1 = arith.constant 0 : i32
    return %c0_i32, %c0_i32_0 : i32, i32
  }
  func.func @transform_11(%arg0: i32) -> (i32, i32, i32) {
    %c0_i32 = arith.constant 0 : i32
    %c0_i32_0 = arith.constant 0 : i32
    %c0_i32_1 = arith.constant 0 : i32
    return %arg0, %c0_i32, %c0_i32_0 : i32, i32, i32
  }
}

</mosaic_0001>

<bundles_post_ra>
// kernel: tpu_custom_call.1
= control target key start
LH: loop header
LB: loop body
LE: loop exit
PB: predicated region body
PF: predicated region fallthrough
CT: control target
= control target key end

     0   :  { %s7995_s0 = inlined_call_operand.vmem [shape: bf16[4,32,256], index: 0, kind: input, shape index: {}]   ;;  %s7996_s1 = inlined_call_operand.vmem [shape: f32[8,32], index: 1, kind: input, shape index: {}]   ;;  %s7997_s2 = inlined_call_operand.vmem [shape: f32[32,8], index: 2, kind: input, shape index: {}]   ;;  %s7998_s3 = inlined_call_operand.vmem [shape: f32[32,1], index: 3, kind: input, shape index: {}]   ;;  %s7999_s4 = inlined_call_operand.vmem [shape: f32[32,1], index: 4, kind: input, shape index: {}]   ;;  %s8000_s5 = inlined_call_operand.vmem [shape: bf16[384,32], index: 5, kind: input, shape index: {}]   ;;  %s8001_s6 = inlined_call_operand.vmem [shape: bf16[32,128], index: 6, kind: input, shape index: {}]   ;;  %s8002_s7 = inlined_call_operand.vmem [shape: f32[32,1], index: 7, kind: input, shape index: {}]   ;;  %s8003_s8 = inlined_call_operand.vmem [shape: f32[32,1], index: 8, kind: input, shape index: {}]   ;;  %s8004_s9 = inlined_call_operand.vmem [shape: f32[32,1], index: 9, kind: input, shape index: {}]   ;;  %s8005_s10 = inlined_call_operand.vmem [shape: f32[128,128], index: 10, kind: input, shape index: {}]   ;;  %s8006_s11 = inlined_call_operand.hbm [shape: bf16[4,32,256], index: 11, kind: output, shape index: {}]  }
   0x1   :  { %8073 = sst [smem:[#allocation32_spill]] %s7995_s0 }
   0x2   :  { %16 = vsyncpa [#allocation3], 0 }
   0x3   :  { %18 = vsyncpa [#allocation3 + $0x1], 0  ;;  %s5565_s17 = smov 0   ;;  %s5567_s18 = smov 0  }
   0x4   :  { %s5569_s19 = smov 0   ;;  %s5571_s20 = smov 0  }
   0x5 LB: > { %s5586_s21 = sadd.s32 4294967295, %s5497_s20   ;;  %s4682_s22 = sadd.s32 4294967294, %s5497_s20   ;;  %s5497_s20 = sphi %s5571_s20, %s8226_s20   ;;  %s5493_s19 = sphi %s5569_s19, %s8225_s19   ;;  %s5489_s18 = sphi %s5567_s18, %s8224_s18   ;;  %s5485_s17 = sphi %s5565_s17, %s8223_s17  }
   0x6   : > { %s5590_s23 = sadd.s32 1, %s5497_s20   ;;  %s267_s24 = sadd.s32 1, %s5493_s19 }
   0x7   : > { %s264_s25 = ssub.s32 %s5497_s20, %s5590_s23  ;;  %p277_p0 = scmp.ne.s32.totalorder %s5493_s19, %s5489_s18 }
   0x8   : > { %p265_p1 = scmp.eq.s32.totalorder %s264_s25, 0  ;;  %p278_p2 = scmp.eq.s32.totalorder %s5586_s21, 1 }
   0x9   : > { %p283_p3 = scmp.ne.s32.totalorder %s5489_s18, %s5485_s17  ;;  %p284_p4 = scmp.eq.s32.totalorder %s4682_s22, 1 }
   0xa   : > { %s5601_s26 = scalar_select %p265_p1, %s5493_s19, %s267_s24  }
   0xb   : > { %p5603_p5 = por %p278_p2, %p277_p0  ;;  %p5607_p6 = por %p284_p4, %p283_p3 }
   0xc   : > { %p4685_p7 = scmp.ge.s32.totalorder %s5497_s20, 1  ;;  %p342_p8 = scmp.lt.s32.totalorder %s5497_s20, 3 }
   0xe   : > { %p343_p9 = pnand %p4685_p7, %p342_p8 }
  0x10   : > { %346 = sbr.rel (%p343_p9) target bundleno = 5143 (0x1417), region = 64 }
  0x15   : > { %s4687_s29 = sshll.u32 %s5586_s21, 1  ;;  %s8076_s0 = sld [smem:[#allocation32_spill]]  ;;  %v8007_v16 = vmov 0.0   ;;  %vm5500_vm0 = vmmov 0   ;;  %v5661_v25 = vld [vmem:[%s7996_s1] sm:$0xff]  ;;  %vm425_vm1 = vcmask 261120  }
  0x16   : > { %p384_p10 = scmp.lt.s32.totalorder %s4687_s29, 3  ;;  %4883 = vmatprep.subr.mxu0 %v8007_v16  ;;  %4891 = vmatprep.mubr.msk.f32.mxu0 %vm5500_vm0, %v8007_v16  ;;  %v420_v26 = vld [vmem:[%s7997_s2] sm:$0xff]  ;;  %vm499_vm2 = vcmask 64512   ;;  %v8009_v27 = vmov 0   ;;  %v5676_v29 = vld [vmem:[%s7997_s2 + $0x8] sm:$0xff]  ;;  %v5681_v30 = vld [vmem:[%s7997_s2 + $0x10] sm:$0xff] }
  0x17   : > { %4896 = vmatprep.mubr.msk.f32.mxu1 %vm499_vm2, %v420_v26  ;;  %5012 = vset.pattern.permute.xlu1 %v8009_v27  ;;  %v5691_v32 = vld [vmem:[%s7997_s2 + $0x18] sm:$0xff]  ;;  %v838_v62 = vld [vmem:[%s7998_s3 + $0x10] sm:$0xff]  ;;  %s380_s24 = sand.u32 1, %s5489_s18   ;;  %s5502_s13 = smov [#allocation2]  }
  0x18   : > { %s8228_s29 = smov (!%p384_p10, %s4687_s29), 3  ;;  %5011 = vset.pattern.permute.xlu0 %v8009_v27  ;;  %v871_v61 = vld [vmem:[%s7999_s4 + $0x18] sm:$0xff]  ;;  %s4686_s25 = sshll.u32 %s380_s24, 6 }
  0x19   : > { %s4832_s30 = sshll.u32 %s8228_s29, 5  ;;  %v839_v63 = vld [vmem:[%s7998_s3 + $0x18] sm:$0xff]  ;;  %s7846_s29 = scalar_lea.vmem [#allocation2], %s4686_s25 }
  0x1b   : > { %s5617_s14 = scalar_lea.vmem %s8076_s0, %s4832_s30  ;;  %s7955_s30 = scalar_lea.sflag [#allocation3], %s380_s24 }
  0x1c   : > { %v5620_v0 = vld [vmem:[%s5617_s14 + $0x18] sm:$0xff]  ;;  %v5623_v1 = vld [vmem:[%s5617_s14 + $0x10] sm:$0xff]  ;;  %v5626_v2 = vld [vmem:[%s5617_s14 + $0x8] sm:$0xff] }
  0x1d   : > { %v402_v3 = vunpack.c.l.bf16 %v5620_v0  ;;  %v403_v4 = vunpack.c.h.bf16 %v5620_v0  ;;  %v400_v5 = vunpack.c.l.bf16 %v5623_v1  ;;  %v401_v6 = vunpack.c.h.bf16 %v5623_v1  ;;  %v5633_v7 = vld [vmem:[%s5617_s14] sm:$0xff]  ;;  %v870_v0 = vld [vmem:[%s7999_s4 + $0x10] sm:$0xff] }
  0x1e   : > { %v398_v8 = vunpack.c.l.bf16 %v5626_v2  ;;  %v399_v9 = vunpack.c.h.bf16 %v5626_v2  ;;  %v396_v10 = vunpack.c.l.bf16 %v5633_v7  ;;  %v397_v11 = vunpack.c.h.bf16 %v5633_v7 }
  0x1f   : > { %v413_v12 = vadd.f32 %v403_v4, %v402_v3  ;;  %v410_v14 = vadd.f32 %v401_v6, %v400_v5 }
  0x20   : > { %v407_v13 = vadd.f32 %v399_v9, %v398_v8  ;;  %v404_v15 = vadd.f32 %v397_v11, %v396_v10 }
  0x21   : > { %414 = vadd.xlane.f32.xlu0 %v413_v12 }
  0x22   : > { %408 = vadd.xlane.f32.xlu1 %v407_v13 }
  0x25   : > { %411 = vadd.xlane.f32.xlu0 %v410_v14 }
  0x26   : > { %405 = vadd.xlane.f32.xlu1 %v404_v15 }
  0xaa   : > { %v415_v17 = vpop.xlane.xlu0 %414 }
  0xab   : > { %v419_v18 = vmul.f32 0.00390625, %v415_v17  ;;  %v409_v19 = vpop.xlane.xlu1 %408 }
  0xac   : > { %v417_v23 = vmul.f32 0.00390625, %v409_v19 }
  0xad   : > { %4884 = vmatpush3.msra.mxu0 %v419_v18 }
  0xae   : > { %v412_v20 = vpop.xlane.xlu0 %411  ;;  %4885 = vmatprep.subr.mxu0 %v8007_v16 }
  0xaf   : > { %v418_v21 = vmul.f32 0.00390625, %v412_v20  ;;  %v406_v22 = vpop.xlane.xlu1 %405 }
  0xb0   : > { %v416_v24 = vmul.f32 0.00390625, %v406_v22 }
  0xb1   : > { %4886 = vmatpush3.msra.mxu0 %v418_v21 }
  0xb2   : > { %4887 = vmatprep.subr.mxu0 %v8007_v16 }
  0xb3   : > { %4888 = vmatpush3.msra.mxu0 %v417_v23 }
  0xb4   : > { %4889 = vmatprep.subr.mxu0 %v8007_v16 }
  0xb5   : > { %4890 = vmatpush3.msra.mxu0 %v416_v24  ;;  %v837_v24 = vld [vmem:[%s7998_s3 + $0x8] sm:$0xff] }
  0xb6   : > { %4892 = vmatmul.mubr.msk.f32.vlgmr.msra.gmra.mxu0 %vm425_vm1, %v5661_v25 }
  0xb7   : > { %4915 = vmatprep.mubr.msk.f32.mxu0 %vm499_vm2, %v420_v26  ;;  %v869_v26 = vld [vmem:[%s7999_s4 + $0x8] sm:$0xff] }
 0x176   : > { %v495_v28 = vpop.f32.mrf.mxu0 }
 0x177   : > { %4894 = vmatprep.subr.mxu1 %v495_v28 }
 0x178   : > { %v4893_v31 = vpop.f32.mrf.mxu0  ;;  %4895 = vmatpush3.msra.mxu1 %v495_v28  ;;  %v868_v28 = vld [vmem:[%s7999_s4] sm:$0xff] }
 0x179   : > { %4897 = vmatmul.mubr.msk.f32.vlgmr.msra.gmra.mxu1 %vm499_vm2, %v5676_v29  ;;  %4902 = vmatprep.subr.mxu1 %v8007_v16 }
 0x17a   : > { %4899 = vmatprep.mubr.msk.f32.mxu1 %vm499_vm2, %v5681_v30 }
 0x17d   : > { %4900 = vmatmul.mubr.msk.f32.gmra.mxu1 %vm499_vm2, %v5691_v32 }
 0x17e   : > { %4910 = vmatprep.mubr.msk.f32.mxu1 %vm5500_vm0, %v8007_v16 }
 0x239   : > { %v4898_v33 = vpop.f32.mrf.mxu1 }
 0x23a   : > { %604 = vperm.xlu1 %5012, %v4898_v33  }
 0x23b   : > { %v578_v34 = vpop.f32.mrf.mxu1 }
 0x23d   : > { %v4901_v35 = vpop.f32.mrf.mxu1 }
 0x23e   : > { %614 = vperm.xlu0 %5011, %v4901_v35  }
 0x23f   : > { %v588_v36 = vpop.f32.mrf.mxu1 }
 0x240   : > { %609 = vperm.xlu1 %5012, %v588_v36  }
 0x244   : > { %599 = vperm.xlu1 %5012, %v578_v34  }
 0x2b5   : > { %v605_v37 = vpop.permute.xlu1 %604 }
 0x2b6   : > { %v5697_v38 = vsub.f32 %v398_v8, %v605_v37  ;;  %v5701_v40 = vsub.f32 %v399_v9, %v605_v37 }
 0x2b8   : > { %v627_v48 = vmul.f32 %v5697_v38, %v5697_v38  ;;  %v628_v52 = vmul.f32 %v5701_v40, %v5701_v40 }
 0x2b9   : > { %v615_v39 = vpop.permute.xlu0 %614 }
 0x2ba   : > { %v5705_v41 = vsub.f32 %v402_v3, %v615_v39  ;;  %v5709_v42 = vsub.f32 %v403_v4, %v615_v39  ;;  %v636_v57 = vadd.f32 %v628_v52, %v627_v48 }
 0x2bb   : > { %v610_v43 = vpop.permute.xlu1 %609 }
 0x2bc   : > { %v5713_v44 = vsub.f32 %v400_v5, %v610_v43  ;;  %v5717_v45 = vsub.f32 %v401_v6, %v610_v43  ;;  %v631_v46 = vmul.f32 %v5705_v41, %v5705_v41  ;;  %v632_v47 = vmul.f32 %v5709_v42, %v5709_v42 }
 0x2be   : > { %v642_v49 = vadd.f32 %v632_v47, %v631_v46  ;;  %v629_v50 = vmul.f32 %v5713_v44, %v5713_v44  ;;  %v630_v51 = vmul.f32 %v5717_v45, %v5717_v45 }
 0x2bf   : > { %v600_v53 = vpop.permute.xlu1 %599 }
 0x2c0   : > { %v5733_v54 = vsub.f32 %v396_v10, %v600_v53  ;;  %v5737_v55 = vsub.f32 %v397_v11, %v600_v53  ;;  %643 = vadd.xlane.f32.xlu1 %v642_v49  ;;  %v639_v56 = vadd.f32 %v630_v51, %v629_v50 }
 0x2c2   : > { %640 = vadd.xlane.f32.xlu0 %v639_v56  ;;  %v625_v58 = vmul.f32 %v5733_v54, %v5733_v54  ;;  %v626_v59 = vmul.f32 %v5737_v55, %v5737_v55 }
 0x2c4   : > { %637 = vadd.xlane.f32.xlu1 %v636_v57  ;;  %v633_v60 = vadd.f32 %v626_v59, %v625_v58 }
 0x2c8   : > { %634 = vadd.xlane.f32.xlu1 %v633_v60 }
 0x2d8   : > { %889 = vperm.xlu0 %5011, %v871_v61  }
 0x2d9   : > { %852 = vperm.xlu1 %5012, %v838_v62  }
 0x2dd   : > { %857 = vperm.xlu1 %5012, %v839_v63  }
 0x2e1   : > { %884 = vperm.xlu1 %5012, %v870_v0  }
 0x349   : > { %v644_v1 = vpop.xlane.xlu1 %643 }
 0x34a   : > { %v648_v2 = vmul.f32 0.00390625, %v644_v1 }
 0x34b   : > { %v641_v3 = vpop.xlane.xlu0 %640 }
 0x34c   : > { %v647_v4 = vmul.f32 0.00390625, %v641_v3  ;;  %4903 = vmatpush3.msra.mxu1 %v648_v2 }
 0x34d   : > { %4904 = vmatprep.subr.mxu1 %v8007_v16  ;;  %v638_v5 = vpop.xlane.xlu1 %637 }
 0x34e   : > { %v646_v6 = vmul.f32 0.00390625, %v638_v5  ;;  %4905 = vmatpush3.msra.mxu1 %v647_v4  ;;  %v5013_v5 = vld [vmem:[%s8000_s5] sm:$0xff]  }
 0x34f   : > { %4906 = vmatprep.subr.mxu1 %v8007_v16 }
 0x350   : > { %4907 = vmatpush3.msra.mxu1 %v646_v6  ;;  %v5014_v6 = vld [vmem:[%s8000_s5 + $0x8] sm:$0xff]  }
 0x351   : > { %v635_v7 = vpop.xlane.xlu1 %634  ;;  %4908 = vmatprep.subr.mxu1 %v8007_v16 }
 0x352   : > { %v645_v8 = vmul.f32 0.00390625, %v635_v7  ;;  %v5015_v7 = vld [vmem:[%s8000_s5 + $0x10] sm:$0xff]  }
 0x353   : > { %v890_v31 = vpop.permute.xlu0 %889 }
 0x354   : > { %4909 = vmatpush3.msra.mxu1 %v645_v8  ;;  %v5016_v8 = vld [vmem:[%s8000_s5 + $0x18] sm:$0xff]  }
 0x355   : > { %4911 = vmatmul.mubr.msk.f32.vlgmr.msra.gmra.mxu1 %vm425_vm1, %v5661_v25  ;;  %v836_v25 = vld [vmem:[%s7998_s3] sm:$0xff] }
 0x356   : > { %1176 = vmatprep.mubr.bf16.mxu1 %v8009_v27 }
 0x415   : > { %v715_v9 = vpop.f32.mrf.mxu1 }
 0x416   : > { %4913 = vmatprep.subr.mxu0 %v715_v9 }
 0x417   : > { %v4912_v10 = vpop.f32.mrf.mxu1  ;;  %4914 = vmatpush3.msra.mxu0 %v715_v9  ;;  %v5017_v9 = vld [vmem:[%s8000_s5 + $0x20] sm:$0xff]  }
 0x418   : > { %4916 = vmatmul.mubr.msk.f32.vlgmr.msra.gmra.mxu0 %vm499_vm2, %v5676_v29  ;;  %v853_v29 = vpop.permute.xlu1 %852  ;;  %v5018_v10 = vld [vmem:[%s8000_s5 + $0x28] sm:$0xff]  }
 0x419   : > { %4918 = vmatprep.mubr.msk.f32.mxu0 %vm499_vm2, %v5681_v30 }
 0x41c   : > { %4919 = vmatmul.mubr.msk.f32.gmra.mxu0 %vm499_vm2, %v5691_v32  ;;  %v858_v30 = vpop.permute.xlu1 %857 }
 0x420   : > { %v885_v32 = vpop.permute.xlu1 %884 }
 0x4d8   : > { %v4917_v11 = vpop.f32.mrf.mxu0 }
 0x4d9   : > { %v791_v12 = vadd.f32 1e-05, %v4917_v11  ;;  %v5019_v11 = vld [vmem:[%s8000_s5 + $0x30] sm:$0xff]  }
 0x4da   : > { %v785_v13 = vpop.f32.mrf.mxu0 }
 0x4db   : > { %5065 = vrsqrt.f32 %v791_v12  ;;  %v786_v14 = vadd.f32 1e-05, %v785_v13  ;;  %v5020_v12 = vld [vmem:[%s8000_s5 + $0x38] sm:$0xff]   ;;  %v5021_v13 = vld [vmem:[%s8000_s5 + $0x40] sm:$0xff]  }
 0x4dc   : > { %v4920_v15 = vpop.f32.mrf.mxu0 }
 0x4dd   : > { %5067 = vrsqrt.f32 %v786_v14  ;;  %v801_v17 = vadd.f32 1e-05, %v4920_v15  ;;  %v5022_v14 = vld [vmem:[%s8000_s5 + $0x48] sm:$0xff]   ;;  %v5023_v15 = vld [vmem:[%s8000_s5 + $0x50] sm:$0xff]  }
 0x4de   : > { %v795_v18 = vpop.f32.mrf.mxu0 }
 0x4df   : > { %5069 = vrsqrt.f32 %v801_v17  ;;  %v796_v19 = vadd.f32 1e-05, %v795_v18  ;;  %v5024_v17 = vld [vmem:[%s8000_s5 + $0x58] sm:$0xff]   ;;  %v5025_v18 = vld [vmem:[%s8000_s5 + $0x60] sm:$0xff]  }
 0x4e1   : > { %5071 = vrsqrt.f32 %v796_v19  ;;  %v5026_v19 = vld [vmem:[%s8000_s5 + $0x68] sm:$0xff]  }
 0x4e8   : > { %v5066_v20 = vpop.eup %5065 }
 0x4e9   : > { %815 = vperm.xlu0 %5011, %v5066_v20   ;;  %v5027_v20 = vld [vmem:[%s8000_s5 + $0x70] sm:$0xff]  }
 0x4ea   : > { %v5068_v21 = vpop.eup %5067 }
 0x4eb   : > { %810 = vperm.xlu1 %5012, %v5068_v21   ;;  %v5028_v21 = vld [vmem:[%s8000_s5 + $0x78] sm:$0xff]  }
 0x4ec   : > { %v5070_v22 = vpop.eup %5069 }
 0x4ed   : > { %825 = vperm.xlu0 %5011, %v5070_v22  }
 0x4ee   : > { %v5072_v23 = vpop.eup %5071 }
 0x4ef   : > { %820 = vperm.xlu1 %5012, %v5072_v23  }
 0x4f1   : > { %847 = vperm.xlu0 %5011, %v837_v24  }
 0x4f3   : > { %842 = vperm.xlu1 %5012, %v836_v25  }
 0x4f5   : > { %879 = vperm.xlu0 %5011, %v869_v26  }
 0x4f7   : > { %874 = vperm.xlu1 %5012, %v868_v28  }
 0x564   : > { %v816_v33 = vpop.permute.xlu0 %815 }
 0x565   : > { %v830_v52 = vmul.f32 %v816_v33, %v5697_v38  ;;  %v831_v53 = vmul.f32 %v816_v33, %v5701_v40 }
 0x566   : > { %v811_v34 = vpop.permute.xlu1 %810 }
 0x567   : > { %v828_v56 = vmul.f32 %v811_v34, %v5733_v54 }
 0x568   : > { %v826_v35 = vpop.permute.xlu0 %825 }
 0x569   : > { %v834_v36 = vmul.f32 %v826_v35, %v5705_v41  ;;  %v835_v37 = vmul.f32 %v826_v35, %v5709_v42  ;;  %v829_v41 = vmul.f32 %v811_v34, %v5737_v55 }
 0x56a   : > { %v821_v39 = vpop.permute.xlu1 %820 }
 0x56b   : > { %v866_v43 = vmul.f32 %v858_v30, %v834_v36  ;;  %v867_v46 = vmul.f32 %v858_v30, %v835_v37  ;;  %v832_v47 = vmul.f32 %v821_v39, %v5713_v44  ;;  %v833_v48 = vmul.f32 %v821_v39, %v5717_v45 }
 0x56c   : > { %v848_v49 = vpop.permute.xlu0 %847 }
 0x56d   : > { %v864_v50 = vmul.f32 %v853_v29, %v832_v47  ;;  %v865_v51 = vmul.f32 %v853_v29, %v833_v48  ;;  %v898_v42 = vadd.f32 %v890_v31, %v866_v43  ;;  %v899_v60 = vadd.f32 %v890_v31, %v867_v46 }
 0x56e   : > { %v843_v57 = vpop.permute.xlu1 %842  ;;  %v862_v61 = vmul.f32 %v848_v49, %v830_v52  ;;  %v863_v44 = vmul.f32 %v848_v49, %v831_v53 }
 0x56f   : > { %v896_v58 = vadd.f32 %v885_v32, %v864_v50  ;;  %v897_v59 = vadd.f32 %v885_v32, %v865_v51  ;;  %v860_v45 = vmul.f32 %v843_v57, %v828_v56  ;;  %v861_v63 = vmul.f32 %v843_v57, %v829_v41 }
 0x570   : > { %v880_v62 = vpop.permute.xlu0 %879 }
 0x571   : > { %v951_v0 = vpack.c.bf16 %v899_v60, %v897_v59  ;;  %v950_v1 = vpack.c.bf16 %v898_v42, %v896_v58  ;;  %v894_v38 = vadd.f32 %v880_v62, %v862_v61  ;;  %v895_v3 = vadd.f32 %v880_v62, %v863_v44 }
 0x572   : > { %v875_v2 = vpop.permute.xlu1 %874 }
 0x573   : > { %v892_v40 = vadd.f32 %v875_v2, %v860_v45  ;;  %v893_v4 = vadd.f32 %v875_v2, %v861_v63  ;;  %1156 = vmatprep.subr.bf16.mxu1 %v951_v0 }
 0x574   : > { %1157 = vmatpush1.bf16.msra.mxu1 %v950_v1 }
 0x575   : > { %v948_v54 = vpack.c.bf16 %v894_v38, %v892_v40  ;;  %v949_v55 = vpack.c.bf16 %v895_v3, %v893_v4 }
 0x577   : > { %1158 = vmatprep.subr.bf16.mxu1 %v949_v55 }
 0x578   : > { %1159 = vmatpush1.bf16.msra.mxu1 %v948_v54 }
 0x579   : > { %4921 = vmatprep.subr.mxu1 %v8007_v16 }
 0x57b   : > { %4724 = vmatmul.mubr.msk.bf16.vlgmr.msra.gmra.mxu1 %vm425_vm1, %v5013_v5 }
 0x57c   : > { %1186 = vmatprep.mubr.bf16.mxu1 %v8009_v27 }
 0x583   : > { %4725 = vmatmul.mubr.msk.bf16.gmra.mxu1 %vm425_vm1, %v5014_v6 }
 0x584   : > { %1196 = vmatprep.mubr.bf16.mxu1 %v8009_v27 }
 0x58b   : > { %4726 = vmatmul.mubr.msk.bf16.gmra.mxu1 %vm425_vm1, %v5015_v7 }
 0x58c   : > { %1206 = vmatprep.mubr.bf16.mxu1 %v8009_v27 }
 0x593   : > { %4727 = vmatmul.mubr.msk.bf16.gmra.mxu1 %vm425_vm1, %v5016_v8 }
 0x594   : > { %1216 = vmatprep.mubr.bf16.mxu1 %v8009_v27 }
 0x59b   : > { %4728 = vmatmul.mubr.msk.bf16.gmra.mxu1 %vm425_vm1, %v5017_v9 }
 0x59c   : > { %1226 = vmatprep.mubr.bf16.mxu1 %v8009_v27 }
 0x5a3   : > { %4729 = vmatmul.mubr.msk.bf16.gmra.mxu1 %vm425_vm1, %v5018_v10 }
 0x5a4   : > { %1236 = vmatprep.mubr.bf16.mxu1 %v8009_v27 }
 0x5ab   : > { %4730 = vmatmul.mubr.msk.bf16.gmra.mxu1 %vm425_vm1, %v5019_v11 }
 0x5ac   : > { %1246 = vmatprep.mubr.bf16.mxu1 %v8009_v27 }
 0x5b3   : > { %4731 = vmatmul.mubr.msk.bf16.gmra.mxu1 %vm425_vm1, %v5020_v12 }
 0x5b4   : > { %1256 = vmatprep.mubr.bf16.mxu1 %v8009_v27 }
 0x5bb   : > { %4732 = vmatmul.mubr.msk.bf16.gmra.mxu1 %vm425_vm1, %v5021_v13 }
 0x5bc   : > { %1266 = vmatprep.mubr.bf16.mxu1 %v8009_v27 }
 0x5c3   : > { %4733 = vmatmul.mubr.msk.bf16.gmra.mxu1 %vm425_vm1, %v5022_v14 }
 0x5c4   : > { %1276 = vmatprep.mubr.bf16.mxu1 %v8009_v27 }
 0x5cb   : > { %4734 = vmatmul.mubr.msk.bf16.gmra.mxu1 %vm425_vm1, %v5023_v15 }
 0x5cc   : > { %1286 = vmatprep.mubr.bf16.mxu1 %v8009_v27 }
 0x5d3   : > { %4735 = vmatmul.mubr.msk.bf16.gmra.mxu1 %vm425_vm1, %v5024_v17 }
 0x5d4   : > { %1296 = vmatprep.mubr.bf16.mxu1 %v8009_v27 }
 0x5db   : > { %4736 = vmatmul.mubr.msk.bf16.gmra.mxu1 %vm425_vm1, %v5025_v18 }
 0x5dc   : > { %1306 = vmatprep.mubr.bf16.mxu1 %v8009_v27 }
 0x5e3   : > { %4737 = vmatmul.mubr.msk.bf16.gmra.mxu1 %vm425_vm1, %v5026_v19 }
 0x5e4   : > { %1316 = vmatprep.mubr.bf16.mxu1 %v8009_v27 }
 0x5eb   : > { %4738 = vmatmul.mubr.msk.bf16.gmra.mxu1 %vm425_vm1, %v5027_v20 }
 0x5ec   : > { %1326 = vmatprep.mubr.bf16.mxu1 %v8009_v27 }
 0x5f3   : > { %4739 = vmatmul.mubr.msk.bf16.gmra.mxu1 %vm425_vm1, %v5028_v21 }
 0x5f4   : > { %1336 = vmatprep.mubr.bf16.mxu1 %v8009_v27 }
 0x63b   : > { %v1178_v22 = vpop.f32.mrf.mxu1 }
 0x63d   : > { %v1180_v23 = vpop.f32.mrf.mxu1 }
 0x63f   : > { %v1182_v24 = vpop.f32.mrf.mxu1 }
 0x640   : > { %v1417_v25 = vmax.f32 %v1178_v22, %v1182_v24 }
 0x641   : > { %v1184_v26 = vpop.f32.mrf.mxu1 }
 0x642   : > { %v1426_v31 = vmax.f32 %v1180_v23, %v1184_v26 }
 0x643   : > { %v1188_v28 = vpop.f32.mrf.mxu1 }
 0x644   : > { %v1418_v29 = vmax.f32 %v1417_v25, %v1188_v28 }
 0x645   : > { %v1190_v30 = vpop.f32.mrf.mxu1 }
 0x646   : > { %v1427_v33 = vmax.f32 %v1426_v31, %v1190_v30 }
 0x647   : > { %v1192_v32 = vpop.f32.mrf.mxu1 }
 0x648   : > { %v1419_v34 = vmax.f32 %v1418_v29, %v1192_v32 }
 0x649   : > { %v1194_v35 = vpop.f32.mrf.mxu1 }
 0x64a   : > { %v1420_v36 = vrot.slane %v1419_v34, 4  ;;  %v1428_v37 = vmax.f32 %v1427_v33, %v1194_v35 }
 0x64b   : > { %v5868_v39 = vpop.f32.mrf.mxu1 }
 0x64c   : > { %v1421_v43 = vmax.f32 %v1419_v34, %v1420_v36  ;;  %v1429_v46 = vrot.slane %v1428_v37, 4 }
 0x64d   : > { %v5870_v47 = vpop.f32.mrf.mxu1 }
 0x64e   : > { %v1422_v48 = vrot.slane %v1421_v43, 2  ;;  %v1430_v49 = vmax.f32 %v1428_v37, %v1429_v46 }
 0x64f   : > { %v5872_v50 = vpop.f32.mrf.mxu1 }
 0x650   : > { %v1423_v51 = vmax.f32 %v1421_v43, %v1422_v48  ;;  %v1431_v52 = vrot.slane %v1430_v49, 2  ;;  %v1435_v53 = vmax.f32 %v5868_v39, %v5872_v50 }
 0x651   : > { %v5876_v56 = vpop.f32.mrf.mxu1 }
 0x652   : > { %v1424_v41 = vrot.slane %v1423_v51, 1  ;;  %v1432_v57 = vmax.f32 %v1430_v49, %v1431_v52  ;;  %v1444_v61 = vmax.f32 %v5870_v47, %v5876_v56 }
 0x653   : > { %v5878_v42 = vpop.f32.mrf.mxu1 }
 0x654   : > { %v1425_v58 = vmax.f32 %v1423_v51, %v1424_v41  ;;  %v1433_v59 = vrot.slane %v1432_v57, 1  ;;  %v1436_v60 = vmax.f32 %v1435_v53, %v5878_v42 }
 0x655   : > { %v5883_v44 = vpop.f32.mrf.mxu1 }
 0x656   : > { %v1489_v62 = vsub.f32 %v1178_v22, %v1425_v58  ;;  %v1491_v45 = vsub.f32 %v1182_v24, %v1425_v58  ;;  %v1493_v63 = vsub.f32 %v1188_v28, %v1425_v58  ;;  %v1495_v0 = vsub.f32 %v1192_v32, %v1425_v58 }
 0x657   : > { %v1434_v1 = vmax.f32 %v1432_v57, %v1433_v59  ;;  %v1445_v2 = vmax.f32 %v1444_v61, %v5883_v44  ;;  %v1212_v38 = vpop.f32.mrf.mxu1 }
 0x658   : > { %v1521_v3 = vmul.f32 1.442695, %v1489_v62  ;;  %v1525_v40 = vmul.f32 1.442695, %v1491_v45  ;;  %v1529_v4 = vmul.f32 1.442695, %v1493_v63  ;;  %v1437_v54 = vmax.f32 %v1436_v60, %v1212_v38 }
 0x659   : > { %v1533_v55 = vmul.f32 1.442695, %v1495_v0  ;;  %v1490_v5 = vsub.f32 %v1180_v23, %v1434_v1  ;;  %v1492_v6 = vsub.f32 %v1184_v26, %v1434_v1  ;;  %v1494_v7 = vsub.f32 %v1190_v30, %v1434_v1  ;;  %v5886_v8 = vpop.f32.mrf.mxu1 }
 0x65a   : > { %5073 = vpow2.f32 %v1521_v3  ;;  %v1496_v9 = vsub.f32 %v1194_v35, %v1434_v1  ;;  %v1438_v10 = vrot.slane %v1437_v54, 4  ;;  %v1446_v11 = vmax.f32 %v1445_v2, %v5886_v8 }
 0x65b   : > { %5075 = vpow2.f32 %v1525_v40  ;;  %v1523_v12 = vmul.f32 1.442695, %v1490_v5  ;;  %v1527_v13 = vmul.f32 1.442695, %v1492_v6  ;;  %v5889_v14 = vpop.f32.mrf.mxu1  ;;  %v1531_v18 = vmul.f32 1.442695, %v1494_v7 }
 0x65c   : > { %5077 = vpow2.f32 %v1529_v4  ;;  %v1439_v15 = vmax.f32 %v1437_v54, %v1438_v10  ;;  %v1447_v17 = vrot.slane %v1446_v11, 4  ;;  %v1535_v22 = vmul.f32 1.442695, %v1496_v9 }
 0x65d   : > { %5079 = vpow2.f32 %v1533_v55  ;;  %v5891_v19 = vpop.f32.mrf.mxu1 }
 0x65e   : > { %5081 = vpow2.f32 %v1523_v12  ;;  %v1440_v20 = vrot.slane %v1439_v15, 2  ;;  %v1448_v21 = vmax.f32 %v1446_v11, %v1447_v17 }
 0x65f   : > { %5083 = vpow2.f32 %v1527_v13  ;;  %v5893_v23 = vpop.f32.mrf.mxu1 }
 0x660   : > { %v1441_v24 = vmax.f32 %v1439_v15, %v1440_v20  ;;  %v1449_v25 = vrot.slane %v1448_v21, 2  ;;  %v1453_v26 = vmax.f32 %v5889_v14, %v5893_v23  ;;  %5085 = vpow2.f32 %v1531_v18 }
 0x661   : > { %v5897_v28 = vpop.f32.mrf.mxu1  ;;  %5087 = vpow2.f32 %v1535_v22 }
 0x662   : > { %v1442_v29 = vrot.slane %v1441_v24, 1  ;;  %v1450_v30 = vmax.f32 %v1448_v21, %v1449_v25  ;;  %v1462_v35 = vmax.f32 %v5891_v19, %v5897_v28 }
 0x663   : > { %v5899_v31 = vpop.f32.mrf.mxu1 }
 0x664   : > { %v1443_v32 = vmax.f32 %v1441_v24, %v1442_v29  ;;  %v1451_v33 = vrot.slane %v1450_v30, 1  ;;  %v1454_v34 = vmax.f32 %v1453_v26, %v5899_v31 }
 0x665   : > { %v5904_v36 = vpop.f32.mrf.mxu1 }
 0x666   : > { %v1497_v37 = vsub.f32 %v5868_v39, %v1443_v32  ;;  %v1499_v43 = vsub.f32 %v5872_v50, %v1443_v32  ;;  %v1501_v46 = vsub.f32 %v5878_v42, %v1443_v32  ;;  %v1503_v48 = vsub.f32 %v1212_v38, %v1443_v32 }
 0x667   : > { %v5909_v49 = vpop.eup %5073  ;;  %v1452_v51 = vmax.f32 %v1450_v30, %v1451_v33  ;;  %v1463_v52 = vmax.f32 %v1462_v35, %v5904_v36  ;;  %v5912_v53 = vpop.f32.mrf.mxu1 }
 0x668   : > { %v5914_v41 = vpop.eup %5075  ;;  %v1537_v57 = vmul.f32 1.442695, %v1497_v37  ;;  %v1541_v58 = vmul.f32 1.442695, %v1499_v43  ;;  %v1545_v59 = vmul.f32 1.442695, %v1501_v46  ;;  %v1455_v60 = vmax.f32 %v1454_v34, %v5912_v53 }
 0x669   : > { %v5917_v39 = vpop.eup %5077  ;;  %v1585_v50 = vadd.f32 %v5914_v41, %v5909_v49  ;;  %v1549_v42 = vmul.f32 1.442695, %v1503_v48  ;;  %v1498_v61 = vsub.f32 %v5870_v47, %v1452_v51  ;;  %v1500_v62 = vsub.f32 %v5876_v56, %v1452_v51  ;;  %v5923_v45 = vpop.f32.mrf.mxu1 }
 0x66a   : > { %v5925_v63 = vpop.eup %5079  ;;  %5089 = vpow2.f32 %v1537_v57  ;;  %v1502_v0 = vsub.f32 %v5883_v44, %v1452_v51  ;;  %v1504_v1 = vsub.f32 %v5886_v8, %v1452_v51  ;;  %v1456_v2 = vrot.slane %v1455_v60, 4 }
 0x66b   : > { %v5929_v38 = vpop.eup %5081  ;;  %v1586_v3 = vadd.f32 %v5917_v39, %v1585_v50  ;;  %5091 = vpow2.f32 %v1541_v58  ;;  %v1539_v40 = vmul.f32 1.442695, %v1498_v61  ;;  %v1543_v4 = vmul.f32 1.442695, %v1500_v62  ;;  %v5932_v47 = vpop.f32.mrf.mxu1 }
 0x66c   : > { %v5934_v56 = vpop.eup %5083  ;;  %5093 = vpow2.f32 %v1545_v59  ;;  %v1547_v54 = vmul.f32 1.442695, %v1502_v0  ;;  %v1457_v55 = vmax.f32 %v1455_v60, %v1456_v2  ;;  %v1464_v6 = vmax.f32 %v1463_v52, %v5923_v45 }
 0x66d   : > { %v1587_v5 = vadd.f32 %v5925_v63, %v1586_v3  ;;  %v1594_v44 = vadd.f32 %v5934_v56, %v5929_v38  ;;  %5095 = vpow2.f32 %v1549_v42  ;;  %v5940_v7 = vpop.f32.mrf.mxu1  ;;  %v5942_v8 = vpop.eup %5085  ;;  %v1551_v9 = vmul.f32 1.442695, %v1504_v1 }
 0x66e   : > { %5097 = vpow2.f32 %v1539_v40  ;;  %v1458_v10 = vrot.slane %v1457_v55, 2  ;;  %v1465_v13 = vrot.slane %v1464_v6, 4  ;;  %v5947_v17 = vpop.eup %5087 }
 0x66f   : > { %v1588_v11 = vrot.slane %v1587_v5, 4  ;;  %v1595_v12 = vadd.f32 %v5942_v8, %v1594_v44  ;;  %5099 = vpow2.f32 %v1543_v4  ;;  %v5945_v15 = vpop.f32.mrf.mxu1 }
 0x670   : > { %v1459_v18 = vmax.f32 %v1457_v55, %v1458_v10  ;;  %v1471_v20 = vmax.f32 %v5932_v47, %v5945_v15  ;;  %5101 = vpow2.f32 %v1547_v54  ;;  %v1466_v24 = vmax.f32 %v1464_v6, %v1465_v13 }
 0x671   : > { %v1589_v21 = vadd.f32 %v1588_v11, %v1587_v5  ;;  %v1596_v22 = vadd.f32 %v5947_v17, %v1595_v12  ;;  %v5952_v25 = vpop.f32.mrf.mxu1  ;;  %5103 = vpow2.f32 %v1551_v9 }
 0x672   : > { %v1460_v26 = vrot.slane %v1459_v18, 1  ;;  %v1467_v32 = vrot.slane %v1466_v24, 2  ;;  %v1480_v48 = vmax.f32 %v5940_v7, %v5952_v25 }
 0x673   : > { %v1590_v29 = vrot.slane %v1589_v21, 2  ;;  %v1597_v30 = vrot.slane %v1596_v22, 4  ;;  %v5954_v33 = vpop.f32.mrf.mxu1 }
 0x674   : > { %v1461_v34 = vmax.f32 %v1459_v18, %v1460_v26  ;;  %v1472_v35 = vmax.f32 %v1471_v20, %v5954_v33  ;;  %v1468_v46 = vmax.f32 %v1466_v24, %v1467_v32 }
 0x675   : > { %v1591_v37 = vadd.f32 %v1590_v29, %v1589_v21  ;;  %v1598_v43 = vadd.f32 %v1597_v30, %v1596_v22  ;;  %v5959_v51 = vpop.f32.mrf.mxu1 }
 0x676   : > { %v1505_v52 = vsub.f32 %v5889_v14, %v1461_v34  ;;  %v1507_v57 = vsub.f32 %v5893_v23, %v1461_v34  ;;  %v1509_v58 = vsub.f32 %v5899_v31, %v1461_v34  ;;  %v1511_v59 = vsub.f32 %v5912_v53, %v1461_v34 }
 0x677   : > { %v5965_v60 = vpop.eup %5089  ;;  %v1592_v50 = vrot.slane %v1591_v37, 1  ;;  %v1599_v42 = vrot.slane %v1598_v43, 2  ;;  %v1469_v61 = vrot.slane %v1468_v46, 1  ;;  %v5967_v62 = vpop.f32.mrf.mxu1  ;;  %v1481_v3 = vmax.f32 %v1480_v48, %v5959_v51 }
 0x678   : > { %v5969_v0 = vpop.eup %5091  ;;  %v1553_v1 = vmul.f32 1.442695, %v1505_v52  ;;  %v1557_v2 = vmul.f32 1.442695, %v1507_v57  ;;  %v1473_v14 = vmax.f32 %v1472_v35, %v5967_v62  ;;  %v1561_v4 = vmul.f32 1.442695, %v1509_v58 }
 0x679   : > { %v5973_v23 = vpop.eup %5093  ;;  %v1593_v31 = vadd.f32 %v1592_v50, %v1591_v37  ;;  %v1600_v40 = vadd.f32 %v1599_v42, %v1598_v43  ;;  %v1603_v53 = vadd.f32 %v5969_v0, %v5965_v60  ;;  %v5977_v54 = vpop.f32.mrf.mxu1  ;;  %v1565_v5 = vmul.f32 1.442695, %v1511_v59 }
 0x67a   : > { %v5979_v55 = vpop.eup %5095  ;;  %5105 = vpow2.f32 %v1553_v1  ;;  %v1470_v44 = vmax.f32 %v1468_v46, %v1469_v61  ;;  %v1482_v6 = vmax.f32 %v1481_v3, %v5977_v54  ;;  %v1474_v12 = vrot.slane %v1473_v14, 4 }
 0x67b   : > { %v5982_v9 = vpop.eup %5097  ;;  %5107 = vrcp.f32 %v1593_v31  ;;  %v1601_v10 = vrot.slane %v1600_v40, 1  ;;  %v1604_v11 = vadd.f32 %v5973_v23, %v1603_v53  ;;  %v5985_v13 = vpop.f32.mrf.mxu1 }
 0x67c   : > { %v5987_v18 = vpop.eup %5099  ;;  %5109 = vpow2.f32 %v1557_v2  ;;  %v1506_v20 = vsub.f32 %v5891_v19, %v1470_v44  ;;  %v1508_v21 = vsub.f32 %v5897_v28, %v1470_v44  ;;  %v1510_v22 = vsub.f32 %v5904_v36, %v1470_v44 }
 0x67d   : > { %v1602_v24 = vadd.f32 %v1601_v10, %v1600_v40  ;;  %v1605_v26 = vadd.f32 %v5979_v55, %v1604_v11  ;;  %v1612_v29 = vadd.f32 %v5987_v18, %v5982_v9  ;;  %v5995_v30 = vpop.f32.mrf.mxu1  ;;  %v5997_v32 = vpop.eup %5101  ;;  %5111 = vpow2.f32 %v1561_v4 }
 0x67e   : > { %v1512_v34 = vsub.f32 %v5923_v45, %v1470_v44  ;;  %v1555_v35 = vmul.f32 1.442695, %v1506_v20  ;;  %v1559_v37 = vmul.f32 1.442695, %v1508_v21  ;;  %5113 = vpow2.f32 %v1565_v5  ;;  %v6003_v46 = vpop.eup %5103 }
 0x67f   : > { %v1606_v19 = vrot.slane %v1605_v26, 4  ;;  %v1613_v28 = vadd.f32 %v5997_v32, %v1612_v29  ;;  %v1563_v36 = vmul.f32 1.442695, %v1510_v22  ;;  %v6001_v43 = vpop.f32.mrf.mxu1  ;;  %v1475_v48 = vmax.f32 %v1473_v14, %v1474_v12 }
 0x680   : > { %5115 = vpow2.f32 %v1555_v35  ;;  %v1483_v52 = vrot.slane %v1482_v6, 4  ;;  %v1567_v59 = vmul.f32 1.442695, %v1512_v34 }
 0x681   : > { %v1607_v57 = vadd.f32 %v1606_v19, %v1605_v26  ;;  %v1614_v58 = vadd.f32 %v6003_v46, %v1613_v28  ;;  %5117 = vpow2.f32 %v1559_v37  ;;  %v6006_v45 = vpop.f32.mrf.mxu1  ;;  %v1476_v50 = vrot.slane %v1475_v48, 2 }
 0x682   : > { %5119 = vrcp.f32 %v1602_v24  ;;  %v1484_v42 = vmax.f32 %v1482_v6, %v1483_v52 }
 0x683   : > { %v1608_v61 = vrot.slane %v1607_v57, 2  ;;  %v1615_v1 = vrot.slane %v1614_v58, 4  ;;  %5121 = vpow2.f32 %v1563_v36  ;;  %v6008_v2 = vpop.f32.mrf.mxu1  ;;  %v1477_v3 = vmax.f32 %v1475_v48, %v1476_v50 }
 0x684   : > { %v1485_v31 = vrot.slane %v1484_v42, 2  ;;  %5123 = vpow2.f32 %v1567_v59 }
 0x685   : > { %v1609_v40 = vadd.f32 %v1608_v61, %v1607_v57  ;;  %v1616_v14 = vadd.f32 %v1615_v1, %v1614_v58  ;;  %v6010_v53 = vpop.f32.mrf.mxu1  ;;  %v1478_v4 = vrot.slane %v1477_v3, 1 }
 0x686   : > { %v1486_v5 = vmax.f32 %v1484_v42, %v1485_v31 }
 0x687   : > { %v6012_v44 = vpop.eup %5105  ;;  %v1610_v10 = vrot.slane %v1609_v40, 1  ;;  %v1617_v11 = vrot.slane %v1616_v14, 2  ;;  %v6014_v12 = vpop.f32.mrf.mxu1  ;;  %v1479_v20 = vmax.f32 %v1477_v3, %v1478_v4 }
 0x688   : > { %v6016_v6 = vpop.eup %5107  ;;  %v1487_v21 = vrot.slane %v1486_v5, 1 }
 0x689   : > { %v6018_v22 = vpop.eup %5109  ;;  %v1611_v24 = vadd.f32 %v1610_v10, %v1609_v40  ;;  %v1618_v26 = vadd.f32 %v1617_v11, %v1616_v14  ;;  %v6020_v29 = vpop.f32.mrf.mxu1  ;;  %v6024_v34 = vmul.f32 %v6016_v6, %v5917_v39  ;;  %v6028_v35 = vmul.f32 %v6016_v6, %v5925_v63 }
 0x68a   : > { %v1621_v37 = vadd.f32 %v6018_v22, %v6012_v44  ;;  %v1513_v19 = vsub.f32 %v5932_v47, %v1479_v20  ;;  %v1515_v28 = vsub.f32 %v5945_v15, %v1479_v20  ;;  %v1517_v36 = vsub.f32 %v5954_v33, %v1479_v20  ;;  %v6035_v48 = vpop.eup %5111 }
 0x68b   : > { %8077 = vst [vmem:[#allocation5_spill] sm:$0xff] %v6024_v34  ;;  %8078 = vst [vmem:[#allocation6_spill] sm:$0xff] %v6028_v35  ;;  %5125 = vrcp.f32 %v1611_v24  ;;  %v1619_v52 = vrot.slane %v1618_v26, 1  ;;  %v1519_v39 = vsub.f32 %v5967_v62, %v1479_v20  ;;  %v1488_v57 = vmax.f32 %v1486_v5, %v1487_v21  ;;  %v6038_v58 = vpop.f32.mrf.mxu1  ;;  %v6040_v63 = vpop.eup %5113 }
 0x68c   : > { %v1622_v59 = vadd.f32 %v6035_v48, %v1621_v37  ;;  %v1569_v50 = vmul.f32 1.442695, %v1513_v19  ;;  %v1573_v42 = vmul.f32 1.442695, %v1515_v28  ;;  %v1577_v47 = vmul.f32 1.442695, %v1517_v36 }
 0x68d   : > { %v6043_v61 = vpop.eup %5115  ;;  %v1620_v15 = vadd.f32 %v1619_v52, %v1618_v26  ;;  %v1581_v33 = vmul.f32 1.442695, %v1519_v39  ;;  %v1514_v1 = vsub.f32 %v5940_v7, %v1488_v57  ;;  %v1516_v3 = vsub.f32 %v5952_v25, %v1488_v57  ;;  %v6047_v31 = vpop.f32.mrf.mxu1 }
 0x68e   : > { %v6049_v62 = vpop.eup %5117  ;;  %v1623_v40 = vadd.f32 %v6040_v63, %v1622_v59  ;;  %5127 = vpow2.f32 %v1569_v50  ;;  %v1518_v14 = vsub.f32 %v5959_v51, %v1488_v57  ;;  %v1520_v4 = vsub.f32 %v5977_v54, %v1488_v57 }
 0x68f   : > { %v5120_v5 = vpop.eup %5119  ;;  %5129 = vrcp.f32 %v1620_v15  ;;  %v1630_v10 = vadd.f32 %v6049_v62, %v6043_v61  ;;  %v1571_v11 = vmul.f32 1.442695, %v1514_v1  ;;  %v6056_v7 = vpop.f32.mrf.mxu1  ;;  %v1575_v21 = vmul.f32 1.442695, %v1516_v3 }
 0x690   : > { %v6058_v25 = vpop.eup %5121  ;;  %v1624_v20 = vrot.slane %v1623_v40, 4  ;;  %5131 = vpow2.f32 %v1573_v42  ;;  %v1579_v26 = vmul.f32 1.442695, %v1518_v14  ;;  %v1583_v19 = vmul.f32 1.442695, %v1520_v4 }
 0x691   : > { %v1631_v24 = vadd.f32 %v6058_v25, %v1630_v10  ;;  %5133 = vpow2.f32 %v1577_v47  ;;  %v6061_v51 = vpop.f32.mrf.mxu1  ;;  %v6063_v54 = vpop.eup %5123  ;;  %v6066_v28 = vmul.f32 %v5120_v5, %v5942_v8  ;;  %v6072_v39 = vmul.f32 %v5120_v5, %v5947_v17 }
 0x692   : > { %v1625_v37 = vadd.f32 %v1624_v20, %v1623_v40  ;;  %5135 = vpow2.f32 %v1581_v33  ;;  %v6077_v50 = vmul.f32 %v5120_v5, %v5929_v38  ;;  %v6080_v42 = vmul.f32 %v5120_v5, %v5934_v56 }
 0x693   : > { %8079 = vst [vmem:[#allocation7_spill] sm:$0xff] %v6066_v28  ;;  %v1632_v36 = vadd.f32 %v6063_v54, %v1631_v24  ;;  %5137 = vpow2.f32 %v1571_v11  ;;  %v6069_v52 = vpop.f32.mrf.mxu1  ;;  %8080 = vst [vmem:[#allocation8_spill] sm:$0xff] %v6072_v39  ;;  %v6088_v17 = vmul.f32 %v6016_v6, %v5909_v49  ;;  %v6096_v56 = vmul.f32 %v6016_v6, %v5914_v41 }
 0x694   : > { %v1626_v59 = vrot.slane %v1625_v37, 2  ;;  %5139 = vpow2.f32 %v1575_v21  ;;  %8081 = vst [vmem:[#allocation9_spill] sm:$0xff] %v6077_v50  ;;  %8082 = vst [vmem:[#allocation10_spill] sm:$0xff] %v6080_v42 }
 0x695   : > { %v1633_v8 = vrot.slane %v1632_v36, 4  ;;  %v6082_v47 = vpop.f32.mrf.mxu1  ;;  %8083 = vst [vmem:[#allocation11_spill] sm:$0xff] %v6088_v17  ;;  %5141 = vpow2.f32 %v1579_v26  ;;  %8084 = vst [vmem:[#allocation12_spill] sm:$0xff] %v6096_v56 }
 0x696   : > { %v1627_v33 = vadd.f32 %v1626_v59, %v1625_v37  ;;  %5143 = vpow2.f32 %v1583_v19 }
 0x697   : > { %v1634_v38 = vadd.f32 %v1633_v8, %v1632_v36  ;;  %v6092_v3 = vpop.f32.mrf.mxu1 }
 0x698   : > { %v5126_v40 = vpop.eup %5125  ;;  %v1628_v14 = vrot.slane %v1627_v33, 1 }
 0x699   : > { %v1635_v4 = vrot.slane %v1634_v38, 2  ;;  %v6098_v5 = vpop.f32.mrf.mxu1  ;;  %v6101_v49 = vmul.f32 %v5126_v40, %v5973_v23  ;;  %v6104_v10 = vmul.f32 %v5126_v40, %v5979_v55  ;;  %v6107_v11 = vmul.f32 %v5126_v40, %v5965_v60 }
 0x69a   : > { %v1629_v20 = vadd.f32 %v1628_v14, %v1627_v33  ;;  %v6110_v21 = vmul.f32 %v5126_v40, %v5969_v0 }
 0x69b   : > { %8085 = vst [vmem:[#allocation13_spill] sm:$0xff] %v6101_v49  ;;  %8086 = vst [vmem:[#allocation14_spill] sm:$0xff] %v6104_v10  ;;  %v6114_v6 = vpop.eup %5127  ;;  %v1636_v24 = vadd.f32 %v1635_v4, %v1634_v38  ;;  %v6116_v26 = vpop.f32.mrf.mxu1 }
 0x69c   : > { %8087 = vst [vmem:[#allocation15_spill] sm:$0xff] %v6107_v11  ;;  %8088 = vst [vmem:[#allocation16_spill] sm:$0xff] %v6110_v21  ;;  %v5130_v55 = vpop.eup %5129  ;;  %5145 = vrcp.f32 %v1629_v20 }
 0x69d   : > { %v6122_v37 = vpop.eup %5131  ;;  %v1637_v0 = vrot.slane %v1636_v24, 1  ;;  %v6124_v19 = vpop.f32.mrf.mxu1  ;;  %v6127_v36 = vmul.f32 %v5130_v55, %v5997_v32  ;;  %v6130_v59 = vmul.f32 %v5130_v55, %v6003_v46  ;;  %v6133_v8 = vmul.f32 %v5130_v55, %v5982_v9 }
 0x69e   : > { %v6135_v33 = vpop.eup %5133  ;;  %v1639_v38 = vadd.f32 %v6122_v37, %v6114_v6  ;;  %v6140_v40 = vmul.f32 %v5130_v55, %v5987_v18 }
 0x69f   : > { %8089 = vst [vmem:[#allocation17_spill] sm:$0xff] %v6127_v36  ;;  %8090 = vst [vmem:[#allocation18_spill] sm:$0xff] %v6130_v59  ;;  %v6142_v14 = vpop.eup %5135  ;;  %v1638_v4 = vadd.f32 %v1637_v0, %v1636_v24  ;;  %v6144_v20 = vpop.f32.mrf.mxu1 }
 0x6a0   : > { %8091 = vst [vmem:[#allocation19_spill] sm:$0xff] %v6133_v8  ;;  %8092 = vst [vmem:[#allocation20_spill] sm:$0xff] %v6140_v40  ;;  %v6148_v46 = vpop.eup %5137  ;;  %v1640_v9 = vadd.f32 %v6135_v33, %v1639_v38 }
 0x6a1   : > { %v6153_v1 = vpop.eup %5139  ;;  %5147 = vrcp.f32 %v1638_v4  ;;  %v6155_v18 = vpop.f32.mrf.mxu1 }
 0x6a2   : > { %v1641_v55 = vadd.f32 %v6142_v14, %v1640_v9  ;;  %v1648_v24 = vadd.f32 %v6153_v1, %v6148_v46  ;;  %v6160_v0 = vpop.eup %5141 }
 0x6a3   : > { %v6162_v57 = vpop.f32.mrf.mxu1  ;;  %v5144_v60 = vpop.eup %5143 }
 0x6a4   : > { %v1642_v15 = vrot.slane %v1641_v55, 4  ;;  %v1649_v38 = vadd.f32 %v6160_v0, %v1648_v24 }
 0x6a5   : > { %v6165_v23 = vpop.f32.mrf.mxu1 }
 0x6a6   : > { %v1643_v41 = vadd.f32 %v1642_v15, %v1641_v55  ;;  %v1650_v32 = vadd.f32 %v5144_v60, %v1649_v38 }
 0x6a7   : > { %v6167_v4 = vpop.f32.mrf.mxu1 }
 0x6a8   : > { %v1644_v16 = vrot.slane %v1643_v41, 2  ;;  %v1651_v27 = vrot.slane %v1650_v32, 4 }
 0x6a9   : > { %v5146_v9 = vpop.eup %5145  ;;  %v6169_v17 = vpop.f32.mrf.mxu1 }
 0x6aa   : > { %v1645_v56 = vadd.f32 %v1644_v16, %v1643_v41  ;;  %v1652_v50 = vadd.f32 %v1651_v27, %v1650_v32  ;;  %v6172_v42 = vmul.f32 %v5146_v9, %v6035_v48  ;;  %v6177_v24 = vmul.f32 %v5146_v9, %v6040_v63 }
 0x6ab   : > { %v6174_v34 = vpop.f32.mrf.mxu1  ;;  %v6180_v15 = vmul.f32 %v5146_v9, %v6012_v44  ;;  %v6183_v55 = vmul.f32 %v5146_v9, %v6018_v22 }
 0x6ac   : > { %v1646_v38 = vrot.slane %v1645_v56, 1  ;;  %v1653_v35 = vrot.slane %v1652_v50, 2 }
 0x6ad   : > { %8093 = vst [vmem:[#allocation21_spill] sm:$0xff] %v6180_v15  ;;  %8094 = vst [vmem:[#allocation22_spill] sm:$0xff] %v6183_v55  ;;  %v6185_v28 = vpop.f32.mrf.mxu1 }
 0x6ae   : > { %v5148_v48 = vpop.eup %5147  ;;  %v1647_v41 = vadd.f32 %v1646_v38, %v1645_v56  ;;  %v1654_v63 = vadd.f32 %v1653_v35, %v1652_v50 }
 0x6af   : > { %v6191_v32 = vpop.f32.mrf.mxu1  ;;  %v6194_v44 = vmul.f32 %v5148_v48, %v6058_v25  ;;  %v6197_v22 = vmul.f32 %v5148_v48, %v6063_v54  ;;  %v6200_v9 = vmul.f32 %v5148_v48, %v6043_v61  ;;  %v6203_v39 = vmul.f32 %v5148_v48, %v6049_v62 }
 0x6b0   : > { %5149 = vrcp.f32 %v1647_v41  ;;  %v1655_v16 = vrot.slane %v1654_v63, 1 }
 0x6b1   : > { %8095 = vst [vmem:[#allocation23_spill] sm:$0xff] %v6200_v9  ;;  %v6205_v27 = vpop.f32.mrf.mxu1 }
 0x6b2   : > { %v1656_v50 = vadd.f32 %v1655_v16, %v1654_v63  ;;  %v1736_v48 = vmax.f32 %v6191_v32, %v6205_v27  ;;  %v1730_v63 = vmax.f32 %v6167_v4, %v6169_v17 }
 0x6b3   : > { %v6211_v56 = vpop.f32.mrf.mxu1 }
 0x6b4   : > { %5151 = vrcp.f32 %v1656_v50  ;;  %v1733_v50 = vmax.f32 %v6174_v34, %v6185_v28 }
 0x6b5   : > { %v6213_v54 = vpop.f32.mrf.mxu1 }
 0x6b6   : > { %v1739_v61 = vmax.f32 %v6211_v56, %v6213_v54 }
 0x6b7   : > { %v6217_v62 = vpop.f32.mrf.mxu1 }
 0x6b8   : > { %1740 = vmax.xlane.f32.xlu1 %v1739_v61 }
 0x6b9   : > { %v6219_v38 = vpop.f32.mrf.mxu1 }
 0x6ba   : > { %v1742_v41 = vmax.f32 %v6217_v62, %v6219_v38 }
 0x6bc   : > { %1737 = vmax.xlane.f32.xlu1 %v1736_v48  ;;  %1743 = vmax.xlane.f32.xlu0 %v1742_v41 }
 0x6bd   : > { %v5150_v16 = vpop.eup %5149 }
 0x6be   : > { %v6230_v25 = vmul.f32 %v5150_v16, %v6135_v33  ;;  %v6233_v61 = vmul.f32 %v5150_v16, %v6142_v14  ;;  %v6236_v35 = vmul.f32 %v5150_v16, %v6114_v6  ;;  %v6239_v11 = vmul.f32 %v5150_v16, %v6122_v37 }
 0x6bf   : > { %v1724_v33 = vmax.f32 %v6144_v20, %v6155_v18  ;;  %v1727_v14 = vmax.f32 %v6162_v57, %v6165_v23 }
 0x6c0   : > { %1731 = vmax.xlane.f32.xlu1 %v1730_v63  ;;  %1734 = vmax.xlane.f32.xlu0 %v1733_v50 }
 0x6c1   : > { %v5152_v21 = vpop.eup %5151 }
 0x6c2   : > { %v6250_v6 = vmul.f32 %v5152_v21, %v6160_v0  ;;  %v6252_v37 = vmul.f32 %v5152_v21, %v5144_v60  ;;  %v6255_v16 = vmul.f32 %v5152_v21, %v6148_v46  ;;  %v6258_v63 = vmul.f32 %v5152_v21, %v6153_v1 }
 0x6c3   : > { %v1718_v0 = vmax.f32 %v6092_v3, %v6098_v5  ;;  %v1721_v60 = vmax.f32 %v6116_v26, %v6124_v19  ;;  %v1712_v1 = vmax.f32 %v6056_v7, %v6061_v51  ;;  %v1715_v21 = vmax.f32 %v6069_v52, %v6082_v47 }
 0x6c4   : > { %1725 = vmax.xlane.f32.xlu1 %v1724_v33  ;;  %1728 = vmax.xlane.f32.xlu0 %v1727_v14  ;;  %v1706_v46 = vmax.f32 %v6014_v12, %v6020_v29  ;;  %v1709_v33 = vmax.f32 %v6038_v58, %v6047_v31  ;;  %v1700_v14 = vmax.f32 %v6001_v43, %v6006_v45 }
 0x6c8   : > { %1719 = vmax.xlane.f32.xlu1 %v1718_v0  ;;  %1722 = vmax.xlane.f32.xlu0 %v1721_v60  ;;  %v1703_v0 = vmax.f32 %v6008_v2, %v6010_v53  ;;  %v1697_v60 = vmax.f32 %v5985_v13, %v5995_v30 }
 0x6cc   : > { %1713 = vmax.xlane.f32.xlu1 %v1712_v1  ;;  %1716 = vmax.xlane.f32.xlu0 %v1715_v21  ;;  %v5029_v1 = vld [vmem:[%s8000_s5 + $0x80] sm:$0xff]   ;;  %v8096_v21 = vmov 0  }
 0x6cd   : > { %4740 = vmatmul.mubr.msk.bf16.gmra.mxu1 %vm425_vm1, %v5029_v1  ;;  %v5035_v1 = vld [vmem:[%s8000_s5 + $0xb0] sm:$0xff]  }
 0x6ce   : > { %1346 = vmatprep.mubr.bf16.mxu1 %v8096_v21 }
 0x6d0   : > { %1707 = vmax.xlane.f32.xlu1 %v1706_v46  ;;  %1710 = vmax.xlane.f32.xlu0 %v1709_v33  ;;  %v5030_v46 = vld [vmem:[%s8000_s5 + $0x88] sm:$0xff]   ;;  %v5031_v33 = vld [vmem:[%s8000_s5 + $0x90] sm:$0xff]  }
 0x6d4   : > { %1701 = vmax.xlane.f32.xlu1 %v1700_v14  ;;  %1704 = vmax.xlane.f32.xlu0 %v1703_v0  ;;  %v5032_v14 = vld [vmem:[%s8000_s5 + $0x98] sm:$0xff]   ;;  %v5033_v0 = vld [vmem:[%s8000_s5 + $0xa0] sm:$0xff]  }
 0x6d5   : > { %4741 = vmatmul.mubr.msk.bf16.gmra.mxu1 %vm425_vm1, %v5030_v46  ;;  %v5036_v46 = vld [vmem:[%s8000_s5 + $0xb8] sm:$0xff]  }
 0x6d6   : > { %1356 = vmatprep.mubr.bf16.mxu1 %v8096_v21 }
 0x6d8   : > { %1698 = vmax.xlane.f32.xlu0 %v1697_v60  ;;  %v5034_v60 = vld [vmem:[%s8000_s5 + $0xa8] sm:$0xff]  }
 0x6dd   : > { %4742 = vmatmul.mubr.msk.bf16.gmra.mxu1 %vm425_vm1, %v5031_v33  ;;  %v8097_v33 = vmov 0.0  }
 0x6de   : > { %1366 = vmatprep.mubr.bf16.mxu1 %v8096_v21 }
 0x6e5   : > { %4743 = vmatmul.mubr.msk.bf16.gmra.mxu1 %vm425_vm1, %v5032_v14 }
 0x6e6   : > { %1376 = vmatprep.mubr.bf16.mxu1 %v8096_v21 }
 0x6ed   : > { %4744 = vmatmul.mubr.msk.bf16.gmra.mxu1 %vm425_vm1, %v5033_v0 }
 0x6ee   : > { %1386 = vmatprep.mubr.bf16.mxu1 %v8096_v21 }
 0x6f5   : > { %4745 = vmatmul.mubr.msk.bf16.gmra.mxu1 %vm425_vm1, %v5034_v60 }
 0x6f6   : > { %1396 = vmatprep.mubr.bf16.mxu1 %v8096_v21 }
 0x6fd   : > { %4746 = vmatmul.mubr.msk.bf16.gmra.mxu1 %vm425_vm1, %v5035_v1 }
 0x6fe   : > { %1406 = vmatprep.mubr.bf16.mxu1 %v8096_v21 }
 0x705   : > { %4747 = vmatmul.mubr.msk.bf16.gmra.mxu1 %vm425_vm1, %v5036_v46 }
 0x706   : > { %4929 = vmatprep.mubr.msk.f32.mxu1 %vm5500_vm0, %v8097_v33 }
 0x741   : > { %v1741_v14 = vpop.xlane.xlu1 %1740 }
 0x742   : > { %v1773_v0 = vsub.f32 %v6211_v56, %v1741_v14  ;;  %v1774_v60 = vsub.f32 %v6213_v54, %v1741_v14 }
 0x744   : > { %v1833_v41 = vmul.f32 1.442695, %v1773_v0  ;;  %v1835_v48 = vmul.f32 1.442695, %v1774_v60 }
 0x745   : > { %v1738_v50 = vpop.xlane.xlu1 %1737  ;;  %v1744_v1 = vpop.xlane.xlu0 %1743 }
 0x746   : > { %5153 = vpow2.f32 %v1833_v41  ;;  %v1771_v21 = vsub.f32 %v6191_v32, %v1738_v50  ;;  %v1775_v8 = vsub.f32 %v6217_v62, %v1744_v1  ;;  %v1772_v46 = vsub.f32 %v6205_v27, %v1738_v50 }
 0x747   : > { %5155 = vpow2.f32 %v1835_v48  ;;  %v1776_v40 = vsub.f32 %v6219_v38, %v1744_v1 }
 0x748   : > { %v1837_v49 = vmul.f32 1.442695, %v1775_v8  ;;  %v1829_v59 = vmul.f32 1.442695, %v1771_v21  ;;  %v1831_v0 = vmul.f32 1.442695, %v1772_v46 }
 0x749   : > { %v1839_v10 = vmul.f32 1.442695, %v1776_v40  ;;  %v1732_v36 = vpop.xlane.xlu1 %1731  ;;  %v1735_v56 = vpop.xlane.xlu0 %1734 }
 0x74a   : > { %v1767_v54 = vsub.f32 %v6167_v4, %v1732_v36  ;;  %v1769_v14 = vsub.f32 %v6174_v34, %v1735_v56  ;;  %v1768_v41 = vsub.f32 %v6169_v17, %v1732_v36  ;;  %v1770_v32 = vsub.f32 %v6185_v28, %v1735_v56 }
 0x74b   : > { %5157 = vpow2.f32 %v1837_v49 }
 0x74c   : > { %v1825_v62 = vmul.f32 1.442695, %v1769_v14  ;;  %5159 = vpow2.f32 %v1839_v10  ;;  %v1827_v27 = vmul.f32 1.442695, %v1770_v32  ;;  %v1821_v8 = vmul.f32 1.442695, %v1767_v54 }
 0x74d   : > { %v1726_v48 = vpop.xlane.xlu1 %1725  ;;  %v1729_v38 = vpop.xlane.xlu0 %1728  ;;  %5161 = vpow2.f32 %v1829_v59  ;;  %v1823_v4 = vmul.f32 1.442695, %v1768_v41 }
 0x74e   : > { %v1763_v40 = vsub.f32 %v6144_v20, %v1726_v48  ;;  %v1765_v50 = vsub.f32 %v6162_v57, %v1729_v38  ;;  %5163 = vpow2.f32 %v1831_v0  ;;  %v1764_v34 = vsub.f32 %v6155_v18, %v1726_v48 }
 0x74f   : > { %v1766_v17 = vsub.f32 %v6165_v23, %v1729_v38  ;;  %5165 = vpow2.f32 %v1825_v62 }
 0x750   : > { %v1817_v28 = vmul.f32 1.442695, %v1765_v50  ;;  %5167 = vpow2.f32 %v1827_v27  ;;  %v1813_v21 = vmul.f32 1.442695, %v1763_v40  ;;  %v1815_v57 = vmul.f32 1.442695, %v1764_v34 }
 0x751   : > { %v1819_v49 = vmul.f32 1.442695, %v1766_v17  ;;  %v1720_v10 = vpop.xlane.xlu1 %1719  ;;  %v1723_v36 = vpop.xlane.xlu0 %1722  ;;  %5169 = vpow2.f32 %v1821_v8 }
 0x752   : > { %v1759_v59 = vsub.f32 %v6092_v3, %v1720_v10  ;;  %v1761_v20 = vsub.f32 %v6116_v26, %v1723_v36  ;;  %5171 = vpow2.f32 %v1823_v4  ;;  %v1760_v18 = vsub.f32 %v6098_v5, %v1720_v10 }
 0x753   : > { %v6339_v60 = vpop.eup %5153  ;;  %v1762_v23 = vsub.f32 %v6124_v19, %v1723_v36  ;;  %5173 = vpow2.f32 %v1817_v28 }
 0x754   : > { %v6343_v1 = vpop.eup %5155  ;;  %v1809_v46 = vmul.f32 1.442695, %v1761_v20  ;;  %5175 = vpow2.f32 %v1819_v49  ;;  %v1805_v26 = vmul.f32 1.442695, %v1759_v59  ;;  %v1807_v41 = vmul.f32 1.442695, %v1760_v18 }
 0x755   : > { %v1811_v56 = vmul.f32 1.442695, %v1762_v23  ;;  %v1714_v54 = vpop.xlane.xlu1 %1713  ;;  %v1717_v14 = vpop.xlane.xlu0 %1716  ;;  %v1883_v3 = vadd.f32 %v6343_v1, %v6339_v60  ;;  %5177 = vpow2.f32 %v1813_v21 }
 0x756   : > { %v1757_v0 = vsub.f32 %v6069_v52, %v1717_v14  ;;  %5179 = vpow2.f32 %v1815_v57  ;;  %v1758_v5 = vsub.f32 %v6082_v47, %v1717_v14  ;;  %v1755_v38 = vsub.f32 %v6056_v7, %v1714_v54 }
 0x757   : > { %1884 = vadd.xlane.f32.xlu0 %v1883_v3  ;;  %5181 = vpow2.f32 %v1809_v46  ;;  %v1756_v47 = vsub.f32 %v6061_v51, %v1714_v54 }
 0x758   : > { %v1801_v19 = vmul.f32 1.442695, %v1757_v0  ;;  %v6349_v32 = vpop.eup %5157  ;;  %5183 = vpow2.f32 %v1811_v56  ;;  %v1803_v62 = vmul.f32 1.442695, %v1758_v5  ;;  %v1797_v10 = vmul.f32 1.442695, %v1755_v38 }
 0x759   : > { %v1711_v27 = vpop.xlane.xlu0 %1710  ;;  %v6351_v48 = vpop.eup %5159  ;;  %5185 = vpow2.f32 %v1805_v26  ;;  %v1799_v36 = vmul.f32 1.442695, %v1756_v47  ;;  %v6399_v38 = vld [vmem:[%s5617_s14 + $0x38] sm:$0xff] }
 0x75a   : > { %v1753_v8 = vsub.f32 %v6038_v58, %v1711_v27  ;;  %v6355_v52 = vpop.eup %5161  ;;  %5187 = vpow2.f32 %v1807_v41  ;;  %v1708_v40 = vpop.xlane.xlu1 %1707  ;;  %v1754_v50 = vsub.f32 %v6047_v31, %v1711_v27  ;;  %v1886_v4 = vadd.f32 %v6351_v48, %v6349_v32  ;;  %8098 = vst [vmem:[#allocation24_spill] sm:$0xff] %v6399_v38 }
 0x75b   : > { %v6361_v34 = vpop.eup %5163  ;;  %5189 = vpow2.f32 %v1801_v19  ;;  %v1751_v20 = vsub.f32 %v6014_v12, %v1708_v40  ;;  %v1752_v18 = vsub.f32 %v6020_v29, %v1708_v40 }
 0x75c   : > { %v1793_v17 = vmul.f32 1.442695, %v1753_v8  ;;  %v6363_v28 = vpop.eup %5165  ;;  %5191 = vpow2.f32 %v1803_v62  ;;  %v1795_v7 = vmul.f32 1.442695, %v1754_v50  ;;  %1887 = vadd.xlane.f32.xlu1 %v1886_v4  ;;  %v1880_v31 = vadd.f32 %v6361_v34, %v6355_v52 }
 0x75d   : > { %v1705_v58 = vpop.xlane.xlu0 %1704  ;;  %v6365_v49 = vpop.eup %5167  ;;  %v1789_v0 = vmul.f32 1.442695, %v1751_v20 }
 0x75e   : > { %v6367_v51 = vpop.eup %5169  ;;  %v1877_v21 = vadd.f32 %v6365_v49, %v6363_v28  ;;  %5193 = vpow2.f32 %v1793_v17  ;;  %v1702_v23 = vpop.xlane.xlu1 %1701  ;;  %v1749_v56 = vsub.f32 %v6008_v2, %v1705_v58  ;;  %v1750_v12 = vsub.f32 %v6010_v53, %v1705_v58 }
 0x75f   : > { %v6373_v59 = vpop.eup %5171  ;;  %5195 = vpow2.f32 %v1795_v7  ;;  %v1747_v41 = vsub.f32 %v6001_v43, %v1702_v23  ;;  %v1791_v2 = vmul.f32 1.442695, %v1752_v18  ;;  %v1748_v19 = vsub.f32 %v6006_v45, %v1702_v23 }
 0x760   : > { %v6376_v57 = vpop.eup %5173  ;;  %1881 = vadd.xlane.f32.xlu1 %v1880_v31  ;;  %1878 = vadd.xlane.f32.xlu0 %v1877_v21  ;;  %5197 = vpow2.f32 %v1797_v10  ;;  %v1874_v3 = vadd.f32 %v6373_v59, %v6367_v51  ;;  %v1785_v62 = vmul.f32 1.442695, %v1749_v56  ;;  %v1787_v47 = vmul.f32 1.442695, %v1750_v12 }
 0x761   : > { %v6379_v46 = vpop.eup %5175  ;;  %5199 = vpow2.f32 %v1799_v36  ;;  %v1699_v14 = vpop.xlane.xlu0 %1698  ;;  %v1781_v4 = vmul.f32 1.442695, %v1747_v41  ;;  %v8035_v7 = vunpack.c.l.bf16 %v6399_v38  ;;  %v6417_v36 = vld [vmem:[%s5617_s14 + $0x30] sm:$0xff] }
 0x762   : > { %v6382_v54 = vpop.eup %5177  ;;  %v1871_v29 = vadd.f32 %v6379_v46, %v6376_v57  ;;  %v1745_v27 = vsub.f32 %v5985_v13, %v1699_v14  ;;  %v1746_v40 = vsub.f32 %v5995_v30, %v1699_v14  ;;  %5201 = vpow2.f32 %v1789_v0  ;;  %8099 = vst [vmem:[#allocation25_spill] sm:$0xff] %v6417_v36  ;;  %v6432_v14 = vld [vmem:[%s5617_s14 + $0x28] sm:$0xff] }
 0x763   : > { %v6389_v26 = vpop.eup %5179  ;;  %5203 = vpow2.f32 %v1791_v2  ;;  %v1783_v13 = vmul.f32 1.442695, %v1748_v19  ;;  %v8034_v30 = vunpack.c.h.bf16 %v6399_v38  ;;  %v8033_v56 = vunpack.c.l.bf16 %v6417_v36  ;;  %8100 = vst [vmem:[#allocation26_spill] sm:$0xff] %v6432_v14 }
 0x764   : > { %v6392_v5 = vpop.eup %5181  ;;  %1875 = vadd.xlane.f32.xlu1 %v1874_v3  ;;  %1872 = vadd.xlane.f32.xlu0 %v1871_v29  ;;  %v1868_v43 = vadd.f32 %v6389_v26, %v6382_v54  ;;  %5205 = vpow2.f32 %v1785_v62  ;;  %v1777_v10 = vmul.f32 1.442695, %v1745_v27  ;;  %v1779_v31 = vmul.f32 1.442695, %v1746_v40  ;;  %v6437_v29 = vld [vmem:[%s5617_s14 + $0x20] sm:$0xff]  ;;  %s4620_s14 = sshll.u32 %s7846_s29, 4  ;;  %s7947_s14 = int_to_ptr.vmem [resolvable:$true] %s4620_s14 }
 0x765   : > { %v6395_v53 = vpop.eup %5183  ;;  %5207 = vpow2.f32 %v1787_v47  ;;  %v2521_v23 = vadd.f32 %v8034_v30, %v8035_v7  ;;  %v8032_v12 = vunpack.c.h.bf16 %v6417_v36  ;;  %8101 = vst [vmem:[#allocation27_spill] sm:$0xff] %v6437_v29  ;;  %v8029_v19 = vunpack.c.l.bf16 %v6432_v14  ;;  %s5437_s12 = scalar_lea.vmem %s7947_s14, 1024 }
 0x766   : > { %v6401_v8 = vpop.eup %5185  ;;  %v1865_v45 = vadd.f32 %v6395_v53, %v6392_v5  ;;  %5209 = vpow2.f32 %v1781_v4  ;;  %v8028_v27 = vunpack.c.h.bf16 %v6432_v14  ;;  %v8031_v47 = vunpack.c.l.bf16 %v6437_v29  ;;  %p5438_p11 = scmp.ne.s32.totalorder %s7947_s14, %s5437_s12 }
 0x767   : > { %v6408_v50 = vpop.eup %5187  ;;  %5211 = vpow2.f32 %v1783_v13  ;;  %v2518_v62 = vadd.f32 %v8032_v12, %v8033_v56  ;;  %v8030_v40 = vunpack.c.h.bf16 %v6437_v29 }
 0x768   : > { %v6410_v17 = vpop.eup %5189  ;;  %1869 = vadd.xlane.f32.xlu1 %v1868_v43  ;;  %1866 = vadd.xlane.f32.xlu0 %v1865_v45  ;;  %v1862_v21 = vadd.f32 %v6408_v50, %v6401_v8  ;;  %5213 = vpow2.f32 %v1777_v10  ;;  %v2515_v4 = vadd.f32 %v8028_v27, %v8029_v19  ;;  %p5439_p12 = pnand %p5438_p11, %p5603_p5 }
 0x769   : > { %v6414_v58 = vpop.eup %5191  ;;  %5215 = vpow2.f32 %v1779_v31  ;;  %v2512_v13 = vadd.f32 %v8030_v40, %v8031_v47 }
 0x76a   : > { %v1859_v20 = vadd.f32 %v6414_v58, %v6410_v17  ;;  %p5440_p13 = pneg %p5439_p12 }
 0x76b   : > { %v6423_v18 = vpop.eup %5193 }
 0x76c   : > { %1863 = vadd.xlane.f32.xlu1 %v1862_v21  ;;  %1860 = vadd.xlane.f32.xlu0 %v1859_v20  ;;  %v6434_v3 = vpop.eup %5195 }
 0x76d   : > { %v6439_v0 = vpop.eup %5197  ;;  %v1853_v41 = vadd.f32 %v6434_v3, %v6423_v18 }
 0x76e   : > { %v6443_v2 = vpop.eup %5199 }
 0x76f   : > { %v1856_v43 = vadd.f32 %v6443_v2, %v6439_v0  ;;  %v6455_v45 = vpop.eup %5201 }
 0x770   : > { %2522 = vadd.xlane.f32.xlu0 %v2521_v23  ;;  %1854 = vadd.xlane.f32.xlu1 %v1853_v41  ;;  %v6465_v10 = vpop.eup %5203 }
 0x771   : > { %v6467_v31 = vpop.eup %5205 }
 0x772   : > { %v6469_v21 = vpop.eup %5207 }
 0x773   : > { %v6471_v20 = vpop.eup %5209 }
 0x774   : > { %1857 = vadd.xlane.f32.xlu0 %v1856_v43  ;;  %2519 = vadd.xlane.f32.xlu1 %v2518_v62  ;;  %v6473_v23 = vpop.eup %5211  ;;  %v1850_v62 = vadd.f32 %v6465_v10, %v6455_v45  ;;  %v1847_v43 = vadd.f32 %v6469_v21, %v6467_v31 }
 0x775   : > { %v6475_v41 = vpop.eup %5213  ;;  %v1844_v19 = vadd.f32 %v6473_v23, %v6471_v20 }
 0x776   : > { %v6481_v27 = vpop.eup %5215 }
 0x778   : > { %2516 = vadd.xlane.f32.xlu0 %v2515_v4  ;;  %2513 = vadd.xlane.f32.xlu1 %v2512_v13  ;;  %v1841_v4 = vadd.f32 %v6481_v27, %v6475_v41 }
 0x77c   : > { %1851 = vadd.xlane.f32.xlu1 %v1850_v62  ;;  %1848 = vadd.xlane.f32.xlu0 %v1847_v43 }
 0x780   : > { %1845 = vadd.xlane.f32.xlu1 %v1844_v19  ;;  %1842 = vadd.xlane.f32.xlu0 %v1841_v4 }
 0x78d   : > { %v6487_v13 = vpop.f32.mrf.mxu1 }
 0x78f   : > { %v1340_v40 = vpop.f32.mrf.mxu1 }
 0x791   : > { %v6489_v47 = vpop.f32.mrf.mxu1 }
 0x793   : > { %v1344_v56 = vpop.f32.mrf.mxu1 }
 0x794   : > { %v1938_v30 = vpack.c.bf16 %v1344_v56, %v1340_v40 }
 0x796   : > { %2001 = vmatprep.mubr.bf16.mxu0 %v1938_v30 }
 0x7e0   : > { %v1885_v62 = vpop.xlane.xlu0 %1884 }
 0x7e1   : > { %5217 = vrcp.f32 %v1885_v62 }
 0x7e5   : > { %v1888_v43 = vpop.xlane.xlu1 %1887 }
 0x7e6   : > { %5219 = vrcp.f32 %v1888_v43 }
 0x7e9   : > { %v1882_v7 = vpop.xlane.xlu1 %1881  ;;  %v1879_v14 = vpop.xlane.xlu0 %1878 }
 0x7ea   : > { %5221 = vrcp.f32 %v1882_v7 }
 0x7eb   : > { %5223 = vrcp.f32 %v1879_v14 }
 0x7ed   : > { %v1876_v19 = vpop.xlane.xlu1 %1875  ;;  %v1873_v4 = vpop.xlane.xlu0 %1872 }
 0x7ee   : > { %5225 = vrcp.f32 %v1876_v19  ;;  %v5218_v29 = vpop.eup %5217  ;;  %v6497_v19 = vpop.f32.mrf.mxu1 }
 0x7ef   : > { %5227 = vrcp.f32 %v1873_v4  ;;  %v1934_v56 = vmul.f32 %v5218_v29, %v6343_v1  ;;  %v1933_v40 = vmul.f32 %v5218_v29, %v6339_v60 }
 0x7f0   : > { %v6501_v60 = vpop.f32.mrf.mxu1 }
 0x7f1   : > { %v1870_v36 = vpop.xlane.xlu1 %1869  ;;  %v1867_v38 = vpop.xlane.xlu0 %1866 }
 0x7f2   : > { %5229 = vrcp.f32 %v1870_v36 }
 0x7f3   : > { %v5220_v15 = vpop.eup %5219  ;;  %5231 = vrcp.f32 %v1867_v38 }
 0x7f4   : > { %v1936_v30 = vmul.f32 %v5220_v15, %v6351_v48  ;;  %v1935_v62 = vmul.f32 %v5220_v15, %v6349_v32 }
 0x7f5   : > { %v1864_v7 = vpop.xlane.xlu1 %1863  ;;  %v1861_v14 = vpop.xlane.xlu0 %1860 }
 0x7f6   : > { %v1968_v43 = vpack.c.bf16 %v1936_v30, %v1934_v56  ;;  %v1967_v12 = vpack.c.bf16 %v1935_v62, %v1933_v40  ;;  %5233 = vrcp.f32 %v1864_v7 }
 0x7f7   : > { %v5222_v4 = vpop.eup %5221  ;;  %5235 = vrcp.f32 %v1861_v14 }
 0x7f8   : > { %v5224_v55 = vpop.eup %5223  ;;  %1969 = vmatprep.subr.bf16.mxu0 %v1968_v43  ;;  %v1932_v36 = vmul.f32 %v5222_v4, %v6361_v34  ;;  %v1931_v56 = vmul.f32 %v5222_v4, %v6355_v52  ;;  %v6508_v43 = vpop.f32.mrf.mxu1 }
 0x7f9   : > { %v1855_v9 = vpop.xlane.xlu1 %1854  ;;  %1970 = vmatpush1.bf16.xpose.msra.mxu0 %v1967_v12  ;;  %v2523_v1 = vpop.xlane.xlu0 %2522  ;;  %v1930_v48 = vmul.f32 %v5224_v55, %v6365_v49  ;;  %v1929_v29 = vmul.f32 %v5224_v55, %v6363_v28 }
 0x7fa   : > { %v2527_v38 = vmul.f32 0.00390625, %v2523_v1  ;;  %v6511_v1 = vpop.f32.mrf.mxu1 }
 0x7fb   : > { %v5226_v15 = vpop.eup %5225  ;;  %v1966_v32 = vpack.c.bf16 %v1932_v36, %v1930_v48  ;;  %v1965_v7 = vpack.c.bf16 %v1931_v56, %v1929_v29 }
 0x7fc   : > { %v5228_v30 = vpop.eup %5227  ;;  %4922 = vmatpush3.msra.mxu1 %v2527_v38  ;;  %v1928_v34 = vmul.f32 %v5226_v15, %v6373_v59  ;;  %v1927_v48 = vmul.f32 %v5226_v15, %v6367_v51  ;;  %v6518_v38 = vld [vmem:[%s7996_s1] sm:$0xff]  ;;  %v6523_v56 = vpop.f32.mrf.mxu1 }
 0x7fd   : > { %1971 = vmatprep.subr.bf16.mxu0 %v1966_v32  ;;  %v2520_v12 = vpop.xlane.xlu1 %2519  ;;  %v1858_v40 = vpop.xlane.xlu0 %1857  ;;  %4923 = vmatprep.subr.mxu1 %v8097_v33  ;;  %v1926_v49 = vmul.f32 %v5228_v30, %v6379_v46  ;;  %v1925_v46 = vmul.f32 %v5228_v30, %v6376_v57 }
 0x7fe   : > { %v2526_v62 = vmul.f32 0.00390625, %v2520_v12  ;;  %5237 = vrcp.f32 %v1858_v40 }
 0x7ff   : > { %v5230_v36 = vpop.eup %5229  ;;  %v1964_v55 = vpack.c.bf16 %v1928_v34, %v1926_v49  ;;  %5239 = vrcp.f32 %v1855_v9  ;;  %v1963_v51 = vpack.c.bf16 %v1927_v48, %v1925_v46 }
 0x800   : > { %4924 = vmatpush3.msra.mxu1 %v2526_v62  ;;  %v5232_v52 = vpop.eup %5231  ;;  %v1924_v29 = vmul.f32 %v5230_v36, %v6389_v26  ;;  %v1923_v9 = vmul.f32 %v5230_v36, %v6382_v54 }
 0x801   : > { %v2514_v28 = vpop.xlane.xlu1 %2513  ;;  %1972 = vmatpush1.bf16.xpose.msra.mxu0 %v1965_v7  ;;  %v2517_v14 = vpop.xlane.xlu0 %2516  ;;  %4925 = vmatprep.subr.mxu1 %v8097_v33  ;;  %v1922_v32 = vmul.f32 %v5232_v52, %v6395_v53  ;;  %v1921_v26 = vmul.f32 %v5232_v52, %v6392_v5 }
 0x802   : > { %v2524_v59 = vmul.f32 0.00390625, %v2514_v28  ;;  %v2525_v4 = vmul.f32 0.00390625, %v2517_v14  ;;  %1973 = vmatprep.subr.bf16.mxu0 %v1964_v55  ;;  %v6527_v53 = vpop.f32.mrf.mxu1 }
 0x803   : > { %v5234_v57 = vpop.eup %5233  ;;  %v1962_v30 = vpack.c.bf16 %v1924_v29, %v1922_v32  ;;  %v1961_v7 = vpack.c.bf16 %v1923_v9, %v1921_v26 }
 0x804   : > { %4926 = vmatpush3.msra.mxu1 %v2525_v4  ;;  %v5236_v34 = vpop.eup %5235  ;;  %v1920_v49 = vmul.f32 %v5234_v57, %v6408_v50  ;;  %v6533_v62 = vpop.f32.mrf.mxu1  ;;  %v1919_v54 = vmul.f32 %v5234_v57, %v6401_v8 }
 0x805   : > { %4927 = vmatprep.subr.mxu1 %v8097_v33  ;;  %v1852_v15 = vpop.xlane.xlu1 %1851  ;;  %v1849_v12 = vpop.xlane.xlu0 %1848  ;;  %v1918_v40 = vmul.f32 %v5236_v34, %v6414_v58  ;;  %v1917_v5 = vmul.f32 %v5236_v34, %v6410_v17 }
 0x806   : > { %4928 = vmatpush3.msra.mxu1 %v2524_v59  ;;  %5241 = vrcp.f32 %v1852_v15  ;;  %v1364_v4 = vpop.f32.mrf.mxu1 }
 0x807   : > { %4930 = vmatmul.mubr.msk.f32.vlgmr.msra.gmra.mxu1 %vm425_vm1, %v6518_v38  ;;  %5243 = vrcp.f32 %v1849_v12  ;;  %v1960_v28 = vpack.c.bf16 %v1920_v49, %v1918_v40  ;;  %v1959_v52 = vpack.c.bf16 %v1919_v54, %v1917_v5  ;;  %v8118_v5 = vld [vmem:[#allocation13_spill] sm:$0xff] }
 0x808   : > { %v6539_v36 = vpop.f32.mrf.mxu1 }
 0x809   : > { %1974 = vmatpush1.bf16.xpose.msra.mxu0 %v1963_v51  ;;  %v1846_v55 = vpop.xlane.xlu1 %1845  ;;  %v1843_v59 = vpop.xlane.xlu0 %1842 }
 0x80a   : > { %1975 = vmatprep.subr.bf16.mxu0 %v1962_v30  ;;  %5245 = vrcp.f32 %v1846_v55  ;;  %v1370_v51 = vpop.f32.mrf.mxu1 }
 0x80b   : > { %v5238_v14 = vpop.eup %5237  ;;  %5247 = vrcp.f32 %v1843_v59 }
 0x80c   : > { %v5240_v46 = vpop.eup %5239  ;;  %v1916_v58 = vmul.f32 %v5238_v14, %v6443_v2  ;;  %v1915_v15 = vmul.f32 %v5238_v14, %v6439_v0  ;;  %v1372_v2 = vpop.f32.mrf.mxu1 }
 0x80d   : > { %v1914_v50 = vmul.f32 %v5240_v46, %v6434_v3  ;;  %v1913_v57 = vmul.f32 %v5240_v46, %v6423_v18  ;;  %v8103_v46 = vpack.c.bf16 %v6489_v47, %v6487_v13  ;;  %v1942_v47 = vpack.c.bf16 %v1364_v4, %v6527_v53  ;;  %v8115_v53 = vld [vmem:[#allocation17_spill] sm:$0xff] }
 0x80e   : > { %v1374_v26 = vpop.f32.mrf.mxu1  ;;  %v8107_v13 = vpack.c.bf16 %v6197_v22, %v6194_v44  ;;  %v8114_v22 = vld [vmem:[#allocation18_spill] sm:$0xff] }
 0x80f   : > { %v1958_v32 = vpack.c.bf16 %v1916_v58, %v1914_v50  ;;  %v1957_v30 = vpack.c.bf16 %v1915_v15, %v1913_v57  ;;  %v1944_v44 = vpack.c.bf16 %v1374_v26, %v1370_v51  ;;  %v8116_v4 = vpack.c.bf16 %v8114_v22, %v8115_v53  ;;  %v8126_v15 = vld [vmem:[#allocation8_spill] sm:$0xff]  ;;  %v8133_v26 = vld [vmem:[#allocation9_spill] sm:$0xff] }
 0x810   : > { %v1378_v49 = vpop.f32.mrf.mxu1 }
 0x811   : > { %1976 = vmatpush1.bf16.xpose.msra.mxu0 %v1961_v7 }
 0x812   : > { %1977 = vmatprep.subr.bf16.mxu0 %v1960_v28  ;;  %v1380_v18 = vpop.f32.mrf.mxu1 }
 0x813   : > { %v5242_v48 = vpop.eup %5241 }
 0x814   : > { %v5244_v29 = vpop.eup %5243  ;;  %v1912_v8 = vmul.f32 %v5242_v48, %v6465_v10  ;;  %v1911_v40 = vmul.f32 %v5242_v48, %v6455_v45  ;;  %v1382_v14 = vpop.f32.mrf.mxu1  ;;  %v8102_v45 = vpack.c.bf16 %v6252_v37, %v6250_v6  ;;  %v1939_v37 = vpack.c.bf16 %v6508_v43, %v6497_v19  ;;  %v8112_v43 = vld [vmem:[#allocation21_spill] sm:$0xff]  ;;  %v8123_v48 = vld [vmem:[#allocation16_spill] sm:$0xff] }
 0x815   : > { %v1910_v17 = vmul.f32 %v5244_v29, %v6469_v21  ;;  %v1909_v9 = vmul.f32 %v5244_v29, %v6467_v31  ;;  %v1940_v31 = vpack.c.bf16 %v6511_v1, %v6501_v60  ;;  %v8106_v60 = vpack.c.bf16 %v6239_v11, %v6236_v35  ;;  %v8111_v35 = vld [vmem:[#allocation22_spill] sm:$0xff] }
 0x816   : > { %v1941_v11 = vpack.c.bf16 %v6533_v62, %v6523_v56  ;;  %v8113_v1 = vpack.c.bf16 %v8111_v35, %v8112_v43  ;;  %v8120_v56 = vld [vmem:[#allocation20_spill] sm:$0xff]  ;;  %v8121_v62 = vld [vmem:[#allocation19_spill] sm:$0xff] }
 0x817   : > { %v5246_v3 = vpop.eup %5245  ;;  %v1956_v34 = vpack.c.bf16 %v1912_v8, %v1910_v17  ;;  %v1955_v10 = vpack.c.bf16 %v1911_v40, %v1909_v9  ;;  %v8122_v58 = vpack.c.bf16 %v8120_v56, %v8121_v62  ;;  %v8127_v17 = vld [vmem:[#allocation7_spill] sm:$0xff]  ;;  %v8135_v40 = vld [vmem:[#allocation12_spill] sm:$0xff]  ;;  %v2071_v56 = vld [vmem:[%s8005_s10 + $0x28] sm:$0xff] }
 0x818   : > { %v5248_v12 = vpop.eup %5247  ;;  %v1908_v21 = vmul.f32 %v5246_v3, %v6473_v23  ;;  %v1907_v28 = vmul.f32 %v5246_v3, %v6471_v20  ;;  %v8105_v20 = vpack.c.bf16 %v6258_v63, %v6255_v16  ;;  %v8109_v16 = vld [vmem:[#allocation23_spill] sm:$0xff]  ;;  %v8128_v8 = vpack.c.bf16 %v8126_v15, %v8127_v17  ;;  %v8130_v3 = vld [vmem:[#allocation5_spill] sm:$0xff]  ;;  %v2073_v15 = vld [vmem:[%s8005_s10 + $0x38] sm:$0xff] }
 0x819   : > { %1978 = vmatpush1.bf16.xpose.msra.mxu0 %v1959_v52  ;;  %v1906_v0 = vmul.f32 %v5248_v12, %v6481_v27  ;;  %v1905_v55 = vmul.f32 %v5248_v12, %v6475_v41  ;;  %v1384_v27 = vpop.f32.mrf.mxu1  ;;  %v8104_v41 = vpack.c.bf16 %v6233_v61, %v6230_v25  ;;  %v8108_v61 = vpack.c.bf16 %v6177_v24, %v6172_v42  ;;  %v8117_v24 = vld [vmem:[#allocation14_spill] sm:$0xff]  ;;  %v2068_v35 = vld [vmem:[%s8005_s10 + $0x10] sm:$0xff] }
 0x81a   : > { %1979 = vmatprep.subr.bf16.mxu0 %v1958_v32  ;;  %v8110_v63 = vpack.c.bf16 %v6203_v39, %v8109_v16  ;;  %v8119_v54 = vpack.c.bf16 %v8117_v24, %v8118_v5  ;;  %v6594_v39 = vld [vmem:[%s7997_s2] sm:$0xff]  ;;  %v1943_v52 = vpack.c.bf16 %v1372_v2, %v6539_v36  ;;  %v8124_v32 = vld [vmem:[#allocation15_spill] sm:$0xff]  ;;  %v1946_v51 = vpack.c.bf16 %v1384_v27, %v1380_v18  ;;  %v8132_v12 = vld [vmem:[#allocation10_spill] sm:$0xff] }
 0x81b   : > { %v1954_v7 = vpack.c.bf16 %v1908_v21, %v1906_v0  ;;  %v1953_v59 = vpack.c.bf16 %v1907_v28, %v1905_v55  ;;  %v1388_v23 = vpop.f32.mrf.mxu1  ;;  %4934 = vmatprep.mubr.msk.f32.mxu1 %vm499_vm2, %v6594_v39  ;;  %v8125_v29 = vpack.c.bf16 %v8123_v48, %v8124_v32  ;;  %v8134_v9 = vpack.c.bf16 %v8132_v12, %v8133_v26  ;;  %v8136_v0 = vld [vmem:[#allocation11_spill] sm:$0xff]  ;;  %v2070_v5 = vld [vmem:[%s8005_s10 + $0x20] sm:$0xff] }
 0x81c   : > { %v1945_v2 = vpack.c.bf16 %v1382_v14, %v1378_v49  ;;  %v8137_v21 = vpack.c.bf16 %v8135_v40, %v8136_v0  ;;  %v8138_v14 = vmov 0   ;;  %v2074_v12 = vld [vmem:[%s8005_s10 + $0x40] sm:$0xff] }
 0x81d   : > { %v1390_v6 = vpop.f32.mrf.mxu1 }
 0x81f   : > { %v1392_v25 = vpop.f32.mrf.mxu1 }
 0x820   : > { %v1947_v55 = vpack.c.bf16 %v1392_v25, %v1388_v23  ;;  %v6626_v23 = vld [vmem:[%s7997_s2 + $0x10] sm:$0xff] }
 0x821   : > { %1980 = vmatpush1.bf16.xpose.msra.mxu0 %v1957_v30  ;;  %v1394_v19 = vpop.f32.mrf.mxu1  ;;  %v8129_v30 = vld [vmem:[#allocation6_spill] sm:$0xff] }
 0x822   : > { %1981 = vmatprep.subr.bf16.mxu0 %v1956_v34  ;;  %v8131_v34 = vpack.c.bf16 %v8129_v30, %v8130_v3 }
 0x823   : > { %v1398_v42 = vpop.f32.mrf.mxu1 }
 0x825   : > { %v1400_v50 = vpop.f32.mrf.mxu1 }
 0x827   : > { %v1402_v57 = vpop.f32.mrf.mxu1 }
 0x828   : > { %v1949_v27 = vpack.c.bf16 %v1402_v57, %v1398_v42 }
 0x829   : > { %1982 = vmatpush1.bf16.xpose.msra.mxu0 %v1955_v10  ;;  %v1404_v36 = vpop.f32.mrf.mxu1  ;;  %v1948_v10 = vpack.c.bf16 %v1394_v19, %v1390_v6  ;;  %v6635_v6 = vld [vmem:[%s7997_s2 + $0x18] sm:$0xff] }
 0x82a   : > { %1983 = vmatprep.subr.bf16.mxu0 %v1954_v7  ;;  %v1950_v28 = vpack.c.bf16 %v1404_v36, %v1400_v50 }
 0x82b   : > { %v1408_v7 = vpop.f32.mrf.mxu1 }
 0x82d   : > { %v1410_v18 = vpop.f32.mrf.mxu1 }
 0x831   : > { %1984 = vmatpush1.bf16.xpose.msra.mxu0 %v1953_v59  ;;  %v1412_v59 = vpop.f32.mrf.mxu1 }
 0x832   : > { %2122 = vmatprep.subr.bf16.mxu0 %v8102_v45  ;;  %v1951_v49 = vpack.c.bf16 %v1412_v59, %v1408_v7  ;;  %v2076_v7 = vld [vmem:[%s8005_s10 + $0x50] sm:$0xff] }
 0x833   : > { %v1414_v45 = vpop.f32.mrf.mxu1 }
 0x838   : > { %2002 = vmatmul.mubr.bf16.vlgmr.msra.gmra.mxu0 %v8103_v46 }
 0x839   : > { %2123 = vmatpush1.bf16.msra.mxu0 %v8104_v41  ;;  %2009 = vmatprep.mubr.bf16.mxu0 %v1940_v31  ;;  %v1952_v31 = vpack.c.bf16 %v1414_v45, %v1410_v18  ;;  %v6621_v41 = vld [vmem:[%s7997_s2 + $0x8] sm:$0xff] }
 0x83a   : > { %2124 = vmatprep.subr.bf16.mxu0 %v8105_v20 }
 0x83d   : > { %2125 = vmatpush1.bf16.msra.mxu0 %v8106_v60  ;;  %v2066_v60 = vld [vmem:[%s8005_s10] sm:$0xff] }
 0x83e   : > { %2126 = vmatprep.subr.bf16.mxu0 %v8107_v13  ;;  %v2067_v13 = vld [vmem:[%s8005_s10 + $0x8] sm:$0xff] }
 0x840   : > { %2010 = vmatmul.mubr.bf16.gmra.mxu0 %v1939_v37 }
 0x841   : > { %2127 = vmatpush1.bf16.msra.mxu0 %v8108_v61  ;;  %2017 = vmatprep.mubr.bf16.mxu0 %v1942_v47 }
 0x842   : > { %2128 = vmatprep.subr.bf16.mxu0 %v8110_v63 }
 0x845   : > { %2129 = vmatpush1.bf16.msra.mxu0 %v8113_v1  ;;  %v2069_v1 = vld [vmem:[%s8005_s10 + $0x18] sm:$0xff] }
 0x846   : > { %2130 = vmatprep.subr.bf16.mxu0 %v8116_v4 }
 0x848   : > { %2018 = vmatmul.mubr.bf16.gmra.mxu0 %v1941_v11 }
 0x849   : > { %2131 = vmatpush1.bf16.msra.mxu0 %v8119_v54  ;;  %2025 = vmatprep.mubr.bf16.mxu0 %v1944_v44 }
 0x84a   : > { %2132 = vmatprep.subr.bf16.mxu0 %v8122_v58 }
 0x84d   : > { %2133 = vmatpush1.bf16.msra.mxu0 %v8125_v29  ;;  %v2072_v29 = vld [vmem:[%s8005_s10 + $0x30] sm:$0xff] }
 0x84e   : > { %2134 = vmatprep.subr.bf16.mxu0 %v8128_v8 }
 0x850   : > { %2026 = vmatmul.mubr.bf16.gmra.mxu0 %v1943_v52 }
 0x851   : > { %2135 = vmatpush1.bf16.msra.mxu0 %v8131_v34  ;;  %2033 = vmatprep.mubr.bf16.mxu0 %v1946_v51 }
 0x852   : > { %2136 = vmatprep.subr.bf16.mxu0 %v8134_v9  ;;  %v2075_v9 = vld [vmem:[%s8005_s10 + $0x48] sm:$0xff] }
 0x855   : > { %2137 = vmatpush1.bf16.msra.mxu0 %v8137_v21 }
 0x858   : > { %2034 = vmatmul.mubr.bf16.gmra.mxu0 %v1945_v2 }
 0x859   : > { %2041 = vmatprep.mubr.bf16.mxu0 %v1948_v10 }
 0x860   : > { %2042 = vmatmul.mubr.bf16.gmra.mxu0 %v1947_v55  ;;  %v2077_v55 = vld [vmem:[%s8005_s10 + $0x58] sm:$0xff] }
 0x861   : > { %2049 = vmatprep.mubr.bf16.mxu0 %v1950_v28 }
 0x868   : > { %2050 = vmatmul.mubr.bf16.gmra.mxu0 %v1949_v27 }
 0x869   : > { %2057 = vmatprep.mubr.bf16.mxu0 %v1952_v31 }
 0x870   : > { %2058 = vmatmul.mubr.bf16.gmra.mxu0 %v1951_v49 }
 0x871   : > { %2154 = vmatprep.mubr.bf16.mxu0 %v8138_v14 }
 0x8c7   : > { %v2602_v46 = vpop.f32.mrf.mxu1 }
 0x8c8   : > { %4932 = vmatprep.subr.mxu1 %v2602_v46 }
 0x8c9   : > { %4933 = vmatpush3.msra.mxu1 %v2602_v46  ;;  %v4931_v20 = vpop.f32.mrf.mxu1  ;;  %v2078_v46 = vld [vmem:[%s8005_s10 + $0x60] sm:$0xff] }
 0x8ca   : > { %4935 = vmatmul.mubr.msk.f32.vlgmr.msra.gmra.mxu1 %vm499_vm2, %v6621_v41 }
 0x8cb   : > { %4937 = vmatprep.mubr.msk.f32.mxu1 %vm499_vm2, %v6626_v23 }
 0x8ce   : > { %4938 = vmatmul.mubr.msk.f32.gmra.mxu1 %vm499_vm2, %v6635_v6 }
 0x8f8   : > { %v2003_v37 = vpop.f32.mrf.mxu0 }
 0x8f9   : > { %v2082_v25 = vmul.f32 %v2066_v60, %v2003_v37  ;;  %v2079_v37 = vld [vmem:[%s8005_s10 + $0x68] sm:$0xff] }
 0x8fa   : > { %v2005_v47 = vpop.f32.mrf.mxu0 }
 0x8fc   : > { %v2006_v61 = vpop.f32.mrf.mxu0 }
 0x8fd   : > { %v2083_v16 = vmul.f32 %v2067_v13, %v2006_v61 }
 0x8fe   : > { %v2008_v63 = vpop.f32.mrf.mxu0 }
 0x8ff   : > { %v2098_v19 = vpack.c.bf16 %v2083_v16, %v2082_v25  ;;  %v2080_v63 = vld [vmem:[%s8005_s10 + $0x70] sm:$0xff] }
 0x900   : > { %v2011_v11 = vpop.f32.mrf.mxu0 }
 0x901   : > { %2155 = vmatmul.mubr.bf16.vlgmr.msra.gmra.mxu0 %v2098_v19  ;;  %v2084_v44 = vmul.f32 %v2068_v35, %v2011_v11  ;;  %v2081_v11 = vld [vmem:[%s8005_s10 + $0x78] sm:$0xff] }
 0x902   : > { %v2013_v43 = vpop.f32.mrf.mxu0  ;;  %2164 = vmatprep.mubr.bf16.mxu0 %v8138_v14 }
 0x904   : > { %v2014_v22 = vpop.f32.mrf.mxu0 }
 0x905   : > { %v2085_v53 = vmul.f32 %v2069_v1, %v2014_v22 }
 0x906   : > { %v2016_v4 = vpop.f32.mrf.mxu0 }
 0x907   : > { %v2099_v42 = vpack.c.bf16 %v2085_v53, %v2084_v44 }
 0x908   : > { %v2019_v24 = vpop.f32.mrf.mxu0 }
 0x909   : > { %2165 = vmatmul.mubr.bf16.gmra.mxu0 %v2099_v42  ;;  %v2086_v62 = vmul.f32 %v2070_v5, %v2019_v24 }
 0x90a   : > { %v2021_v54 = vpop.f32.mrf.mxu0  ;;  %2174 = vmatprep.mubr.bf16.mxu0 %v8138_v14 }
 0x90c   : > { %v2022_v58 = vpop.f32.mrf.mxu0 }
 0x90d   : > { %v2087_v50 = vmul.f32 %v2071_v56, %v2022_v58 }
 0x90e   : > { %v2024_v52 = vpop.f32.mrf.mxu0 }
 0x90f   : > { %v2100_v48 = vpack.c.bf16 %v2087_v50, %v2086_v62 }
 0x910   : > { %v2027_v32 = vpop.f32.mrf.mxu0 }
 0x911   : > { %2175 = vmatmul.mubr.bf16.gmra.mxu0 %v2100_v48  ;;  %v2088_v17 = vmul.f32 %v2072_v29, %v2027_v32 }
 0x912   : > { %v2029_v51 = vpop.f32.mrf.mxu0  ;;  %2184 = vmatprep.mubr.bf16.mxu0 %v8138_v14 }
 0x914   : > { %v2030_v8 = vpop.f32.mrf.mxu0 }
 0x915   : > { %v2089_v57 = vmul.f32 %v2073_v15, %v2030_v8 }
 0x916   : > { %v2032_v30 = vpop.f32.mrf.mxu0 }
 0x917   : > { %v2101_v3 = vpack.c.bf16 %v2089_v57, %v2088_v17 }
 0x918   : > { %v2035_v34 = vpop.f32.mrf.mxu0 }
 0x919   : > { %2185 = vmatmul.mubr.bf16.gmra.mxu0 %v2101_v3  ;;  %v2090_v36 = vmul.f32 %v2074_v12, %v2035_v34 }
 0x91a   : > { %v2037_v26 = vpop.f32.mrf.mxu0  ;;  %2194 = vmatprep.mubr.bf16.mxu0 %v8138_v14 }
 0x91c   : > { %v2038_v2 = vpop.f32.mrf.mxu0 }
 0x91d   : > { %v2091_v40 = vmul.f32 %v2075_v9, %v2038_v2 }
 0x91e   : > { %v2040_v0 = vpop.f32.mrf.mxu0 }
 0x91f   : > { %v2102_v21 = vpack.c.bf16 %v2091_v40, %v2090_v36 }
 0x920   : > { %v2043_v10 = vpop.f32.mrf.mxu0 }
 0x921   : > { %2195 = vmatmul.mubr.bf16.gmra.mxu0 %v2102_v21  ;;  %v2092_v28 = vmul.f32 %v2076_v7, %v2043_v10 }
 0x922   : > { %v2045_v18 = vpop.f32.mrf.mxu0  ;;  %2204 = vmatprep.mubr.bf16.mxu0 %v8138_v14 }
 0x924   : > { %v2046_v59 = vpop.f32.mrf.mxu0 }
 0x925   : > { %v2093_v45 = vmul.f32 %v2077_v55, %v2046_v59 }
 0x926   : > { %v2048_v27 = vpop.f32.mrf.mxu0 }
 0x927   : > { %v2103_v31 = vpack.c.bf16 %v2093_v45, %v2092_v28 }
 0x928   : > { %v2051_v49 = vpop.f32.mrf.mxu0 }
 0x929   : > { %2205 = vmatmul.mubr.bf16.gmra.mxu0 %v2103_v31  ;;  %v2094_v60 = vmul.f32 %v2078_v46, %v2051_v49 }
 0x92a   : > { %v2053_v20 = vpop.f32.mrf.mxu0  ;;  %2214 = vmatprep.mubr.bf16.mxu0 %v8138_v14 }
 0x92c   : > { %v2054_v47 = vpop.f32.mrf.mxu0 }
 0x92d   : > { %v2095_v13 = vmul.f32 %v2079_v37, %v2054_v47 }
 0x92e   : > { %v2056_v25 = vpop.f32.mrf.mxu0 }
 0x92f   : > { %v2104_v61 = vpack.c.bf16 %v2095_v13, %v2094_v60  ;;  %v8139_v25 = vld [vmem:[#allocation24_spill] sm:$0xff] }
 0x930   : > { %v2059_v16 = vpop.f32.mrf.mxu0 }
 0x931   : > { %2215 = vmatmul.mubr.bf16.gmra.mxu0 %v2104_v61  ;;  %v2096_v35 = vmul.f32 %v2080_v63, %v2059_v16  ;;  %v8140_v61 = vunpack.c.l.bf16 %v8139_v25  ;;  %v8141_v63 = vunpack.c.h.bf16 %v8139_v25 }
 0x932   : > { %v2061_v19 = vpop.f32.mrf.mxu0  ;;  %2224 = vmatprep.mubr.bf16.mxu0 %v8138_v14 }
 0x934   : > { %v2062_v43 = vpop.f32.mrf.mxu0 }
 0x935   : > { %v2097_v1 = vmul.f32 %v2081_v11, %v2062_v43 }
 0x936   : > { %v2064_v44 = vpop.f32.mrf.mxu0 }
 0x937   : > { %v2105_v22 = vpack.c.bf16 %v2097_v1, %v2096_v35  ;;  %v8142_v1 = vld [vmem:[#allocation25_spill] sm:$0xff] }
 0x938   : > { %v8143_v44 = vunpack.c.l.bf16 %v8142_v1 }
 0x939   : > { %2225 = vmatmul.mubr.bf16.gmra.mxu0 %v2105_v22 }
 0x93a   : > { %2323 = vmatprep.mubr.bf16.mxu0 %v8138_v14 }
 0x98a   : > { %v4936_v53 = vpop.f32.mrf.mxu1 }
 0x98c   : > { %v2684_v4 = vpop.f32.mrf.mxu1 }
 0x98e   : > { %v4939_v42 = vpop.f32.mrf.mxu1 }
 0x98f   : > { %2720 = vperm.xlu0 %5011, %v4939_v42  }
 0x990   : > { %v2694_v24 = vpop.f32.mrf.mxu1 }
 0x991   : > { %2715 = vperm.xlu1 %5012, %v2694_v24  }
 0x993   : > { %2705 = vperm.xlu0 %5011, %v2684_v4  }
 0x995   : > { %2710 = vperm.xlu1 %5012, %v4936_v53   ;;  %v8144_v53 = vunpack.c.h.bf16 %v8142_v1 }
 0x9c1   : > { %v6695_v5 = vpop.f32.mrf.mxu0 }
 0x9c3   : > { %v6697_v54 = vpop.f32.mrf.mxu0 }
 0x9c5   : > { %v6699_v56 = vpop.f32.mrf.mxu0 }
 0x9c6   : > { %v2239_v62 = vpack.c.bf16 %v6699_v56, %v6695_v5  ;;  %v2945_v5 = vld [vmem:[%s7998_s3 + $0x18] sm:$0xff] }
 0x9c7   : > { %v6703_v58 = vpop.f32.mrf.mxu0  ;;  %v2977_v56 = vld [vmem:[%s7999_s4 + $0x18] sm:$0xff] }
 0x9c9   : > { %v6705_v50 = vpop.f32.mrf.mxu0 }
 0x9cb   : > { %v6707_v52 = vpop.f32.mrf.mxu0 }
 0x9cd   : > { %v6709_v48 = vpop.f32.mrf.mxu0 }
 0x9ce   : > { %v2241_v32 = vpack.c.bf16 %v6709_v48, %v6705_v50  ;;  %v2976_v50 = vld [vmem:[%s7999_s4 + $0x10] sm:$0xff] }
 0x9cf   : > { %v6713_v29 = vpop.f32.mrf.mxu0 }
 0x9d1   : > { %v6715_v51 = vpop.f32.mrf.mxu0 }
 0x9d3   : > { %v6717_v15 = vpop.f32.mrf.mxu0 }
 0x9d5   : > { %v6719_v17 = vpop.f32.mrf.mxu0 }
 0x9d7   : > { %v6721_v8 = vpop.f32.mrf.mxu0 }
 0x9d9   : > { %v6723_v57 = vpop.f32.mrf.mxu0 }
 0x9db   : > { %v2188_v30 = vpop.f32.mrf.mxu0 }
 0x9dd   : > { %v6725_v3 = vpop.f32.mrf.mxu0 }
 0x9df   : > { %v2192_v34 = vpop.f32.mrf.mxu0 }
 0x9e0   : > { %v2246_v43 = vpack.c.bf16 %v2192_v34, %v2188_v30  ;;  %v8145_v30 = vld [vmem:[#allocation27_spill] sm:$0xff] }
 0x9e1   : > { %v2196_v12 = vpop.f32.mrf.mxu0  ;;  %v8146_v34 = vunpack.c.l.bf16 %v8145_v30 }
 0x9e3   : > { %v2198_v26 = vpop.f32.mrf.mxu0 }
 0x9e5   : > { %v2200_v9 = vpop.f32.mrf.mxu0 }
 0x9e6   : > { %v2247_v11 = vpack.c.bf16 %v2200_v9, %v2196_v12  ;;  %v2245_v12 = vpack.c.bf16 %v6725_v3, %v6723_v57  ;;  %v2244_v57 = vpack.c.bf16 %v6721_v8, %v6717_v15  ;;  %v8148_v3 = vld [vmem:[#allocation26_spill] sm:$0xff] }
 0x9e7   : > { %v2202_v36 = vpop.f32.mrf.mxu0 }
 0x9e8   : > { %v2248_v47 = vpack.c.bf16 %v2202_v36, %v2198_v26  ;;  %v8147_v36 = vunpack.c.h.bf16 %v8145_v30 }
 0x9e9   : > { %v2206_v2 = vpop.f32.mrf.mxu0 }
 0x9eb   : > { %v2208_v40 = vpop.f32.mrf.mxu0 }
 0x9ed   : > { %v2210_v0 = vpop.f32.mrf.mxu0 }
 0x9ee   : > { %v2249_v60 = vpack.c.bf16 %v2210_v0, %v2206_v2 }
 0x9ef   : > { %v2212_v21 = vpop.f32.mrf.mxu0 }
 0x9f0   : > { %v2250_v37 = vpack.c.bf16 %v2212_v21, %v2208_v40 }
 0x9f1   : > { %v2216_v10 = vpop.f32.mrf.mxu0 }
 0x9f3   : > { %v2218_v7 = vpop.f32.mrf.mxu0 }
 0x9f5   : > { %v2220_v18 = vpop.f32.mrf.mxu0 }
 0x9f6   : > { %v2251_v20 = vpack.c.bf16 %v2220_v18, %v2216_v10 }
 0x9f7   : > { %v2222_v55 = vpop.f32.mrf.mxu0 }
 0x9f8   : > { %v2252_v49 = vpack.c.bf16 %v2222_v55, %v2218_v7  ;;  %v8149_v7 = vunpack.c.l.bf16 %v8148_v3  ;;  %v8150_v55 = vunpack.c.h.bf16 %v8148_v3 }
 0x9f9   : > { %v2226_v28 = vpop.f32.mrf.mxu0 }
 0x9fb   : > { %v2228_v59 = vpop.f32.mrf.mxu0 }
 0x9fd   : > { %v2230_v45 = vpop.f32.mrf.mxu0 }
 0x9fe   : > { %v2253_v27 = vpack.c.bf16 %v2230_v45, %v2226_v28 }
 0x9ff   : > { %v2232_v31 = vpop.f32.mrf.mxu0 }
 0xa00   : > { %v2254_v46 = vpack.c.bf16 %v2232_v31, %v2228_v59 }
 0xa02   : > { %2291 = vmatprep.subr.bf16.mxu0 %v2254_v46  ;;  %v2242_v46 = vpack.c.bf16 %v6713_v29, %v6707_v52 }
 0xa03   : > { %2292 = vmatpush1.bf16.msra.mxu0 %v2253_v27 }
 0xa04   : > { %2293 = vmatprep.subr.bf16.mxu0 %v2252_v49  ;;  %v2243_v49 = vpack.c.bf16 %v6719_v17, %v6715_v51  ;;  %v5037_v51 = vld [vmem:[%s8001_s6] sm:$0xff]  }
 0xa07   : > { %2294 = vmatpush1.bf16.msra.mxu0 %v2251_v20 }
 0xa08   : > { %2295 = vmatprep.subr.bf16.mxu0 %v2250_v37  ;;  %v2240_v37 = vpack.c.bf16 %v6703_v58, %v6697_v54  ;;  %v2944_v54 = vld [vmem:[%s7998_s3 + $0x10] sm:$0xff]  ;;  %v5038_v58 = vld [vmem:[%s8001_s6 + $0x8] sm:$0xff]  }
 0xa0a   : > { %v2721_v13 = vpop.permute.xlu0 %2720 }
 0xa0b   : > { %v6729_v16 = vsub.f32 %v8140_v61, %v2721_v13  ;;  %v6733_v19 = vsub.f32 %v8141_v63, %v2721_v13  ;;  %2296 = vmatpush1.bf16.msra.mxu0 %v2249_v60 }
 0xa0c   : > { %v2716_v35 = vpop.permute.xlu1 %2715  ;;  %2297 = vmatprep.subr.bf16.mxu0 %v2248_v47 }
 0xa0d   : > { %v6737_v22 = vsub.f32 %v8143_v44, %v2716_v35  ;;  %v6741_v4 = vsub.f32 %v8144_v53, %v2716_v35  ;;  %v2737_v42 = vmul.f32 %v6729_v16, %v6729_v16  ;;  %v2738_v24 = vmul.f32 %v6733_v19, %v6733_v19 }
 0xa0e   : > { %v2706_v26 = vpop.permute.xlu0 %2705 }
 0xa0f   : > { %v6751_v9 = vsub.f32 %v8146_v34, %v2706_v26  ;;  %v6755_v2 = vsub.f32 %v8147_v36, %v2706_v26  ;;  %v2748_v40 = vadd.f32 %v2738_v24, %v2737_v42  ;;  %v2735_v0 = vmul.f32 %v6737_v22, %v6737_v22  ;;  %2298 = vmatpush1.bf16.msra.mxu0 %v2247_v11  ;;  %v2943_v36 = vld [vmem:[%s7998_s3 + $0x8] sm:$0xff] }
 0xa10   : > { %v2711_v21 = vpop.permute.xlu1 %2710  ;;  %v2736_v10 = vmul.f32 %v6741_v4, %v6741_v4  ;;  %2299 = vmatprep.subr.bf16.mxu0 %v2246_v43 }
 0xa11   : > { %v6765_v18 = vsub.f32 %v8149_v7, %v2711_v21  ;;  %v6769_v28 = vsub.f32 %v8150_v55, %v2711_v21  ;;  %2749 = vadd.xlane.f32.xlu1 %v2748_v40  ;;  %v2731_v59 = vmul.f32 %v6751_v9, %v6751_v9  ;;  %v2732_v45 = vmul.f32 %v6755_v2, %v6755_v2  ;;  %v2942_v40 = vld [vmem:[%s7998_s3] sm:$0xff] }
 0xa12   : > { %v2745_v27 = vadd.f32 %v2736_v10, %v2735_v0  ;;  %v2975_v0 = vld [vmem:[%s7999_s4 + $0x8] sm:$0xff]  ;;  %v2974_v21 = vld [vmem:[%s7999_s4] sm:$0xff] }
 0xa13   : > { %v2739_v31 = vadd.f32 %v2732_v45, %v2731_v59  ;;  %v2733_v15 = vmul.f32 %v6765_v18, %v6765_v18  ;;  %v2734_v8 = vmul.f32 %v6769_v28, %v6769_v28  ;;  %2300 = vmatpush1.bf16.msra.mxu0 %v2245_v12 }
 0xa14   : > { %2746 = vadd.xlane.f32.xlu0 %v2745_v27  ;;  %2301 = vmatprep.subr.bf16.mxu0 %v2244_v57 }
 0xa15   : > { %2740 = vadd.xlane.f32.xlu1 %v2739_v31  ;;  %v2742_v20 = vadd.f32 %v2734_v8, %v2733_v15 }
 0xa17   : > { %2302 = vmatpush1.bf16.msra.mxu0 %v2243_v49 }
 0xa18   : > { %2743 = vadd.xlane.f32.xlu0 %v2742_v20  ;;  %2303 = vmatprep.subr.bf16.mxu0 %v2242_v46 }
 0xa1b   : > { %2304 = vmatpush1.bf16.msra.mxu0 %v2241_v32 }
 0xa1c   : > { %2305 = vmatprep.subr.bf16.mxu0 %v2240_v37 }
 0xa1f   : > { %2306 = vmatpush1.bf16.msra.mxu0 %v2239_v62 }
 0xa20   : > { %4940 = vmatprep.subr.mxu0 %v8097_v33 }
 0xa22   : > { %2324 = vmatmul.mubr.bf16.vlgmr.msra.gmra.mxu0 %v5037_v51 }
 0xa23   : > { %2333 = vmatprep.mubr.bf16.mxu0 %v8138_v14 }
 0xa26   : > { %2958 = vperm.xlu1 %5012, %v2944_v54  }
 0xa2a   : > { %2990 = vperm.xlu1 %5012, %v2976_v50   ;;  %2334 = vmatmul.mubr.bf16.gmra.mxu0 %v5038_v58 }
 0xa2b   : > { %4948 = vmatprep.mubr.msk.f32.mxu0 %vm5500_vm0, %v8097_v33 }
 0xa2e   : > { %2963 = vperm.xlu0 %5011, %v2945_v5  }
 0xa32   : > { %2995 = vperm.xlu0 %5011, %v2977_v56  }
 0xa9a   : > { %v2750_v62 = vpop.xlane.xlu1 %2749 }
 0xa9b   : > { %v2754_v52 = vmul.f32 0.00390625, %v2750_v62 }
 0xa9d   : > { %v2747_v48 = vpop.xlane.xlu0 %2746  ;;  %4941 = vmatpush3.msra.mxu0 %v2754_v52 }
 0xa9e   : > { %v2753_v32 = vmul.f32 0.00390625, %v2747_v48  ;;  %4942 = vmatprep.subr.mxu0 %v8097_v33  ;;  %v2741_v29 = vpop.xlane.xlu1 %2740 }
 0xa9f   : > { %v2751_v47 = vmul.f32 0.00390625, %v2741_v29 }
 0xaa0   : > { %4943 = vmatpush3.msra.mxu0 %v2753_v32 }
 0xaa1   : > { %v2744_v17 = vpop.xlane.xlu0 %2743  ;;  %4944 = vmatprep.subr.mxu0 %v8097_v33 }
 0xaa2   : > { %v2752_v60 = vmul.f32 0.00390625, %v2744_v17  ;;  %v2959_v10 = vpop.permute.xlu1 %2958 }
 0xaa4   : > { %4945 = vmatpush3.msra.mxu0 %v2752_v60 }
 0xaa5   : > { %4946 = vmatprep.subr.mxu0 %v8097_v33 }
 0xaa6   : > { %4947 = vmatpush3.msra.mxu0 %v2751_v47  ;;  %v2991_v3 = vpop.permute.xlu1 %2990 }
 0xaa7   : > { %4949 = vmatmul.mubr.msk.f32.vlgmr.msra.gmra.mxu0 %vm425_vm1, %v6518_v38 }
 0xaa8   : > { %4953 = vmatprep.mubr.msk.f32.mxu0 %vm499_vm2, %v6594_v39 }
 0xaa9   : > { %v2964_v57 = vpop.permute.xlu0 %2963 }
 0xaad   : > { %v2996_v7 = vpop.permute.xlu0 %2995 }
 0xae2   : > { %v6820_v13 = vpop.f32.mrf.mxu0 }
 0xae4   : > { %v6822_v25 = vpop.f32.mrf.mxu0 }
 0xae6   : > { %v6824_v61 = vpop.f32.mrf.mxu0 }
 0xae8   : > { %v6826_v63 = vpop.f32.mrf.mxu0 }
 0xaea   : > { %v6828_v11 = vpop.f32.mrf.mxu0 }
 0xaec   : > { %v6830_v35 = vpop.f32.mrf.mxu0 }
 0xaee   : > { %v6832_v33 = vpop.f32.mrf.mxu0 }
 0xaf0   : > { %v6834_v43 = vpop.f32.mrf.mxu0 }
 0xaf1   : > { %8151 = vst [vmem:[#allocation23_spill] sm:$0xff] %v6834_v43 }
 0xb67   : > { %v2821_v38 = vpop.f32.mrf.mxu0 }
 0xb68   : > { %4951 = vmatprep.subr.mxu0 %v2821_v38 }
 0xb69   : > { %4952 = vmatpush3.msra.mxu0 %v2821_v38  ;;  %v4950_v39 = vpop.f32.mrf.mxu0 }
 0xb6a   : > { %4954 = vmatmul.mubr.msk.f32.vlgmr.msra.gmra.mxu0 %vm499_vm2, %v6621_v41 }
 0xb6b   : > { %4956 = vmatprep.mubr.msk.f32.mxu0 %vm499_vm2, %v6626_v23 }
 0xb6e   : > { %4957 = vmatmul.mubr.msk.f32.gmra.mxu0 %vm499_vm2, %v6635_v6 }
 0xb6f   : > { %3282 = vmatprep.mubr.bf16.mxu0 %v8138_v14 }
 0xc2a   : > { %v4955_v1 = vpop.f32.mrf.mxu0 }
 0xc2b   : > { %v2897_v44 = vadd.f32 1e-05, %v4955_v1 }
 0xc2c   : > { %v2891_v53 = vpop.f32.mrf.mxu0 }
 0xc2d   : > { %5249 = vrsqrt.f32 %v2897_v44  ;;  %v2892_v42 = vadd.f32 1e-05, %v2891_v53  ;;  %v5039_v44 = vld [vmem:[%s8000_s5] sm:$0xff]   ;;  %v5040_v53 = vld [vmem:[%s8000_s5 + $0x8] sm:$0xff]  }
 0xc2e   : > { %v4958_v24 = vpop.f32.mrf.mxu0 }
 0xc2f   : > { %5251 = vrsqrt.f32 %v2892_v42  ;;  %v2907_v26 = vadd.f32 1e-05, %v4958_v24  ;;  %v5041_v42 = vld [vmem:[%s8000_s5 + $0x10] sm:$0xff]   ;;  %v5042_v24 = vld [vmem:[%s8000_s5 + $0x18] sm:$0xff]  }
 0xc30   : > { %v2901_v12 = vpop.f32.mrf.mxu0 }
 0xc31   : > { %v2902_v30 = vadd.f32 1e-05, %v2901_v12  ;;  %5253 = vrsqrt.f32 %v2907_v26  ;;  %v5043_v26 = vld [vmem:[%s8000_s5 + $0x20] sm:$0xff]   ;;  %v5044_v12 = vld [vmem:[%s8000_s5 + $0x28] sm:$0xff]  }
 0xc33   : > { %5255 = vrsqrt.f32 %v2902_v30  ;;  %v5045_v30 = vld [vmem:[%s8000_s5 + $0x30] sm:$0xff]  }
 0xc3a   : > { %v5250_v41 = vpop.eup %5249 }
 0xc3b   : > { %2921 = vperm.xlu0 %5011, %v5250_v41   ;;  %v5046_v41 = vld [vmem:[%s8000_s5 + $0x38] sm:$0xff]  }
 0xc3c   : > { %v5252_v23 = vpop.eup %5251 }
 0xc3d   : > { %2916 = vperm.xlu1 %5012, %v5252_v23   ;;  %v5047_v23 = vld [vmem:[%s8000_s5 + $0x40] sm:$0xff]  }
 0xc3e   : > { %v5254_v34 = vpop.eup %5253 }
 0xc40   : > { %v5256_v6 = vpop.eup %5255 }
 0xc41   : > { %2926 = vperm.xlu0 %5011, %v5256_v6   ;;  %2931 = vperm.xlu1 %5012, %v5254_v34   ;;  %v5048_v34 = vld [vmem:[%s8000_s5 + $0x48] sm:$0xff]   ;;  %v5049_v6 = vld [vmem:[%s8000_s5 + $0x50] sm:$0xff]  }
 0xc45   : > { %2953 = vperm.xlu0 %5011, %v2943_v36   ;;  %2948 = vperm.xlu1 %5012, %v2942_v40   ;;  %v5050_v36 = vld [vmem:[%s8000_s5 + $0x58] sm:$0xff]   ;;  %v5051_v40 = vld [vmem:[%s8000_s5 + $0x60] sm:$0xff]  }
 0xc49   : > { %2985 = vperm.xlu0 %5011, %v2975_v0   ;;  %2980 = vperm.xlu1 %5012, %v2974_v21   ;;  %v5052_v0 = vld [vmem:[%s8000_s5 + $0x68] sm:$0xff]   ;;  %v5053_v21 = vld [vmem:[%s8000_s5 + $0x70] sm:$0xff]  }
 0xcb6   : > { %v2922_v55 = vpop.permute.xlu0 %2921 }
 0xcb7   : > { %v2936_v54 = vmul.f32 %v2922_v55, %v6765_v18  ;;  %v2937_v58 = vmul.f32 %v2922_v55, %v6769_v28 }
 0xcb8   : > { %v2917_v59 = vpop.permute.xlu1 %2916 }
 0xcb9   : > { %v2934_v50 = vmul.f32 %v2917_v59, %v6751_v9  ;;  %v2935_v5 = vmul.f32 %v2917_v59, %v6755_v2 }
 0xcbc   : > { %v2927_v45 = vpop.permute.xlu0 %2926  ;;  %v2932_v27 = vpop.permute.xlu1 %2931 }
 0xcbd   : > { %v2938_v31 = vmul.f32 %v2927_v45, %v6737_v22  ;;  %v2939_v15 = vmul.f32 %v2927_v45, %v6741_v4  ;;  %v2940_v8 = vmul.f32 %v2932_v27, %v6729_v16  ;;  %v2941_v49 = vmul.f32 %v2932_v27, %v6733_v19 }
 0xcbf   : > { %v2970_v46 = vmul.f32 %v2959_v10, %v2938_v31  ;;  %v2971_v20 = vmul.f32 %v2959_v10, %v2939_v15  ;;  %v2972_v37 = vmul.f32 %v2964_v57, %v2940_v8  ;;  %v2973_v51 = vmul.f32 %v2964_v57, %v2941_v49  ;;  %v5054_v10 = vld [vmem:[%s8000_s5 + $0x78] sm:$0xff]  }
 0xcc0   : > { %v2954_v56 = vpop.permute.xlu0 %2953  ;;  %v2949_v22 = vpop.permute.xlu1 %2948 }
 0xcc1   : > { %v3002_v62 = vadd.f32 %v2991_v3, %v2970_v46  ;;  %v3003_v4 = vadd.f32 %v2991_v3, %v2971_v20  ;;  %v3004_v52 = vadd.f32 %v2996_v7, %v2972_v37  ;;  %v3005_v16 = vadd.f32 %v2996_v7, %v2973_v51 }
 0xcc2   : > { %v2968_v48 = vmul.f32 %v2954_v56, %v2936_v54  ;;  %v2969_v19 = vmul.f32 %v2954_v56, %v2937_v58  ;;  %v2966_v32 = vmul.f32 %v2949_v22, %v2934_v50  ;;  %v2967_v29 = vmul.f32 %v2949_v22, %v2935_v5 }
 0xcc3   : > { %v3057_v17 = vpack.c.bf16 %v3005_v16, %v3003_v4  ;;  %v3056_v60 = vpack.c.bf16 %v3004_v52, %v3002_v62 }
 0xcc4   : > { %v2986_v47 = vpop.permute.xlu0 %2985  ;;  %v2981_v18 = vpop.permute.xlu1 %2980 }
 0xcc5   : > { %v3000_v38 = vadd.f32 %v2986_v47, %v2968_v48  ;;  %v3001_v28 = vadd.f32 %v2986_v47, %v2969_v19  ;;  %v2998_v39 = vadd.f32 %v2981_v18, %v2966_v32  ;;  %v2999_v9 = vadd.f32 %v2981_v18, %v2967_v29  ;;  %3262 = vmatprep.subr.bf16.mxu0 %v3057_v17 }
 0xcc6   : > { %3263 = vmatpush1.bf16.msra.mxu0 %v3056_v60 }
 0xcc7   : > { %v3054_v2 = vpack.c.bf16 %v3000_v38, %v2998_v39  ;;  %v3055_v1 = vpack.c.bf16 %v3001_v28, %v2999_v9 }
 0xcc9   : > { %3264 = vmatprep.subr.bf16.mxu0 %v3055_v1 }
 0xcca   : > { %3265 = vmatpush1.bf16.msra.mxu0 %v3054_v2 }
 0xccd   : > { %4792 = vmatmul.mubr.msk.bf16.vlgmr.msra.gmra.mxu0 %vm425_vm1, %v5039_v44 }
 0xcce   : > { %3292 = vmatprep.mubr.bf16.mxu0 %v8138_v14 }
 0xcd5   : > { %4793 = vmatmul.mubr.msk.bf16.gmra.mxu0 %vm425_vm1, %v5040_v53 }
 0xcd6   : > { %3302 = vmatprep.mubr.bf16.mxu0 %v8138_v14 }
 0xcdd   : > { %4794 = vmatmul.mubr.msk.bf16.gmra.mxu0 %vm425_vm1, %v5041_v42 }
 0xcde   : > { %3312 = vmatprep.mubr.bf16.mxu0 %v8138_v14 }
 0xce5   : > { %4795 = vmatmul.mubr.msk.bf16.gmra.mxu0 %vm425_vm1, %v5042_v24 }
 0xce6   : > { %3322 = vmatprep.mubr.bf16.mxu0 %v8138_v14 }
 0xced   : > { %4796 = vmatmul.mubr.msk.bf16.gmra.mxu0 %vm425_vm1, %v5043_v26 }
 0xcee   : > { %3332 = vmatprep.mubr.bf16.mxu0 %v8138_v14 }
 0xcf5   : > { %4797 = vmatmul.mubr.msk.bf16.gmra.mxu0 %vm425_vm1, %v5044_v12 }
 0xcf6   : > { %3342 = vmatprep.mubr.bf16.mxu0 %v8138_v14 }
 0xcfd   : > { %4798 = vmatmul.mubr.msk.bf16.gmra.mxu0 %vm425_vm1, %v5045_v30 }
 0xcfe   : > { %3352 = vmatprep.mubr.bf16.mxu0 %v8138_v14 }
 0xd05   : > { %4799 = vmatmul.mubr.msk.bf16.gmra.mxu0 %vm425_vm1, %v5046_v41 }
 0xd06   : > { %3362 = vmatprep.mubr.bf16.mxu0 %v8138_v14 }
 0xd0d   : > { %4800 = vmatmul.mubr.msk.bf16.gmra.mxu0 %vm425_vm1, %v5047_v23 }
 0xd0e   : > { %3372 = vmatprep.mubr.bf16.mxu0 %v8138_v14 }
 0xd15   : > { %4801 = vmatmul.mubr.msk.bf16.gmra.mxu0 %vm425_vm1, %v5048_v34 }
 0xd16   : > { %3382 = vmatprep.mubr.bf16.mxu0 %v8138_v14 }
 0xd1d   : > { %4802 = vmatmul.mubr.msk.bf16.gmra.mxu0 %vm425_vm1, %v5049_v6 }
 0xd1e   : > { %3392 = vmatprep.mubr.bf16.mxu0 %v8138_v14 }
 0xd25   : > { %4803 = vmatmul.mubr.msk.bf16.gmra.mxu0 %vm425_vm1, %v5050_v36 }
 0xd26   : > { %3402 = vmatprep.mubr.bf16.mxu0 %v8138_v14 }
 0xd2d   : > { %4804 = vmatmul.mubr.msk.bf16.gmra.mxu0 %vm425_vm1, %v5051_v40 }
 0xd2e   : > { %3412 = vmatprep.mubr.bf16.mxu0 %v8138_v14 }
 0xd35   : > { %4805 = vmatmul.mubr.msk.bf16.gmra.mxu0 %vm425_vm1, %v5052_v0 }
 0xd36   : > { %3422 = vmatprep.mubr.bf16.mxu0 %v8138_v14 }
 0xd3d   : > { %4806 = vmatmul.mubr.msk.bf16.gmra.mxu0 %vm425_vm1, %v5053_v21 }
 0xd3e   : > { %3432 = vmatprep.mubr.bf16.mxu0 %v8138_v14 }
 0xd45   : > { %4807 = vmatmul.mubr.msk.bf16.gmra.mxu0 %vm425_vm1, %v5054_v10 }
 0xd46   : > { %3442 = vmatprep.mubr.bf16.mxu0 %v8138_v14 }
 0xd8d   : > { %v3284_v57 = vpop.f32.mrf.mxu0 }
 0xd8f   : > { %v3286_v3 = vpop.f32.mrf.mxu0 }
 0xd91   : > { %v3288_v7 = vpop.f32.mrf.mxu0 }
 0xd92   : > { %v3523_v55 = vmax.f32 %v3284_v57, %v3288_v7 }
 0xd93   : > { %v3290_v59 = vpop.f32.mrf.mxu0 }
 0xd94   : > { %v3532_v45 = vmax.f32 %v3286_v3, %v3290_v59 }
 0xd95   : > { %v3294_v27 = vpop.f32.mrf.mxu0 }
 0xd96   : > { %v3524_v31 = vmax.f32 %v3523_v55, %v3294_v27 }
 0xd97   : > { %v3296_v15 = vpop.f32.mrf.mxu0 }
 0xd98   : > { %v3533_v8 = vmax.f32 %v3532_v45, %v3296_v15 }
 0xd99   : > { %v3298_v49 = vpop.f32.mrf.mxu0 }
 0xd9a   : > { %v3525_v46 = vmax.f32 %v3524_v31, %v3298_v49 }
 0xd9b   : > { %v3300_v20 = vpop.f32.mrf.mxu0 }
 0xd9c   : > { %v3526_v37 = vrot.slane %v3525_v46, 4  ;;  %v3534_v51 = vmax.f32 %v3533_v8, %v3300_v20 }
 0xd9d   : > { %v6943_v54 = vpop.f32.mrf.mxu0 }
 0xd9e   : > { %v3527_v58 = vmax.f32 %v3525_v46, %v3526_v37  ;;  %v3535_v50 = vrot.slane %v3534_v51, 4 }
 0xd9f   : > { %v6945_v5 = vpop.f32.mrf.mxu0 }
 0xda0   : > { %v3528_v56 = vrot.slane %v3527_v58, 2  ;;  %v3536_v22 = vmax.f32 %v3534_v51, %v3535_v50 }
 0xda1   : > { %v6947_v62 = vpop.f32.mrf.mxu0 }
 0xda2   : > { %v3529_v4 = vmax.f32 %v3527_v58, %v3528_v56  ;;  %v3537_v52 = vrot.slane %v3536_v22, 2  ;;  %v3541_v16 = vmax.f32 %v6943_v54, %v6947_v62 }
 0xda3   : > { %v6951_v48 = vpop.f32.mrf.mxu0 }
 0xda4   : > { %v3530_v19 = vrot.slane %v3529_v4, 1  ;;  %v3538_v32 = vmax.f32 %v3536_v22, %v3537_v52  ;;  %v3550_v29 = vmax.f32 %v6945_v5, %v6951_v48 }
 0xda5   : > { %v6955_v17 = vpop.f32.mrf.mxu0 }
 0xda6   : > { %v3531_v60 = vmax.f32 %v3529_v4, %v3530_v19  ;;  %v3539_v47 = vrot.slane %v3538_v32, 1  ;;  %v3542_v18 = vmax.f32 %v3541_v16, %v6955_v17 }
 0xda7   : > { %v6958_v38 = vpop.f32.mrf.mxu0 }
 0xda8   : > { %v3595_v28 = vsub.f32 %v3284_v57, %v3531_v60  ;;  %v3597_v39 = vsub.f32 %v3288_v7, %v3531_v60  ;;  %v3599_v9 = vsub.f32 %v3294_v27, %v3531_v60  ;;  %v3601_v2 = vsub.f32 %v3298_v49, %v3531_v60 }
 0xda9   : > { %v3540_v1 = vmax.f32 %v3538_v32, %v3539_v47  ;;  %v3551_v44 = vmax.f32 %v3550_v29, %v6958_v38  ;;  %v3318_v53 = vpop.f32.mrf.mxu0 }
 0xdaa   : > { %v3627_v42 = vmul.f32 1.442695, %v3595_v28  ;;  %v3631_v24 = vmul.f32 1.442695, %v3597_v39  ;;  %v3635_v26 = vmul.f32 1.442695, %v3599_v9  ;;  %v3543_v12 = vmax.f32 %v3542_v18, %v3318_v53 }
 0xdab   : > { %v3639_v30 = vmul.f32 1.442695, %v3601_v2  ;;  %v3596_v41 = vsub.f32 %v3286_v3, %v3540_v1  ;;  %v3598_v23 = vsub.f32 %v3290_v59, %v3540_v1  ;;  %v3600_v34 = vsub.f32 %v3296_v15, %v3540_v1  ;;  %v6961_v6 = vpop.f32.mrf.mxu0 }
 0xdac   : > { %5257 = vpow2.f32 %v3627_v42  ;;  %v3602_v36 = vsub.f32 %v3300_v20, %v3540_v1  ;;  %v3544_v40 = vrot.slane %v3543_v12, 4  ;;  %v3552_v0 = vmax.f32 %v3551_v44, %v6961_v6 }
 0xdad   : > { %5259 = vpow2.f32 %v3631_v24  ;;  %v3629_v21 = vmul.f32 1.442695, %v3596_v41  ;;  %v3633_v10 = vmul.f32 1.442695, %v3598_v23  ;;  %v6964_v57 = vpop.f32.mrf.mxu0  ;;  %v3637_v45 = vmul.f32 1.442695, %v3600_v34 }
 0xdae   : > { %5261 = vpow2.f32 %v3635_v26  ;;  %v3545_v7 = vmax.f32 %v3543_v12, %v3544_v40  ;;  %v3553_v55 = vrot.slane %v3552_v0, 4  ;;  %v3641_v31 = vmul.f32 1.442695, %v3602_v36 }
 0xdaf   : > { %5263 = vpow2.f32 %v3639_v30  ;;  %v6966_v3 = vpop.f32.mrf.mxu0 }
 0xdb0   : > { %5265 = vpow2.f32 %v3629_v21  ;;  %v3546_v59 = vrot.slane %v3545_v7, 2  ;;  %v3554_v27 = vmax.f32 %v3552_v0, %v3553_v55 }
 0xdb1   : > { %5267 = vpow2.f32 %v3633_v10  ;;  %v6968_v15 = vpop.f32.mrf.mxu0 }
 0xdb2   : > { %v3547_v8 = vmax.f32 %v3545_v7, %v3546_v59  ;;  %v3555_v49 = vrot.slane %v3554_v27, 2  ;;  %v3559_v46 = vmax.f32 %v6964_v57, %v6968_v15  ;;  %5269 = vpow2.f32 %v3637_v45 }
 0xdb3   : > { %v6972_v20 = vpop.f32.mrf.mxu0  ;;  %5271 = vpow2.f32 %v3641_v31 }
 0xdb4   : > { %v3548_v37 = vrot.slane %v3547_v8, 1  ;;  %v3556_v51 = vmax.f32 %v3554_v27, %v3555_v49  ;;  %v3568_v58 = vmax.f32 %v6966_v3, %v6972_v20 }
 0xdb5   : > { %v6976_v50 = vpop.f32.mrf.mxu0 }
 0xdb6   : > { %v3549_v56 = vmax.f32 %v3547_v8, %v3548_v37  ;;  %v3557_v22 = vrot.slane %v3556_v51, 1  ;;  %v3560_v4 = vmax.f32 %v3559_v46, %v6976_v50 }
 0xdb7   : > { %v6979_v52 = vpop.f32.mrf.mxu0 }
 0xdb8   : > { %v3603_v16 = vsub.f32 %v6943_v54, %v3549_v56  ;;  %v3605_v19 = vsub.f32 %v6947_v62, %v3549_v56  ;;  %v3607_v32 = vsub.f32 %v6955_v17, %v3549_v56  ;;  %v3609_v29 = vsub.f32 %v3318_v53, %v3549_v56 }
 0xdb9   : > { %v6984_v60 = vpop.eup %5257  ;;  %v3558_v47 = vmax.f32 %v3556_v51, %v3557_v22  ;;  %v3569_v18 = vmax.f32 %v3568_v58, %v6979_v52  ;;  %v6987_v28 = vpop.f32.mrf.mxu0 }
 0xdba   : > { %v6989_v39 = vpop.eup %5259  ;;  %v3643_v9 = vmul.f32 1.442695, %v3603_v16  ;;  %v3647_v2 = vmul.f32 1.442695, %v3605_v19  ;;  %v3651_v1 = vmul.f32 1.442695, %v3607_v32  ;;  %v3561_v44 = vmax.f32 %v3560_v4, %v6987_v28 }
 0xdbb   : > { %v6992_v54 = vpop.eup %5261  ;;  %v3691_v62 = vadd.f32 %v6989_v39, %v6984_v60  ;;  %v3655_v17 = vmul.f32 1.442695, %v3609_v29  ;;  %v3604_v53 = vsub.f32 %v6945_v5, %v3558_v47  ;;  %v3606_v42 = vsub.f32 %v6951_v48, %v3558_v47  ;;  %v6998_v24 = vpop.f32.mrf.mxu0 }
 0xdbc   : > { %v7000_v26 = vpop.eup %5263  ;;  %5273 = vpow2.f32 %v3643_v9  ;;  %v3608_v12 = vsub.f32 %v6958_v38, %v3558_v47  ;;  %v3610_v30 = vsub.f32 %v6961_v6, %v3558_v47  ;;  %v3562_v41 = vrot.slane %v3561_v44, 4 }
 0xdbd   : > { %v7004_v23 = vpop.eup %5265  ;;  %v3692_v34 = vadd.f32 %v6992_v54, %v3691_v62  ;;  %5275 = vpow2.f32 %v3647_v2  ;;  %v3645_v36 = vmul.f32 1.442695, %v3604_v53  ;;  %v3649_v40 = vmul.f32 1.442695, %v3606_v42  ;;  %v7007_v5 = vpop.f32.mrf.mxu0 }
 0xdbe   : > { %v7009_v48 = vpop.eup %5267  ;;  %5277 = vpow2.f32 %v3651_v1  ;;  %v3653_v0 = vmul.f32 1.442695, %v3608_v12  ;;  %v3563_v21 = vmax.f32 %v3561_v44, %v3562_v41  ;;  %v3570_v6 = vmax.f32 %v3569_v18, %v6998_v24 }
 0xdbf   : > { %v3693_v10 = vadd.f32 %v7000_v26, %v3692_v34  ;;  %v3700_v38 = vadd.f32 %v7009_v48, %v7004_v23  ;;  %5279 = vpow2.f32 %v3655_v17  ;;  %v7015_v7 = vpop.f32.mrf.mxu0  ;;  %v7017_v55 = vpop.eup %5269  ;;  %v3657_v45 = vmul.f32 1.442695, %v3610_v30 }
 0xdc0   : > { %5281 = vpow2.f32 %v3645_v36  ;;  %v3564_v59 = vrot.slane %v3563_v21, 2  ;;  %v3571_v8 = vrot.slane %v3570_v6, 4  ;;  %v7022_v46 = vpop.eup %5271 }
 0xdc1   : > { %v3694_v27 = vrot.slane %v3693_v10, 4  ;;  %v3701_v31 = vadd.f32 %v7017_v55, %v3700_v38  ;;  %5283 = vpow2.f32 %v3649_v40  ;;  %v7020_v49 = vpop.f32.mrf.mxu0 }
 0xdc2   : > { %v3565_v37 = vmax.f32 %v3563_v21, %v3564_v59  ;;  %v3577_v51 = vmax.f32 %v7007_v5, %v7020_v49  ;;  %5285 = vpow2.f32 %v3653_v0  ;;  %v3572_v22 = vmax.f32 %v3570_v6, %v3571_v8 }
 0xdc3   : > { %v3695_v58 = vadd.f32 %v3694_v27, %v3693_v10  ;;  %v3702_v56 = vadd.f32 %v7022_v46, %v3701_v31  ;;  %v7027_v4 = vpop.f32.mrf.mxu0  ;;  %5287 = vpow2.f32 %v3657_v45 }
 0xdc4   : > { %v3566_v16 = vrot.slane %v3565_v37, 1  ;;  %v3586_v19 = vmax.f32 %v7015_v7, %v7027_v4  ;;  %v3573_v47 = vrot.slane %v3572_v22, 2 }
 0xdc5   : > { %v3696_v32 = vrot.slane %v3695_v58, 2  ;;  %v3703_v29 = vrot.slane %v3702_v56, 4  ;;  %v7031_v18 = vpop.f32.mrf.mxu0 }
 0xdc6   : > { %v3567_v9 = vmax.f32 %v3565_v37, %v3566_v16  ;;  %v3578_v2 = vmax.f32 %v3577_v51, %v7031_v18  ;;  %v3574_v62 = vmax.f32 %v3572_v22, %v3573_v47 }
 0xdc7   : > { %v3697_v1 = vadd.f32 %v3696_v32, %v3695_v58  ;;  %v3704_v44 = vadd.f32 %v3703_v29, %v3702_v56  ;;  %v7034_v17 = vpop.f32.mrf.mxu0 }
 0xdc8   : > { %v3611_v53 = vsub.f32 %v6964_v57, %v3567_v9  ;;  %v3613_v42 = vsub.f32 %v6968_v15, %v3567_v9  ;;  %v3615_v12 = vsub.f32 %v6976_v50, %v3567_v9  ;;  %v3617_v30 = vsub.f32 %v6987_v28, %v3567_v9 }
 0xdc9   : > { %v7040_v41 = vpop.eup %5273  ;;  %v3698_v34 = vrot.slane %v3697_v1, 1  ;;  %v3705_v36 = vrot.slane %v3704_v44, 2  ;;  %v3575_v40 = vrot.slane %v3574_v62, 1  ;;  %v3587_v0 = vmax.f32 %v3586_v19, %v7034_v17  ;;  %v7043_v21 = vpop.f32.mrf.mxu0 }
 0xdca   : > { %v7045_v10 = vpop.eup %5275  ;;  %v3659_v38 = vmul.f32 1.442695, %v3611_v53  ;;  %v3663_v6 = vmul.f32 1.442695, %v3613_v42  ;;  %v3579_v57 = vmax.f32 %v3578_v2, %v7043_v21  ;;  %v3667_v59 = vmul.f32 1.442695, %v3615_v12 }
 0xdcb   : > { %v7048_v15 = vpop.eup %5277  ;;  %v3699_v50 = vadd.f32 %v3698_v34, %v3697_v1  ;;  %v3706_v45 = vadd.f32 %v3705_v36, %v3704_v44  ;;  %v3709_v28 = vadd.f32 %v7045_v10, %v7040_v41  ;;  %v7052_v27 = vpop.f32.mrf.mxu0  ;;  %v3671_v8 = vmul.f32 1.442695, %v3617_v30 }
 0xdcc   : > { %v7054_v31 = vpop.eup %5279  ;;  %5289 = vpow2.f32 %v3659_v38  ;;  %v3576_v37 = vmax.f32 %v3574_v62, %v3575_v40  ;;  %v3588_v51 = vmax.f32 %v3587_v0, %v7052_v27  ;;  %v3580_v16 = vrot.slane %v3579_v57, 4 }
 0xdcd   : > { %v7057_v58 = vpop.eup %5281  ;;  %5291 = vrcp.f32 %v3699_v50  ;;  %v3707_v56 = vrot.slane %v3706_v45, 1  ;;  %v3710_v22 = vadd.f32 %v7048_v15, %v3709_v28  ;;  %v7060_v19 = vpop.f32.mrf.mxu0 }
 0xdce   : > { %v7062_v32 = vpop.eup %5283  ;;  %5293 = vpow2.f32 %v3663_v6  ;;  %v3612_v29 = vsub.f32 %v6966_v3, %v3576_v37  ;;  %v3614_v47 = vsub.f32 %v6972_v20, %v3576_v37  ;;  %v3616_v9 = vsub.f32 %v6979_v52, %v3576_v37 }
 0xdcf   : > { %v3708_v2 = vadd.f32 %v3707_v56, %v3706_v45  ;;  %v3711_v1 = vadd.f32 %v7054_v31, %v3710_v22  ;;  %v3718_v44 = vadd.f32 %v7062_v32, %v7057_v58  ;;  %v7070_v62 = vpop.f32.mrf.mxu0  ;;  %v7072_v53 = vpop.eup %5285  ;;  %5295 = vpow2.f32 %v3667_v59 }
 0xdd0   : > { %v3618_v42 = vsub.f32 %v6998_v24, %v3576_v37  ;;  %v3661_v12 = vmul.f32 1.442695, %v3612_v29  ;;  %v3665_v30 = vmul.f32 1.442695, %v3614_v47  ;;  %5297 = vpow2.f32 %v3671_v8  ;;  %v7078_v36 = vpop.eup %5287 }
 0xdd1   : > { %v3712_v3 = vrot.slane %v3711_v1, 4  ;;  %v3719_v20 = vadd.f32 %v7072_v53, %v3718_v44  ;;  %v3669_v52 = vmul.f32 1.442695, %v3616_v9  ;;  %v7076_v34 = vpop.f32.mrf.mxu0  ;;  %v3581_v40 = vmax.f32 %v3579_v57, %v3580_v16 }
 0xdd2   : > { %5299 = vpow2.f32 %v3661_v12  ;;  %v3589_v0 = vrot.slane %v3588_v51, 4  ;;  %v3673_v50 = vmul.f32 1.442695, %v3618_v42 }
 0xdd3   : > { %v3713_v38 = vadd.f32 %v3712_v3, %v3711_v1  ;;  %v3720_v6 = vadd.f32 %v7078_v36, %v3719_v20  ;;  %5301 = vpow2.f32 %v3665_v30  ;;  %v7081_v24 = vpop.f32.mrf.mxu0  ;;  %v3582_v45 = vrot.slane %v3581_v40, 2 }
 0xdd4   : > { %5303 = vrcp.f32 %v3708_v2  ;;  %v3590_v28 = vmax.f32 %v3588_v51, %v3589_v0 }
 0xdd5   : > { %v3714_v59 = vrot.slane %v3713_v38, 2  ;;  %v3721_v8 = vrot.slane %v3720_v6, 4  ;;  %5305 = vpow2.f32 %v3669_v52  ;;  %v7083_v37 = vpop.f32.mrf.mxu0  ;;  %v3583_v56 = vmax.f32 %v3581_v40, %v3582_v45 }
 0xdd6   : > { %v3591_v22 = vrot.slane %v3590_v28, 2  ;;  %5307 = vpow2.f32 %v3673_v50 }
 0xdd7   : > { %v3715_v29 = vadd.f32 %v3714_v59, %v3713_v38  ;;  %v3722_v57 = vadd.f32 %v3721_v8, %v3720_v6  ;;  %v7085_v16 = vpop.f32.mrf.mxu0  ;;  %v3584_v47 = vrot.slane %v3583_v56, 1 }
 0xdd8   : > { %v3592_v9 = vmax.f32 %v3590_v28, %v3591_v22 }
 0xdd9   : > { %v7087_v1 = vpop.eup %5289  ;;  %v3716_v44 = vrot.slane %v3715_v29, 1  ;;  %v3723_v2 = vrot.slane %v3722_v57, 2  ;;  %v7089_v42 = vpop.f32.mrf.mxu0  ;;  %v3585_v12 = vmax.f32 %v3583_v56, %v3584_v47 }
 0xdda   : > { %v7091_v51 = vpop.eup %5291  ;;  %v3593_v30 = vrot.slane %v3592_v9, 1 }
 0xddb   : > { %v7093_v3 = vpop.eup %5293  ;;  %v3717_v20 = vadd.f32 %v3716_v44, %v3715_v29  ;;  %v3724_v52 = vadd.f32 %v3723_v2, %v3722_v57  ;;  %v7095_v40 = vpop.f32.mrf.mxu0  ;;  %v7099_v0 = vmul.f32 %v7091_v51, %v6992_v54  ;;  %v7103_v38 = vmul.f32 %v7091_v51, %v7000_v26 }
 0xddc   : > { %v3727_v6 = vadd.f32 %v7093_v3, %v7087_v1  ;;  %v3619_v50 = vsub.f32 %v7007_v5, %v3585_v12  ;;  %v3621_v45 = vsub.f32 %v7020_v49, %v3585_v12  ;;  %v3623_v28 = vsub.f32 %v7031_v18, %v3585_v12  ;;  %v7110_v59 = vpop.eup %5295 }
 0xddd   : > { %8152 = vst [vmem:[#allocation22_spill] sm:$0xff] %v7099_v0  ;;  %8153 = vst [vmem:[#allocation21_spill] sm:$0xff] %v7103_v38  ;;  %5309 = vrcp.f32 %v3717_v20  ;;  %v3725_v8 = vrot.slane %v3724_v52, 1  ;;  %v3625_v54 = vsub.f32 %v7043_v21, %v3585_v12  ;;  %v3594_v56 = vmax.f32 %v3592_v9, %v3593_v30  ;;  %v7113_v22 = vpop.f32.mrf.mxu0  ;;  %v7115_v26 = vpop.eup %5297 }
 0xdde   : > { %v3728_v29 = vadd.f32 %v7110_v59, %v3727_v6  ;;  %v3675_v57 = vmul.f32 1.442695, %v3619_v50  ;;  %v3679_v47 = vmul.f32 1.442695, %v3621_v45  ;;  %v3683_v5 = vmul.f32 1.442695, %v3623_v28 }
 0xddf   : > { %v7118_v44 = vpop.eup %5299  ;;  %v3726_v49 = vadd.f32 %v3725_v8, %v3724_v52  ;;  %v3687_v18 = vmul.f32 1.442695, %v3625_v54  ;;  %v3620_v2 = vsub.f32 %v7015_v7, %v3594_v56  ;;  %v3622_v20 = vsub.f32 %v7027_v4, %v3594_v56  ;;  %v7122_v43 = vpop.f32.mrf.mxu0 }
 0xde0   : > { %v7124_v21 = vpop.eup %5301  ;;  %v3729_v9 = vadd.f32 %v7115_v26, %v3728_v29  ;;  %5311 = vpow2.f32 %v3675_v57  ;;  %v3624_v12 = vsub.f32 %v7034_v17, %v3594_v56  ;;  %v3626_v30 = vsub.f32 %v7052_v27, %v3594_v56 }
 0xde1   : > { %v5304_v6 = vpop.eup %5303  ;;  %5313 = vrcp.f32 %v3726_v49  ;;  %v3736_v52 = vadd.f32 %v7124_v21, %v7118_v44  ;;  %v3677_v50 = vmul.f32 1.442695, %v3620_v2  ;;  %v7131_v7 = vpop.f32.mrf.mxu0  ;;  %v3681_v28 = vmul.f32 1.442695, %v3622_v20 }
 0xde2   : > { %v7133_v4 = vpop.eup %5305  ;;  %v3730_v45 = vrot.slane %v3729_v9, 4  ;;  %5315 = vpow2.f32 %v3679_v47  ;;  %v3685_v54 = vmul.f32 1.442695, %v3624_v12  ;;  %v3689_v29 = vmul.f32 1.442695, %v3626_v30 }
 0xde3   : > { %v3737_v8 = vadd.f32 %v7133_v4, %v3736_v52  ;;  %5317 = vpow2.f32 %v3683_v5  ;;  %v7136_v17 = vpop.f32.mrf.mxu0  ;;  %v7138_v27 = vpop.eup %5307  ;;  %v7141_v57 = vmul.f32 %v5304_v6, %v7017_v55  ;;  %v7147_v47 = vmul.f32 %v5304_v6, %v7022_v46 }
 0xde4   : > { %v3731_v56 = vadd.f32 %v3730_v45, %v3729_v9  ;;  %5319 = vpow2.f32 %v3687_v18  ;;  %v7152_v9 = vmul.f32 %v5304_v6, %v7004_v23  ;;  %v7155_v18 = vmul.f32 %v5304_v6, %v7009_v48 }
 0xde5   : > { %8154 = vst [vmem:[#allocation18_spill] sm:$0xff] %v7141_v57  ;;  %v3738_v49 = vadd.f32 %v7138_v27, %v3737_v8  ;;  %5321 = vpow2.f32 %v3677_v50  ;;  %v7144_v2 = vpop.f32.mrf.mxu0  ;;  %8155 = vst [vmem:[#allocation17_spill] sm:$0xff] %v7147_v47  ;;  %v7163_v46 = vmul.f32 %v7091_v51, %v6984_v60  ;;  %v7171_v48 = vmul.f32 %v7091_v51, %v6989_v39 }
 0xde6   : > { %v3732_v20 = vrot.slane %v3731_v56, 2  ;;  %5323 = vpow2.f32 %v3681_v28  ;;  %8156 = vst [vmem:[#allocation14_spill] sm:$0xff] %v7152_v9  ;;  %8157 = vst [vmem:[#allocation13_spill] sm:$0xff] %v7155_v18 }
 0xde7   : > { %v3739_v55 = vrot.slane %v3738_v49, 4  ;;  %v7157_v12 = vpop.f32.mrf.mxu0  ;;  %8158 = vst [vmem:[#allocation20_spill] sm:$0xff] %v7163_v46  ;;  %5325 = vpow2.f32 %v3685_v54  ;;  %8159 = vst [vmem:[#allocation19_spill] sm:$0xff] %v7171_v48 }
 0xde8   : > { %v3733_v52 = vadd.f32 %v3732_v20, %v3731_v56  ;;  %5327 = vpow2.f32 %v3689_v29 }
 0xde9   : > { %v3740_v23 = vadd.f32 %v3739_v55, %v3738_v49  ;;  %v7167_v45 = vpop.f32.mrf.mxu0 }
 0xdea   : > { %v5310_v6 = vpop.eup %5309  ;;  %v3734_v28 = vrot.slane %v3733_v52, 1 }
 0xdeb   : > { %v3741_v8 = vrot.slane %v3740_v23, 2  ;;  %v7173_v5 = vpop.f32.mrf.mxu0  ;;  %v7176_v60 = vmul.f32 %v5310_v6, %v7048_v15  ;;  %v7179_v54 = vmul.f32 %v5310_v6, %v7054_v31  ;;  %v7182_v56 = vmul.f32 %v5310_v6, %v7040_v41 }
 0xdec   : > { %v3735_v49 = vadd.f32 %v3734_v28, %v3733_v52  ;;  %v7185_v20 = vmul.f32 %v5310_v6, %v7045_v10 }
 0xded   : > { %8160 = vst [vmem:[#allocation16_spill] sm:$0xff] %v7176_v60  ;;  %8161 = vst [vmem:[#allocation15_spill] sm:$0xff] %v7179_v54  ;;  %v7189_v51 = vpop.eup %5311  ;;  %v3742_v29 = vadd.f32 %v3741_v8, %v3740_v23  ;;  %v7191_v55 = vpop.f32.mrf.mxu0 }
 0xdee   : > { %8162 = vst [vmem:[#allocation8_spill] sm:$0xff] %v7182_v56  ;;  %8163 = vst [vmem:[#allocation7_spill] sm:$0xff] %v7185_v20  ;;  %v5314_v31 = vpop.eup %5313  ;;  %5329 = vrcp.f32 %v3735_v49 }
 0xdef   : > { %v7197_v52 = vpop.eup %5315  ;;  %v3743_v10 = vrot.slane %v3742_v29, 1  ;;  %v7199_v6 = vpop.f32.mrf.mxu0  ;;  %v7202_v28 = vmul.f32 %v5314_v31, %v7072_v53  ;;  %v7205_v23 = vmul.f32 %v5314_v31, %v7078_v36  ;;  %v7208_v8 = vmul.f32 %v5314_v31, %v7057_v58 }
 0xdf0   : > { %v7210_v39 = vpop.eup %5317  ;;  %v3745_v49 = vadd.f32 %v7197_v52, %v7189_v51  ;;  %v7215_v50 = vmul.f32 %v5314_v31, %v7062_v32 }
 0xdf1   : > { %8164 = vst [vmem:[#allocation6_spill] sm:$0xff] %v7202_v28  ;;  %8165 = vst [vmem:[#allocation5_spill] sm:$0xff] %v7205_v23  ;;  %v7217_v30 = vpop.eup %5319  ;;  %v3744_v41 = vadd.f32 %v3743_v10, %v3742_v29  ;;  %v7219_v15 = vpop.f32.mrf.mxu0 }
 0xdf2   : > { %8166 = vst [vmem:[#allocation10_spill] sm:$0xff] %v7208_v8  ;;  %8167 = vst [vmem:[#allocation9_spill] sm:$0xff] %v7215_v50  ;;  %v7223_v36 = vpop.eup %5321  ;;  %v3746_v58 = vadd.f32 %v7210_v39, %v3745_v49 }
 0xdf3   : > { %v7228_v48 = vpop.eup %5323  ;;  %5331 = vrcp.f32 %v3744_v41  ;;  %v7230_v32 = vpop.f32.mrf.mxu0 }
 0xdf4   : > { %v3747_v31 = vadd.f32 %v7217_v30, %v3746_v58  ;;  %v3754_v29 = vadd.f32 %v7228_v48, %v7223_v36  ;;  %v7235_v10 = vpop.eup %5325 }
 0xdf5   : > { %v7237_v53 = vpop.f32.mrf.mxu0  ;;  %v5328_v18 = vpop.eup %5327 }
 0xdf6   : > { %v3748_v9 = vrot.slane %v3747_v31, 4  ;;  %v3755_v49 = vadd.f32 %v7235_v10, %v3754_v29 }
 0xdf7   : > { %v7240_v0 = vpop.f32.mrf.mxu0 }
 0xdf8   : > { %v3749_v46 = vadd.f32 %v3748_v9, %v3747_v31  ;;  %v3756_v38 = vadd.f32 %v5328_v18, %v3755_v49 }
 0xdf9   : > { %v7242_v41 = vpop.f32.mrf.mxu0 }
 0xdfa   : > { %v3750_v57 = vrot.slane %v3749_v46, 2  ;;  %v3757_v47 = vrot.slane %v3756_v38, 4 }
 0xdfb   : > { %v5330_v58 = vpop.eup %5329  ;;  %v7244_v56 = vpop.f32.mrf.mxu0 }
 0xdfc   : > { %v3751_v20 = vadd.f32 %v3750_v57, %v3749_v46  ;;  %v3758_v8 = vadd.f32 %v3757_v47, %v3756_v38  ;;  %v7247_v50 = vmul.f32 %v5330_v58, %v7110_v59  ;;  %v7252_v29 = vmul.f32 %v5330_v58, %v7115_v26 }
 0xdfd   : > { %v7249_v60 = vpop.f32.mrf.mxu0  ;;  %v7255_v9 = vmul.f32 %v5330_v58, %v7087_v1  ;;  %v7258_v31 = vmul.f32 %v5330_v58, %v7093_v3 }
 0xdfe   : > { %8168 = vst [vmem:[#allocation12_spill] sm:$0xff] %v7247_v50  ;;  %8169 = vst [vmem:[#allocation11_spill] sm:$0xff] %v7252_v29  ;;  %v3752_v49 = vrot.slane %v3751_v20, 1  ;;  %v3759_v54 = vrot.slane %v3758_v8, 2 }
 0xdff   : > { %8170 = vst [vmem:[#allocation24_spill] sm:$0xff] %v7255_v9  ;;  %8171 = vst [vmem:[#allocation25_spill] sm:$0xff] %v7258_v31  ;;  %v7260_v28 = vpop.f32.mrf.mxu0 }
 0xe00   : > { %v5332_v57 = vpop.eup %5331  ;;  %v3753_v47 = vadd.f32 %v3752_v49, %v3751_v20  ;;  %v3760_v26 = vadd.f32 %v3759_v54, %v3758_v8 }
 0xe01   : > { %v7266_v46 = vpop.f32.mrf.mxu0  ;;  %v7269_v1 = vmul.f32 %v5332_v57, %v7133_v4  ;;  %v7272_v3 = vmul.f32 %v5332_v57, %v7138_v27  ;;  %v7275_v58 = vmul.f32 %v5332_v57, %v7118_v44  ;;  %v7278_v23 = vmul.f32 %v5332_v57, %v7124_v21 }
 0xe02   : > { %5333 = vrcp.f32 %v3753_v47  ;;  %v3761_v38 = vrot.slane %v3760_v26, 1 }
 0xe03   : > { %8172 = vst [vmem:[#allocation27_spill] sm:$0xff] %v7269_v1  ;;  %8173 = vst [vmem:[#allocation26_spill] sm:$0xff] %v7272_v3  ;;  %v7280_v59 = vpop.f32.mrf.mxu0 }
 0xe04   : > { %8174 = vst [vmem:[#allocation28_spill] sm:$0xff] %v7275_v58  ;;  %8175 = vst [vmem:[#allocation29_spill] sm:$0xff] %v7278_v23  ;;  %v3762_v20 = vadd.f32 %v3761_v38, %v3760_v26  ;;  %v3842_v57 = vmax.f32 %v7266_v46, %v7280_v59  ;;  %v3836_v26 = vmax.f32 %v7242_v41, %v7244_v56 }
 0xe05   : > { %v7286_v8 = vpop.f32.mrf.mxu0 }
 0xe06   : > { %5335 = vrcp.f32 %v3762_v20  ;;  %v3839_v20 = vmax.f32 %v7249_v60, %v7260_v28 }
 0xe07   : > { %v7288_v27 = vpop.f32.mrf.mxu0 }
 0xe08   : > { %v3845_v44 = vmax.f32 %v7286_v8, %v7288_v27 }
 0xe09   : > { %v7292_v21 = vpop.f32.mrf.mxu0 }
 0xe0a   : > { %3846 = vmax.xlane.f32.xlu1 %v3845_v44 }
 0xe0b   : > { %v7294_v49 = vpop.f32.mrf.mxu0 }
 0xe0c   : > { %v3848_v47 = vmax.f32 %v7292_v21, %v7294_v49 }
 0xe0e   : > { %3843 = vmax.xlane.f32.xlu1 %v3842_v57  ;;  %3849 = vmax.xlane.f32.xlu0 %v3848_v47 }
 0xe0f   : > { %v5334_v38 = vpop.eup %5333 }
 0xe10   : > { %v7305_v4 = vmul.f32 %v5334_v38, %v7210_v39  ;;  %v7308_v44 = vmul.f32 %v5334_v38, %v7217_v30  ;;  %v7311_v54 = vmul.f32 %v5334_v38, %v7189_v51  ;;  %v7314_v9 = vmul.f32 %v5334_v38, %v7197_v52 }
 0xe11   : > { %v3830_v39 = vmax.f32 %v7219_v15, %v7230_v32  ;;  %v3833_v30 = vmax.f32 %v7237_v53, %v7240_v0 }
 0xe12   : > { %8176 = vst [vmem:[#allocation30_spill] sm:$0xff] %v7311_v54  ;;  %3837 = vmax.xlane.f32.xlu1 %v3836_v26  ;;  %3840 = vmax.xlane.f32.xlu0 %v3839_v20 }
 0xe13   : > { %v5336_v31 = vpop.eup %5335 }
 0xe14   : > { %v7325_v51 = vmul.f32 %v5336_v31, %v7235_v10  ;;  %v7327_v52 = vmul.f32 %v5336_v31, %v5328_v18  ;;  %v7330_v38 = vmul.f32 %v5336_v31, %v7223_v36  ;;  %v7333_v26 = vmul.f32 %v5336_v31, %v7228_v48 }
 0xe15   : > { %v3824_v10 = vmax.f32 %v7167_v45, %v7173_v5  ;;  %v3827_v18 = vmax.f32 %v7191_v55, %v7199_v6  ;;  %v3818_v48 = vmax.f32 %v7131_v7, %v7136_v17  ;;  %v3821_v36 = vmax.f32 %v7144_v2, %v7157_v12 }
 0xe16   : > { %3831 = vmax.xlane.f32.xlu1 %v3830_v39  ;;  %3834 = vmax.xlane.f32.xlu0 %v3833_v30  ;;  %v3812_v31 = vmax.f32 %v7089_v42, %v7095_v40  ;;  %v3815_v39 = vmax.f32 %v7113_v22, %v7122_v43  ;;  %v3806_v30 = vmax.f32 %v7076_v34, %v7081_v24 }
 0xe1a   : > { %3825 = vmax.xlane.f32.xlu1 %v3824_v10  ;;  %3828 = vmax.xlane.f32.xlu0 %v3827_v18  ;;  %v3809_v10 = vmax.f32 %v7083_v37, %v7085_v16  ;;  %v3803_v18 = vmax.f32 %v7060_v19, %v7070_v62 }
 0xe1e   : > { %3819 = vmax.xlane.f32.xlu1 %v3818_v48  ;;  %3822 = vmax.xlane.f32.xlu0 %v3821_v36  ;;  %v5055_v48 = vld [vmem:[%s8000_s5 + $0x80] sm:$0xff]   ;;  %v5056_v36 = vld [vmem:[%s8000_s5 + $0x88] sm:$0xff]  }
 0xe1f   : > { %4808 = vmatmul.mubr.msk.bf16.gmra.mxu0 %vm425_vm1, %v5055_v48  ;;  %v5062_v48 = vld [vmem:[%s8000_s5 + $0xb8] sm:$0xff]  }
 0xe20   : > { %3452 = vmatprep.mubr.bf16.mxu0 %v8138_v14 }
 0xe22   : > { %3813 = vmax.xlane.f32.xlu1 %v3812_v31  ;;  %3816 = vmax.xlane.f32.xlu0 %v3815_v39  ;;  %v5057_v31 = vld [vmem:[%s8000_s5 + $0x90] sm:$0xff]   ;;  %v5058_v39 = vld [vmem:[%s8000_s5 + $0x98] sm:$0xff]  }
 0xe26   : > { %3807 = vmax.xlane.f32.xlu1 %v3806_v30  ;;  %3810 = vmax.xlane.f32.xlu0 %v3809_v10  ;;  %v5059_v30 = vld [vmem:[%s8000_s5 + $0xa0] sm:$0xff]   ;;  %v5060_v10 = vld [vmem:[%s8000_s5 + $0xa8] sm:$0xff]  }
 0xe27   : > { %4809 = vmatmul.mubr.msk.bf16.gmra.mxu0 %vm425_vm1, %v5056_v36 }
 0xe28   : > { %3462 = vmatprep.mubr.bf16.mxu0 %v8138_v14 }
 0xe2a   : > { %3804 = vmax.xlane.f32.xlu0 %v3803_v18  ;;  %v5061_v18 = vld [vmem:[%s8000_s5 + $0xb0] sm:$0xff]  }
 0xe2f   : > { %4810 = vmatmul.mubr.msk.bf16.gmra.mxu0 %vm425_vm1, %v5057_v31 }
 0xe30   : > { %3472 = vmatprep.mubr.bf16.mxu0 %v8138_v14 }
 0xe37   : > { %4811 = vmatmul.mubr.msk.bf16.gmra.mxu0 %vm425_vm1, %v5058_v39 }
 0xe38   : > { %3482 = vmatprep.mubr.bf16.mxu0 %v8138_v14 }
 0xe3f   : > { %4812 = vmatmul.mubr.msk.bf16.gmra.mxu0 %vm425_vm1, %v5059_v30 }
 0xe40   : > { %3492 = vmatprep.mubr.bf16.mxu0 %v8138_v14 }
 0xe47   : > { %4813 = vmatmul.mubr.msk.bf16.gmra.mxu0 %vm425_vm1, %v5060_v10 }
 0xe48   : > { %3502 = vmatprep.mubr.bf16.mxu0 %v8138_v14 }
 0xe4f   : > { %4814 = vmatmul.mubr.msk.bf16.gmra.mxu0 %vm425_vm1, %v5061_v18 }
 0xe50   : > { %3512 = vmatprep.mubr.bf16.mxu0 %v8138_v14 }
 0xe57   : > { %4815 = vmatmul.mubr.msk.bf16.gmra.mxu0 %vm425_vm1, %v5062_v48 }
 0xe93   : > { %v3847_v36 = vpop.xlane.xlu1 %3846 }
 0xe94   : > { %v3879_v31 = vsub.f32 %v7286_v8, %v3847_v36  ;;  %v3880_v39 = vsub.f32 %v7288_v27, %v3847_v36 }
 0xe96   : > { %v3939_v30 = vmul.f32 1.442695, %v3879_v31  ;;  %v3941_v10 = vmul.f32 1.442695, %v3880_v39 }
 0xe97   : > { %v3844_v47 = vpop.xlane.xlu1 %3843  ;;  %v3850_v57 = vpop.xlane.xlu0 %3849 }
 0xe98   : > { %5337 = vpow2.f32 %v3939_v30  ;;  %v3877_v18 = vsub.f32 %v7266_v46, %v3844_v47  ;;  %v3878_v20 = vsub.f32 %v7280_v59, %v3844_v47  ;;  %v3881_v14 = vsub.f32 %v7292_v21, %v3850_v57 }
 0xe99   : > { %5339 = vpow2.f32 %v3941_v10  ;;  %v3882_v58 = vsub.f32 %v7294_v49, %v3850_v57 }
 0xe9a   : > { %v3935_v48 = vmul.f32 1.442695, %v3877_v18  ;;  %v3937_v23 = vmul.f32 1.442695, %v3878_v20  ;;  %v3943_v50 = vmul.f32 1.442695, %v3881_v14 }
 0xe9b   : > { %v3945_v8 = vmul.f32 1.442695, %v3882_v58  ;;  %v3838_v29 = vpop.xlane.xlu1 %3837  ;;  %v3841_v27 = vpop.xlane.xlu0 %3840 }
 0xe9c   : > { %5341 = vpow2.f32 %v3935_v48  ;;  %v3873_v36 = vsub.f32 %v7242_v41, %v3838_v29  ;;  %v3874_v31 = vsub.f32 %v7244_v56, %v3838_v29  ;;  %v3875_v46 = vsub.f32 %v7249_v60, %v3841_v27 }
 0xe9d   : > { %5343 = vpow2.f32 %v3937_v23  ;;  %v3876_v59 = vsub.f32 %v7260_v28, %v3841_v27 }
 0xe9e   : > { %5345 = vpow2.f32 %v3943_v50  ;;  %v3927_v21 = vmul.f32 1.442695, %v3873_v36  ;;  %v3929_v47 = vmul.f32 1.442695, %v3874_v31  ;;  %v3931_v49 = vmul.f32 1.442695, %v3875_v46 }
 0xe9f   : > { %5347 = vpow2.f32 %v3945_v8  ;;  %v3933_v57 = vmul.f32 1.442695, %v3876_v59  ;;  %v3832_v14 = vpop.xlane.xlu1 %3831  ;;  %v3835_v58 = vpop.xlane.xlu0 %3834 }
 0xea0   : > { %5349 = vpow2.f32 %v3927_v21  ;;  %v3869_v20 = vsub.f32 %v7219_v15, %v3832_v14  ;;  %v3870_v41 = vsub.f32 %v7230_v32, %v3832_v14  ;;  %v3871_v56 = vsub.f32 %v7237_v53, %v3835_v58 }
 0xea1   : > { %5351 = vpow2.f32 %v3929_v47  ;;  %v3872_v60 = vsub.f32 %v7240_v0, %v3835_v58 }
 0xea2   : > { %5353 = vpow2.f32 %v3931_v49  ;;  %v3919_v28 = vmul.f32 1.442695, %v3869_v20  ;;  %v3921_v50 = vmul.f32 1.442695, %v3870_v41  ;;  %v3923_v23 = vmul.f32 1.442695, %v3871_v56 }
 0xea3   : > { %5355 = vpow2.f32 %v3933_v57  ;;  %v3925_v29 = vmul.f32 1.442695, %v3872_v60  ;;  %v3826_v39 = vpop.xlane.xlu1 %3825  ;;  %v3829_v30 = vpop.xlane.xlu0 %3828 }
 0xea4   : > { %5357 = vpow2.f32 %v3919_v28  ;;  %v3865_v10 = vsub.f32 %v7167_v45, %v3826_v39  ;;  %v3866_v15 = vsub.f32 %v7173_v5, %v3826_v39  ;;  %v3867_v32 = vsub.f32 %v7191_v55, %v3829_v30 }
 0xea5   : > { %v7413_v18 = vpop.eup %5337  ;;  %5359 = vpow2.f32 %v3921_v50  ;;  %v3868_v0 = vsub.f32 %v7199_v6, %v3829_v30 }
 0xea6   : > { %v7416_v53 = vpop.eup %5339  ;;  %5361 = vpow2.f32 %v3923_v23  ;;  %v3911_v48 = vmul.f32 1.442695, %v3865_v10  ;;  %v3913_v8 = vmul.f32 1.442695, %v3866_v15  ;;  %v3915_v27 = vmul.f32 1.442695, %v3867_v32 }
 0xea7   : > { %5363 = vpow2.f32 %v3925_v29  ;;  %v3917_v36 = vmul.f32 1.442695, %v3868_v0  ;;  %v3820_v31 = vpop.xlane.xlu1 %3819  ;;  %v3823_v46 = vpop.xlane.xlu0 %3822  ;;  %v3989_v5 = vadd.f32 %v7416_v53, %v7413_v18 }
 0xea8   : > { %5365 = vpow2.f32 %v3911_v48  ;;  %v3861_v45 = vsub.f32 %v7131_v7, %v3820_v31  ;;  %v3862_v55 = vsub.f32 %v7136_v17, %v3820_v31  ;;  %v3863_v6 = vsub.f32 %v7144_v2, %v3823_v46 }
 0xea9   : > { %v7423_v59 = vpop.eup %5341  ;;  %5367 = vpow2.f32 %v3913_v8  ;;  %v3864_v21 = vsub.f32 %v7157_v12, %v3823_v46  ;;  %3990 = vadd.xlane.f32.xlu0 %v3989_v5 }
 0xeaa   : > { %v7426_v47 = vpop.eup %5343  ;;  %5369 = vpow2.f32 %v3915_v27  ;;  %v3903_v49 = vmul.f32 1.442695, %v3861_v45  ;;  %v3905_v57 = vmul.f32 1.442695, %v3862_v55  ;;  %v3907_v14 = vmul.f32 1.442695, %v3863_v6 }
 0xeab   : > { %v7428_v58 = vpop.eup %5345  ;;  %5371 = vpow2.f32 %v3917_v36  ;;  %v3909_v7 = vmul.f32 1.442695, %v3864_v21  ;;  %v3814_v20 = vpop.xlane.xlu1 %3813  ;;  %v3986_v27 = vadd.f32 %v7426_v47, %v7423_v59 }
 0xeac   : > { %v3817_v17 = vpop.xlane.xlu0 %3816  ;;  %v7430_v41 = vpop.eup %5347  ;;  %5373 = vpow2.f32 %v3903_v49  ;;  %v3857_v2 = vsub.f32 %v7089_v42, %v3814_v20  ;;  %v3858_v12 = vsub.f32 %v7095_v40, %v3814_v20 }
 0xead   : > { %v3859_v56 = vsub.f32 %v7113_v22, %v3817_v17  ;;  %v7435_v60 = vpop.eup %5349  ;;  %5375 = vpow2.f32 %v3905_v57  ;;  %v3860_v28 = vsub.f32 %v7122_v43, %v3817_v17  ;;  %v3992_v50 = vadd.f32 %v7430_v41, %v7428_v58 }
 0xeae   : > { %v7440_v23 = vpop.eup %5351  ;;  %5377 = vpow2.f32 %v3907_v14  ;;  %v3895_v29 = vmul.f32 1.442695, %v3857_v2  ;;  %v3897_v39 = vmul.f32 1.442695, %v3858_v12 }
 0xeaf   : > { %v3899_v30 = vmul.f32 1.442695, %v3859_v56  ;;  %v7442_v10 = vpop.eup %5353  ;;  %5379 = vpow2.f32 %v3909_v7  ;;  %v3901_v42 = vmul.f32 1.442695, %v3860_v28  ;;  %3993 = vadd.xlane.f32.xlu1 %v3992_v50  ;;  %v3808_v40 = vpop.xlane.xlu1 %3807  ;;  %v3980_v49 = vadd.f32 %v7440_v23, %v7435_v60 }
 0xeb0   : > { %v3811_v22 = vpop.xlane.xlu0 %3810  ;;  %v7444_v15 = vpop.eup %5355  ;;  %5381 = vpow2.f32 %v3895_v29  ;;  %v3853_v43 = vsub.f32 %v7076_v34, %v3808_v40  ;;  %v3854_v32 = vsub.f32 %v7081_v24, %v3808_v40 }
 0xeb1   : > { %v3855_v0 = vsub.f32 %v7083_v37, %v3811_v22  ;;  %v7449_v48 = vpop.eup %5357  ;;  %5383 = vpow2.f32 %v3897_v39  ;;  %v3856_v8 = vsub.f32 %v7085_v16, %v3811_v22  ;;  %v3983_v36 = vadd.f32 %v7444_v15, %v7442_v10 }
 0xeb2   : > { %v7456_v31 = vpop.eup %5359  ;;  %5385 = vpow2.f32 %v3899_v30  ;;  %v3887_v46 = vmul.f32 1.442695, %v3853_v43  ;;  %v3889_v34 = vmul.f32 1.442695, %v3854_v32 }
 0xeb3   : > { %v3891_v5 = vmul.f32 1.442695, %v3855_v0  ;;  %v7458_v24 = vpop.eup %5361  ;;  %5387 = vpow2.f32 %v3901_v42  ;;  %v3893_v37 = vmul.f32 1.442695, %v3856_v8  ;;  %3987 = vadd.xlane.f32.xlu1 %v3986_v27  ;;  %3984 = vadd.xlane.f32.xlu0 %v3983_v36  ;;  %v3974_v2 = vadd.f32 %v7456_v31, %v7449_v48 }
 0xeb4   : > { %v3805_v45 = vpop.xlane.xlu0 %3804  ;;  %v7460_v16 = vpop.eup %5363  ;;  %5389 = vpow2.f32 %v3887_v46 }
 0xeb5   : > { %v3851_v55 = vsub.f32 %v7060_v19, %v3805_v45  ;;  %v3852_v6 = vsub.f32 %v7070_v62, %v3805_v45  ;;  %v7464_v21 = vpop.eup %5365  ;;  %5391 = vpow2.f32 %v3889_v34  ;;  %v3977_v57 = vadd.f32 %v7460_v16, %v7458_v24 }
 0xeb6   : > { %v7470_v14 = vpop.eup %5367  ;;  %5393 = vpow2.f32 %v3891_v5 }
 0xeb7   : > { %v3883_v7 = vmul.f32 1.442695, %v3851_v55  ;;  %v3885_v20 = vmul.f32 1.442695, %v3852_v6  ;;  %v7472_v17 = vpop.eup %5369  ;;  %5395 = vpow2.f32 %v3893_v37  ;;  %3981 = vadd.xlane.f32.xlu1 %v3980_v49  ;;  %3978 = vadd.xlane.f32.xlu0 %v3977_v57  ;;  %v3968_v39 = vadd.f32 %v7470_v14, %v7464_v21  ;;  %v2256_v6 = vld [vmem:[%s8002_s7 + $0x8] sm:$0xff]  ;;  %v2257_v49 = vld [vmem:[%s8002_s7 + $0x10] sm:$0xff] }
 0xeb8   : > { %v7474_v19 = vpop.eup %5371  ;;  %v2255_v57 = vld [vmem:[%s8002_s7] sm:$0xff] }
 0xeb9   : > { %5397 = vpow2.f32 %v3883_v7  ;;  %v7476_v62 = vpop.eup %5373  ;;  %v3971_v12 = vadd.f32 %v7474_v19, %v7472_v17  ;;  %v2258_v7 = vld [vmem:[%s8002_s7 + $0x18] sm:$0xff] }
 0xeba   : > { %5399 = vpow2.f32 %v3885_v20  ;;  %v7482_v56 = vpop.eup %5375 }
 0xebb   : > { %v7484_v28 = vpop.eup %5377  ;;  %3975 = vadd.xlane.f32.xlu1 %v3974_v2  ;;  %3972 = vadd.xlane.f32.xlu0 %v3971_v12  ;;  %v3962_v32 = vadd.f32 %v7482_v56, %v7476_v62 }
 0xebc   : > { %v7486_v50 = vpop.eup %5379 }
 0xebd   : > { %v7488_v29 = vpop.eup %5381  ;;  %v3965_v30 = vadd.f32 %v7486_v50, %v7484_v28 }
 0xebe   : > { %v7494_v42 = vpop.eup %5383 }
 0xebf   : > { %v7496_v40 = vpop.eup %5385  ;;  %3969 = vadd.xlane.f32.xlu1 %v3968_v39  ;;  %3966 = vadd.xlane.f32.xlu0 %v3965_v30  ;;  %v3956_v34 = vadd.f32 %v7494_v42, %v7488_v29 }
 0xec0   : > { %v7498_v22 = vpop.eup %5387 }
 0xec1   : > { %v7500_v43 = vpop.eup %5389  ;;  %v3959_v0 = vadd.f32 %v7498_v22, %v7496_v40 }
 0xec2   : > { %v7506_v8 = vpop.eup %5391 }
 0xec3   : > { %v7508_v27 = vpop.eup %5393  ;;  %3963 = vadd.xlane.f32.xlu1 %v3962_v32  ;;  %3960 = vadd.xlane.f32.xlu0 %v3959_v0  ;;  %v3950_v55 = vadd.f32 %v7506_v8, %v7500_v43 }
 0xec4   : > { %v7510_v36 = vpop.eup %5395 }
 0xec5   : > { %v3953_v5 = vadd.f32 %v7510_v36, %v7508_v27 }
 0xec6   : > { %v7512_v46 = vpop.eup %5397 }
 0xec7   : > { %v7518_v37 = vpop.eup %5399  ;;  %3957 = vadd.xlane.f32.xlu1 %v3956_v34  ;;  %3954 = vadd.xlane.f32.xlu0 %v3953_v5 }
 0xec8   : > { %v3947_v45 = vadd.f32 %v7518_v37, %v7512_v46 }
 0xecb   : > { %3951 = vadd.xlane.f32.xlu1 %v3950_v55  ;;  %3948 = vadd.xlane.f32.xlu0 %v3947_v45 }
 0xedc   : > { %2266 = vperm.xlu1 %5012, %v2256_v6  }
 0xedf   : > { %v7536_v20 = vpop.f32.mrf.mxu0 }
 0xee0   : > { %2271 = vperm.xlu1 %5012, %v2257_v49  }
 0xee1   : > { %2261 = vperm.xlu0 %5011, %v2255_v57   ;;  %v3446_v2 = vpop.f32.mrf.mxu0 }
 0xee3   : > { %v7538_v12 = vpop.f32.mrf.mxu0 }
 0xee5   : > { %2276 = vperm.xlu0 %5011, %v2258_v7   ;;  %v3450_v30 = vpop.f32.mrf.mxu0 }
 0xee6   : > { %v4044_v32 = vpack.c.bf16 %v3450_v30, %v3446_v2 }
 0xee8   : > { %4107 = vmatprep.mubr.bf16.mxu1 %v4044_v32 }
 0xee9   : > { %4367 = vperm.xlu0 %5011, %v2255_v57  }
 0xeed   : > { %4372 = vperm.xlu0 %5011, %v2256_v6  }
 0xef1   : > { %4377 = vperm.xlu0 %5011, %v2257_v49  }
 0xef5   : > { %4382 = vperm.xlu0 %5011, %v2258_v7  }
 0xf32   : > { %v3991_v0 = vpop.xlane.xlu0 %3990 }
 0xf33   : > { %5401 = vrcp.f32 %v3991_v0 }
 0xf38   : > { %v3994_v34 = vpop.xlane.xlu1 %3993 }
 0xf39   : > { %5403 = vrcp.f32 %v3994_v34 }
 0xf3c   : > { %v3988_v5 = vpop.xlane.xlu1 %3987  ;;  %v3985_v45 = vpop.xlane.xlu0 %3984 }
 0xf3d   : > { %5405 = vrcp.f32 %v3988_v5 }
 0xf3e   : > { %5407 = vrcp.f32 %v3985_v45 }
 0xf40   : > { %v3982_v55 = vpop.xlane.xlu1 %3981  ;;  %v3979_v6 = vpop.xlane.xlu0 %3978 }
 0xf41   : > { %5409 = vrcp.f32 %v3982_v55  ;;  %v5402_v49 = vpop.eup %5401  ;;  %v7546_v55 = vpop.f32.mrf.mxu0 }
 0xf42   : > { %5411 = vrcp.f32 %v3979_v6  ;;  %v4040_v2 = vmul.f32 %v5402_v49, %v7416_v53  ;;  %v4039_v32 = vmul.f32 %v5402_v49, %v7413_v18  ;;  %8177 = vst [vmem:[#allocation31_spill] sm:$0xff] %v7546_v55 }
 0xf44   : > { %v3976_v57 = vpop.xlane.xlu1 %3975  ;;  %v3973_v7 = vpop.xlane.xlu0 %3972 }
 0xf45   : > { %5413 = vrcp.f32 %v3976_v57 }
 0xf46   : > { %v5404_v1 = vpop.eup %5403  ;;  %5415 = vrcp.f32 %v3973_v7  ;;  %v7550_v7 = vpop.f32.mrf.mxu0 }
 0xf47   : > { %v4042_v30 = vmul.f32 %v5404_v1, %v7430_v41  ;;  %v4041_v0 = vmul.f32 %v5404_v1, %v7428_v58 }
 0xf48   : > { %v3970_v34 = vpop.xlane.xlu1 %3969  ;;  %v3967_v5 = vpop.xlane.xlu0 %3966 }
 0xf49   : > { %v4074_v45 = vpack.c.bf16 %v4042_v30, %v4040_v2  ;;  %v4073_v39 = vpack.c.bf16 %v4041_v0, %v4039_v32  ;;  %5417 = vrcp.f32 %v3970_v34  ;;  %v7556_v32 = vpop.f32.mrf.mxu0 }
 0xf4a   : > { %v5406_v6 = vpop.eup %5405  ;;  %5419 = vrcp.f32 %v3967_v5 }
 0xf4b   : > { %v5408_v3 = vpop.eup %5407  ;;  %4075 = vmatprep.subr.bf16.mxu1 %v4074_v45  ;;  %v4038_v57 = vmul.f32 %v5406_v6, %v7426_v47  ;;  %v4037_v49 = vmul.f32 %v5406_v6, %v7423_v59 }
 0xf4c   : > { %v3964_v54 = vpop.xlane.xlu1 %3963  ;;  %4076 = vmatpush1.bf16.xpose.msra.mxu1 %v4073_v39  ;;  %v3961_v53 = vpop.xlane.xlu0 %3960  ;;  %v4036_v41 = vmul.f32 %v5408_v3, %v7444_v15  ;;  %v4035_v58 = vmul.f32 %v5408_v3, %v7442_v10 }
 0xf4d   : > { %v7558_v3 = vpop.f32.mrf.mxu0  ;;  %5421 = vrcp.f32 %v3964_v54 }
 0xf4e   : > { %v5410_v18 = vpop.eup %5409  ;;  %v4072_v1 = vpack.c.bf16 %v4038_v57, %v4036_v41  ;;  %v4071_v0 = vpack.c.bf16 %v4037_v49, %v4035_v58  ;;  %5423 = vrcp.f32 %v3961_v53 }
 0xf4f   : > { %v5412_v2 = vpop.eup %5411  ;;  %v4034_v30 = vmul.f32 %v5410_v18, %v7440_v23  ;;  %v4033_v23 = vmul.f32 %v5410_v18, %v7435_v60  ;;  %v7564_v6 = vpop.f32.mrf.mxu0 }
 0xf50   : > { %4077 = vmatprep.subr.bf16.mxu1 %v4072_v1  ;;  %v3958_v47 = vpop.xlane.xlu1 %3957  ;;  %v4032_v39 = vmul.f32 %v5412_v2, %v7460_v16  ;;  %v3955_v15 = vpop.xlane.xlu0 %3954  ;;  %v4031_v59 = vmul.f32 %v5412_v2, %v7458_v24 }
 0xf51   : > { %5425 = vrcp.f32 %v3958_v47  ;;  %v7572_v24 = vpop.f32.mrf.mxu0 }
 0xf52   : > { %v5414_v45 = vpop.eup %5413  ;;  %v4070_v55 = vpack.c.bf16 %v4034_v30, %v4032_v39  ;;  %v4069_v1 = vpack.c.bf16 %v4033_v23, %v4031_v59  ;;  %5427 = vrcp.f32 %v3955_v15 }
 0xf53   : > { %v5416_v34 = vpop.eup %5415  ;;  %v4030_v16 = vmul.f32 %v5414_v45, %v7456_v31  ;;  %v7587_v15 = vpop.f32.mrf.mxu0 }
 0xf54   : > { %v3952_v57 = vpop.xlane.xlu1 %3951  ;;  %4078 = vmatpush1.bf16.xpose.msra.mxu1 %v4071_v0  ;;  %v4028_v10 = vmul.f32 %v5416_v34, %v7474_v19  ;;  %v3949_v5 = vpop.xlane.xlu0 %3948  ;;  %v4027_v31 = vmul.f32 %v5416_v34, %v7472_v17  ;;  %v4029_v19 = vmul.f32 %v5414_v45, %v7449_v48 }
 0xf55   : > { %4079 = vmatprep.subr.bf16.mxu1 %v4070_v55  ;;  %5429 = vrcp.f32 %v3952_v57  ;;  %v7597_v59 = vpop.f32.mrf.mxu0 }
 0xf56   : > { %v5418_v58 = vpop.eup %5417  ;;  %v4068_v49 = vpack.c.bf16 %v4030_v16, %v4028_v10  ;;  %v4067_v17 = vpack.c.bf16 %v4029_v19, %v4027_v31  ;;  %5431 = vrcp.f32 %v3949_v5 }
 0xf57   : > { %v5420_v55 = vpop.eup %5419  ;;  %v4026_v2 = vmul.f32 %v5418_v58, %v7470_v14 }
 0xf58   : > { %v2267_v41 = vpop.permute.xlu1 %2266  ;;  %v4023_v23 = vmul.f32 %v5420_v55, %v7484_v28 }
 0xf59   : > { %v7577_v53 = vadd.f32 %v6824_v61, %v2267_v41  ;;  %v7584_v47 = vadd.f32 %v6826_v63, %v2267_v41  ;;  %v8178_v41 = vld [vmem:[#allocation23_spill] sm:$0xff] }
 0xf5a   : > { %v5422_v48 = vpop.eup %5421 }
 0xf5b   : > { %v5424_v34 = vpop.eup %5423 }
 0xf5c   : > { %4080 = vmatpush1.bf16.xpose.msra.mxu1 %v4069_v1  ;;  %v2262_v30 = vpop.permute.xlu0 %2261  ;;  %v4020_v57 = vmul.f32 %v5424_v34, %v7498_v22  ;;  %v4019_v22 = vmul.f32 %v5424_v34, %v7496_v40 }
 0xf5d   : > { %v7567_v54 = vadd.f32 %v6820_v13, %v2262_v30  ;;  %v7570_v60 = vadd.f32 %v6822_v25, %v2262_v30  ;;  %4081 = vmatprep.subr.bf16.mxu1 %v4068_v49  ;;  %v4024_v13 = vmul.f32 %v5420_v55, %v7486_v50  ;;  %v2272_v25 = vpop.permute.xlu1 %2271  ;;  %v7611_v30 = vpop.f32.mrf.mxu0 }
 0xf5e   : > { %v7590_v61 = vadd.f32 %v6828_v11, %v2272_v25  ;;  %v7594_v14 = vadd.f32 %v6830_v35, %v2272_v25  ;;  %v4025_v11 = vmul.f32 %v5418_v58, %v7464_v21  ;;  %v4022_v35 = vmul.f32 %v5422_v48, %v7482_v56  ;;  %v5426_v5 = vpop.eup %5425 }
 0xf5f   : > { %v2344_v18 = vadd.f32 %v7570_v60, %v7567_v54  ;;  %v4066_v45 = vpack.c.bf16 %v4026_v2, %v4024_v13  ;;  %v5428_v55 = vpop.eup %5427  ;;  %v4021_v56 = vmul.f32 %v5422_v48, %v7476_v62  ;;  %v4018_v19 = vmul.f32 %v5426_v5, %v7494_v42 }
 0xf60   : > { %v2277_v50 = vpop.permute.xlu0 %2276  ;;  %v4065_v28 = vpack.c.bf16 %v4025_v11, %v4023_v23  ;;  %v4064_v58 = vpack.c.bf16 %v4022_v35, %v4020_v57  ;;  %v4016_v31 = vmul.f32 %v5428_v55, %v7510_v36  ;;  %v8187_v35 = vld [vmem:[#allocation27_spill] sm:$0xff] }
 0xf61   : > { %v2345_v39 = vadd.f32 %v2344_v18, %v7577_v53  ;;  %v7603_v16 = vadd.f32 %v6832_v33, %v2277_v50  ;;  %v7608_v1 = vadd.f32 %v8178_v41, %v2277_v50  ;;  %v3476_v33 = vpop.f32.mrf.mxu0  ;;  %v4063_v2 = vpack.c.bf16 %v4021_v56, %v4019_v22  ;;  %v8189_v41 = vld [vmem:[#allocation11_spill] sm:$0xff]  ;;  %v8199_v22 = vld [vmem:[#allocation6_spill] sm:$0xff] }
 0xf62   : > { %v5430_v13 = vpop.eup %5429 }
 0xf63   : > { %v2346_v0 = vadd.f32 %v2345_v39, %v7584_v47  ;;  %v3478_v18 = vpop.f32.mrf.mxu0  ;;  %v5432_v25 = vpop.eup %5431  ;;  %v4062_v39 = vpack.c.bf16 %v4018_v19, %v4016_v31  ;;  %v4014_v62 = vmul.f32 %v5430_v13, %v7506_v8  ;;  %v4046_v8 = vpack.c.bf16 %v7558_v3, %v7550_v7  ;;  %v8185_v3 = vld [vmem:[#allocation31_spill] sm:$0xff] }
 0xf64   : > { %4082 = vmatpush1.bf16.xpose.msra.mxu1 %v4067_v17  ;;  %v4012_v40 = vmul.f32 %v5432_v25, %v7518_v37  ;;  %v4011_v50 = vmul.f32 %v5432_v25, %v7512_v46  ;;  %v8181_v46 = vpack.c.bf16 %v7308_v44, %v7305_v4  ;;  %v4048_v7 = vpack.c.bf16 %v7597_v59, %v7572_v24  ;;  %v8195_v24 = vld [vmem:[#allocation25_spill] sm:$0xff]  ;;  %v8196_v59 = vld [vmem:[#allocation24_spill] sm:$0xff]  ;;  %v8201_v19 = vld [vmem:[#allocation15_spill] sm:$0xff] }
 0xf65   : > { %v2347_v63 = vadd.f32 %v2346_v0, %v7590_v61  ;;  %4083 = vmatprep.subr.bf16.mxu1 %v4066_v45  ;;  %v3480_v17 = vpop.f32.mrf.mxu0  ;;  %v4015_v0 = vmul.f32 %v5428_v55, %v7508_v27  ;;  %v4017_v45 = vmul.f32 %v5426_v5, %v7488_v29  ;;  %v8179_v29 = vpack.c.bf16 %v7327_v52, %v7325_v51  ;;  %v8183_v52 = vld [vmem:[#allocation30_spill] sm:$0xff]  ;;  %v8204_v25 = vld [vmem:[#allocation9_spill] sm:$0xff] }
 0xf66   : > { %v4060_v34 = vpack.c.bf16 %v4014_v62, %v4012_v40  ;;  %v8184_v57 = vpack.c.bf16 %v7314_v9, %v8183_v52  ;;  %v8193_v9 = vld [vmem:[#allocation28_spill] sm:$0xff]  ;;  %v8197_v55 = vpack.c.bf16 %v8195_v24, %v8196_v59  ;;  %v8210_v62 = vld [vmem:[#allocation17_spill] sm:$0xff]  ;;  %v8219_v52 = vld [vmem:[#allocation19_spill] sm:$0xff] }
 0xf67   : > { %v2348_v10 = vadd.f32 %v2347_v63, %v7594_v14  ;;  %v3484_v48 = vpop.f32.mrf.mxu0  ;;  %v4061_v36 = vpack.c.bf16 %v4017_v45, %v4015_v0  ;;  %v4013_v63 = vmul.f32 %v5430_v13, %v7500_v43  ;;  %v8182_v43 = vpack.c.bf16 %v7333_v26, %v7330_v38  ;;  %v8190_v38 = vld [vmem:[#allocation12_spill] sm:$0xff] }
 0xf68   : > { %v8191_v26 = vpack.c.bf16 %v8189_v41, %v8190_v38  ;;  %v8202_v13 = vld [vmem:[#allocation16_spill] sm:$0xff] }
 0xf69   : > { %v2349_v49 = vadd.f32 %v2348_v10, %v7603_v16  ;;  %v3486_v42 = vpop.f32.mrf.mxu0  ;;  %v4059_v11 = vpack.c.bf16 %v4013_v63, %v4011_v50  ;;  %v8180_v10 = vpack.c.bf16 %v7538_v12, %v7536_v20  ;;  %v4045_v20 = vpack.c.bf16 %v7556_v32, %v8185_v3  ;;  %v8186_v12 = vld [vmem:[#allocation26_spill] sm:$0xff]  ;;  %v8213_v63 = vld [vmem:[#allocation21_spill] sm:$0xff] }
 0xf6a   : > { %v8188_v4 = vpack.c.bf16 %v8186_v12, %v8187_v35  ;;  %v4050_v32 = vpack.c.bf16 %v3480_v17, %v3476_v33  ;;  %v8207_v33 = vld [vmem:[#allocation7_spill] sm:$0xff]  ;;  %v8208_v17 = vld [vmem:[#allocation8_spill] sm:$0xff] }
 0xf6b   : > { %v2350_v21 = vadd.f32 %v2349_v49, %v7608_v1  ;;  %v3488_v23 = vpop.f32.mrf.mxu0  ;;  %v8192_v49 = vld [vmem:[#allocation29_spill] sm:$0xff]  ;;  %v8209_v40 = vpack.c.bf16 %v8207_v33, %v8208_v17 }
 0xf6c   : > { %4084 = vmatpush1.bf16.xpose.msra.mxu1 %v4065_v28  ;;  %v8194_v5 = vpack.c.bf16 %v8192_v49, %v8193_v9 }
 0xf6d   : > { %4085 = vmatprep.subr.bf16.mxu1 %v4064_v58  ;;  %2351 = vadd.xlane.f32.xlu1 %v2350_v21  ;;  %v3490_v27 = vpop.f32.mrf.mxu0  ;;  %v4047_v21 = vpack.c.bf16 %v7587_v15, %v7564_v6  ;;  %v8198_v58 = vld [vmem:[#allocation5_spill] sm:$0xff]  ;;  %v4049_v15 = vpack.c.bf16 %v3478_v18, %v7611_v30  ;;  %v4051_v18 = vpack.c.bf16 %v3488_v23, %v3484_v48 }
 0xf6e   : > { %v8200_v56 = vpack.c.bf16 %v8198_v58, %v8199_v22  ;;  %v4052_v6 = vpack.c.bf16 %v3490_v27, %v3486_v42  ;;  %v8220_v42 = vld [vmem:[#allocation20_spill] sm:$0xff] }
 0xf6f   : > { %v3494_v37 = vpop.f32.mrf.mxu0  ;;  %v8221_v27 = vpack.c.bf16 %v8219_v52, %v8220_v42 }
 0xf71   : > { %v3496_v51 = vpop.f32.mrf.mxu0 }
 0xf73   : > { %v3498_v44 = vpop.f32.mrf.mxu0 }
 0xf74   : > { %4086 = vmatpush1.bf16.xpose.msra.mxu1 %v4063_v2  ;;  %v8203_v2 = vpack.c.bf16 %v8201_v19, %v8202_v13 }
 0xf75   : > { %4087 = vmatprep.subr.bf16.mxu1 %v4062_v39  ;;  %v3500_v28 = vpop.f32.mrf.mxu0  ;;  %v8205_v39 = vld [vmem:[#allocation10_spill] sm:$0xff] }
 0xf76   : > { %v8206_v0 = vpack.c.bf16 %v8204_v25, %v8205_v39  ;;  %v4054_v30 = vpack.c.bf16 %v3500_v28, %v3496_v51 }
 0xf77   : > { %v3504_v31 = vpop.f32.mrf.mxu0 }
 0xf79   : > { %v3506_v45 = vpop.f32.mrf.mxu0 }
 0xf7b   : > { %v3508_v50 = vpop.f32.mrf.mxu0 }
 0xf7c   : > { %4088 = vmatpush1.bf16.xpose.msra.mxu1 %v4061_v36  ;;  %v8211_v36 = vld [vmem:[#allocation18_spill] sm:$0xff]  ;;  %v4055_v41 = vpack.c.bf16 %v3508_v50, %v3504_v31 }
 0xf7d   : > { %4089 = vmatprep.subr.bf16.mxu1 %v4060_v34  ;;  %v8212_v34 = vpack.c.bf16 %v8210_v62, %v8211_v36 }
 0xf84   : > { %4090 = vmatpush1.bf16.xpose.msra.mxu1 %v4059_v11  ;;  %v8214_v11 = vld [vmem:[#allocation22_spill] sm:$0xff] }
 0xf85   : > { %4228 = vmatprep.subr.bf16.mxu1 %v8179_v29  ;;  %v8215_v29 = vpack.c.bf16 %v8213_v63, %v8214_v11  ;;  %v4174_v63 = vld [vmem:[%s8005_s10 + $0x10] sm:$0xff] }
 0xf8b   : > { %4108 = vmatmul.mubr.bf16.vlgmr.msra.gmra.mxu1 %v8180_v10  ;;  %v8217_v10 = vld [vmem:[#allocation14_spill] sm:$0xff] }
 0xf8c   : > { %4229 = vmatpush1.bf16.msra.mxu1 %v8181_v46  ;;  %4115 = vmatprep.mubr.bf16.mxu1 %v4046_v8  ;;  %v8216_v8 = vld [vmem:[#allocation13_spill] sm:$0xff] }
 0xf8d   : > { %4230 = vmatprep.subr.bf16.mxu1 %v8182_v43  ;;  %v8218_v46 = vpack.c.bf16 %v8216_v8, %v8217_v10  ;;  %v3510_v43 = vpop.f32.mrf.mxu0 }
 0xf8e   : > { %v4056_v3 = vpack.c.bf16 %v3510_v43, %v3506_v45 }
 0xf90   : > { %4231 = vmatpush1.bf16.msra.mxu1 %v8184_v57  ;;  %v3514_v57 = vpop.f32.mrf.mxu0 }
 0xf91   : > { %4232 = vmatprep.subr.bf16.mxu1 %v8188_v4 }
 0xf93   : > { %4116 = vmatmul.mubr.bf16.gmra.mxu1 %v4045_v20  ;;  %v4053_v20 = vpack.c.bf16 %v3498_v44, %v3494_v37 }
 0xf94   : > { %4233 = vmatpush1.bf16.msra.mxu1 %v8191_v26  ;;  %4123 = vmatprep.mubr.bf16.mxu1 %v4048_v7  ;;  %v3516_v7 = vpop.f32.mrf.mxu0  ;;  %v8222_v26 = vmov 0  }
 0xf95   : > { %4234 = vmatprep.subr.bf16.mxu1 %v8194_v5 }
 0xf96   : > { %v3518_v12 = vpop.f32.mrf.mxu0 }
 0xf97   : > { %v4057_v38 = vpack.c.bf16 %v3518_v12, %v3514_v57  ;;  %v7747_v57 = vld [vmem:[%s8003_s8 + $0x8] sm:$0xff] }
 0xf98   : > { %4235 = vmatpush1.bf16.msra.mxu1 %v8197_v55  ;;  %v3520_v35 = vpop.f32.mrf.mxu0 }
 0xf99   : > { %4236 = vmatprep.subr.bf16.mxu1 %v8200_v56  ;;  %v4058_v4 = vpack.c.bf16 %v3520_v35, %v3516_v7  ;;  %v2440_v35 = vld [vmem:[%s8004_s9 + $0x8] sm:$0xff] }
 0xf9b   : > { %4124 = vmatmul.mubr.bf16.gmra.mxu1 %v4047_v21 }
 0xf9c   : > { %4237 = vmatpush1.bf16.msra.mxu1 %v8203_v2  ;;  %4131 = vmatprep.mubr.bf16.mxu1 %v4050_v32 }
 0xf9d   : > { %4238 = vmatprep.subr.bf16.mxu1 %v8206_v0 }
 0xfa0   : > { %4239 = vmatpush1.bf16.msra.mxu1 %v8209_v40  ;;  %v4173_v40 = vld [vmem:[%s8005_s10 + $0x8] sm:$0xff] }
 0xfa1   : > { %4240 = vmatprep.subr.bf16.mxu1 %v8212_v34 }
 0xfa3   : > { %4132 = vmatmul.mubr.bf16.gmra.mxu1 %v4049_v15 }
 0xfa4   : > { %4241 = vmatpush1.bf16.msra.mxu1 %v8215_v29  ;;  %4139 = vmatprep.mubr.bf16.mxu1 %v4052_v6  ;;  %v4175_v29 = vld [vmem:[%s8005_s10 + $0x18] sm:$0xff] }
 0xfa5   : > { %4242 = vmatprep.subr.bf16.mxu1 %v8218_v46 }
 0xfa8   : > { %4243 = vmatpush1.bf16.msra.mxu1 %v8221_v27  ;;  %v4176_v27 = vld [vmem:[%s8005_s10 + $0x20] sm:$0xff] }
 0xfab   : > { %4140 = vmatmul.mubr.bf16.gmra.mxu1 %v4051_v18  ;;  %v4177_v18 = vld [vmem:[%s8005_s10 + $0x28] sm:$0xff] }
 0xfac   : > { %4147 = vmatprep.mubr.bf16.mxu1 %v4054_v30 }
 0xfb3   : > { %4148 = vmatmul.mubr.bf16.gmra.mxu1 %v4053_v20 }
 0xfb4   : > { %4155 = vmatprep.mubr.bf16.mxu1 %v4056_v3 }
 0xfbb   : > { %4156 = vmatmul.mubr.bf16.gmra.mxu1 %v4055_v41 }
 0xfbc   : > { %4163 = vmatprep.mubr.bf16.mxu1 %v4058_v4 }
 0xfc3   : > { %4164 = vmatmul.mubr.bf16.gmra.mxu1 %v4057_v38  ;;  %v4178_v38 = vld [vmem:[%s8005_s10 + $0x30] sm:$0xff] }
 0xfc4   : > { %4260 = vmatprep.mubr.bf16.mxu1 %v8222_v26 }
 0xff6   : > { %v2352_v51 = vpop.xlane.xlu1 %2351 }
 0xff7   : > { %v2353_v48 = vrot.slane %v2352_v51, 4 }
 0xff9   : > { %v2354_v23 = vadd.f32 %v2353_v48, %v2352_v51  ;;  %v4179_v48 = vld [vmem:[%s8005_s10 + $0x38] sm:$0xff] }
 0xffb   : > { %v2355_v49 = vrot.slane %v2354_v23, 2 }
 0xffd   : > { %v2356_v9 = vadd.f32 %v2355_v49, %v2354_v23  ;;  %v7763_v23 = vld [vmem:[%s8003_s8] sm:$0xff] }
 0xfff   : > { %v2357_v5 = vrot.slane %v2356_v9, 1 }
0x1001   : > { %v2358_v28 = vadd.f32 %v2357_v5, %v2356_v9 }
0x1003   : > { %4959 = vpush %v2358_v28 }
0x1034   : > { %s4960_s15 = spop %4959 }
0x1035   : > { %v2360_v37 = vstv %s4960_s15 }
0x1036   : > { %v2362_v44 = vmul.f32 0.00012207031, %v2360_v37  ;;  %v7770_v37 = vld [vmem:[%s8003_s8 + $0x10] sm:$0xff] }
0x1038   : > { %v7686_v24 = vsub.f32 %v7567_v54, %v2362_v44  ;;  %v7689_v59 = vsub.f32 %v7570_v60, %v2362_v44  ;;  %v7692_v55 = vsub.f32 %v7577_v53, %v2362_v44  ;;  %v7695_v32 = vsub.f32 %v7584_v47, %v2362_v44 }
0x1039   : > { %v7702_v22 = vsub.f32 %v7590_v61, %v2362_v44  ;;  %v7707_v56 = vsub.f32 %v7594_v14, %v2362_v44  ;;  %v7712_v31 = vsub.f32 %v7603_v16, %v2362_v44  ;;  %v7717_v61 = vsub.f32 %v7608_v1, %v2362_v44  ;;  %v4172_v1 = vld [vmem:[%s8005_s10] sm:$0xff] }
0x103a   : > { %v2371_v21 = vmul.f32 %v7686_v24, %v7686_v24  ;;  %v2372_v58 = vmul.f32 %v7689_v59, %v7689_v59  ;;  %v2373_v54 = vmul.f32 %v7692_v55, %v7692_v55  ;;  %v2374_v53 = vmul.f32 %v7695_v32, %v7695_v32 }
0x103b   : > { %v2375_v19 = vmul.f32 %v7702_v22, %v7702_v22  ;;  %v2376_v2 = vmul.f32 %v7707_v56, %v7707_v56  ;;  %v2377_v14 = vmul.f32 %v7712_v31, %v7712_v31  ;;  %v2378_v0 = vmul.f32 %v7717_v61, %v7717_v61 }
0x103c   : > { %v2379_v60 = vadd.f32 %v2372_v58, %v2371_v21  ;;  %v4180_v58 = vld [vmem:[%s8005_s10 + $0x40] sm:$0xff] }
0x103e   : > { %v2380_v47 = vadd.f32 %v2379_v60, %v2373_v54  ;;  %v4181_v60 = vld [vmem:[%s8005_s10 + $0x48] sm:$0xff] }
0x1040   : > { %v2381_v13 = vadd.f32 %v2380_v47, %v2374_v53  ;;  %v2442_v53 = vld [vmem:[%s8004_s9 + $0x18] sm:$0xff] }
0x1042   : > { %v2382_v25 = vadd.f32 %v2381_v13, %v2375_v19 }
0x1044   : > { %v2383_v39 = vadd.f32 %v2382_v25, %v2376_v2 }
0x1046   : > { %v2384_v16 = vadd.f32 %v2383_v39, %v2377_v14  ;;  %v4182_v39 = vld [vmem:[%s8005_s10 + $0x50] sm:$0xff] }
0x1048   : > { %v2385_v45 = vadd.f32 %v2384_v16, %v2378_v0  ;;  %v4183_v16 = vld [vmem:[%s8005_s10 + $0x58] sm:$0xff] }
0x104a   : > { %2386 = vadd.xlane.f32.xlu0 %v2385_v45 }
0x104b   : > { %v4109_v33 = vpop.f32.mrf.mxu1 }
0x104c   : > { %v4188_v15 = vmul.f32 %v4172_v1, %v4109_v33 }
0x104d   : > { %v4111_v17 = vpop.f32.mrf.mxu1 }
0x104f   : > { %v4112_v6 = vpop.f32.mrf.mxu1 }
0x1050   : > { %v4189_v62 = vmul.f32 %v4173_v40, %v4112_v6 }
0x1051   : > { %v4114_v36 = vpop.f32.mrf.mxu1 }
0x1052   : > { %v4204_v34 = vpack.c.bf16 %v4189_v62, %v4188_v15  ;;  %v4184_v15 = vld [vmem:[%s8005_s10 + $0x60] sm:$0xff]  ;;  %v4185_v36 = vld [vmem:[%s8005_s10 + $0x68] sm:$0xff] }
0x1053   : > { %v4117_v50 = vpop.f32.mrf.mxu1 }
0x1054   : > { %4261 = vmatmul.mubr.bf16.vlgmr.msra.gmra.mxu1 %v4204_v34  ;;  %v4190_v10 = vmul.f32 %v4174_v63, %v4117_v50 }
0x1055   : > { %v4119_v11 = vpop.f32.mrf.mxu1  ;;  %4270 = vmatprep.mubr.bf16.mxu1 %v8222_v26 }
0x1057   : > { %v4120_v8 = vpop.f32.mrf.mxu1 }
0x1058   : > { %v4191_v46 = vmul.f32 %v4175_v29, %v4120_v8 }
0x1059   : > { %v4122_v43 = vpop.f32.mrf.mxu1 }
0x105a   : > { %v4205_v52 = vpack.c.bf16 %v4191_v46, %v4190_v10  ;;  %v4186_v10 = vld [vmem:[%s8005_s10 + $0x70] sm:$0xff]  ;;  %v4187_v43 = vld [vmem:[%s8005_s10 + $0x78] sm:$0xff] }
0x105b   : > { %v4125_v42 = vpop.f32.mrf.mxu1 }
0x105c   : > { %4271 = vmatmul.mubr.bf16.gmra.mxu1 %v4205_v52  ;;  %v4192_v3 = vmul.f32 %v4176_v27, %v4125_v42 }
0x105d   : > { %v4127_v30 = vpop.f32.mrf.mxu1  ;;  %4280 = vmatprep.mubr.bf16.mxu1 %v8222_v26 }
0x105f   : > { %v4128_v7 = vpop.f32.mrf.mxu1 }
0x1060   : > { %v4193_v20 = vmul.f32 %v4177_v18, %v4128_v7  ;;  %2418 = vperm.xlu0 %5011, %v7747_v57   ;;  %v7805_v7 = vpop.permute.xlu0 %4367 }
0x1061   : > { %v4130_v12 = vpop.f32.mrf.mxu1 }
0x1062   : > { %v4206_v4 = vpack.c.bf16 %v4193_v20, %v4192_v3 }
0x1063   : > { %v4133_v41 = vpop.f32.mrf.mxu1 }
0x1064   : > { %2450 = vperm.xlu0 %5011, %v2440_v35   ;;  %4281 = vmatmul.mubr.bf16.gmra.mxu1 %v4206_v4  ;;  %v4194_v9 = vmul.f32 %v4178_v38, %v4133_v41  ;;  %v7807_v3 = vpop.permute.xlu0 %4372 }
0x1065   : > { %v4135_v51 = vpop.f32.mrf.mxu1  ;;  %4290 = vmatprep.mubr.bf16.mxu1 %v8222_v26 }
0x1067   : > { %v4136_v49 = vpop.f32.mrf.mxu1 }
0x1068   : > { %v4195_v5 = vmul.f32 %v4179_v48, %v4136_v49  ;;  %4518 = vperm.xlu0 %5011, %v7763_v23   ;;  %v7809_v20 = vpop.permute.xlu0 %4377 }
0x1069   : > { %v4138_v28 = vpop.f32.mrf.mxu1 }
0x106a   : > { %v4207_v44 = vpack.c.bf16 %v4195_v5, %v4194_v9 }
0x106b   : > { %v4141_v21 = vpop.f32.mrf.mxu1 }
0x106c   : > { %4528 = vperm.xlu0 %5011, %v7770_v37   ;;  %4291 = vmatmul.mubr.bf16.gmra.mxu1 %v4207_v44  ;;  %v4196_v19 = vmul.f32 %v4180_v58, %v4141_v21  ;;  %v7811_v12 = vpop.permute.xlu0 %4382 }
0x106d   : > { %v4143_v54 = vpop.f32.mrf.mxu1  ;;  %4300 = vmatprep.mubr.bf16.mxu1 %v8222_v26 }
0x106f   : > { %v4144_v47 = vpop.f32.mrf.mxu1 }
0x1070   : > { %v4197_v13 = vmul.f32 %v4181_v60, %v4144_v47  ;;  %2460 = vperm.xlu0 %5011, %v2442_v53  }
0x1071   : > { %v4146_v2 = vpop.f32.mrf.mxu1 }
0x1072   : > { %v4208_v25 = vpack.c.bf16 %v4197_v13, %v4196_v19 }
0x1073   : > { %v4149_v14 = vpop.f32.mrf.mxu1 }
0x1074   : > { %4555 = vperm.xlu0 %5011, %v2440_v35   ;;  %4301 = vmatmul.mubr.bf16.gmra.mxu1 %v4208_v25  ;;  %v4198_v33 = vmul.f32 %v4182_v39, %v4149_v14 }
0x1075   : > { %v4151_v0 = vpop.f32.mrf.mxu1  ;;  %4310 = vmatprep.mubr.bf16.mxu1 %v8222_v26 }
0x1077   : > { %v4152_v45 = vpop.f32.mrf.mxu1 }
0x1078   : > { %v4199_v1 = vmul.f32 %v4183_v16, %v4152_v45  ;;  %4565 = vperm.xlu0 %5011, %v2442_v53  }
0x1079   : > { %v4154_v17 = vpop.f32.mrf.mxu1 }
0x107a   : > { %v4209_v40 = vpack.c.bf16 %v4199_v1, %v4198_v33 }
0x107b   : > { %v4157_v6 = vpop.f32.mrf.mxu1 }
0x107c   : > { %4311 = vmatmul.mubr.bf16.gmra.mxu1 %v4209_v40  ;;  %v4200_v50 = vmul.f32 %v4184_v15, %v4157_v6 }
0x107d   : > { %v4159_v62 = vpop.f32.mrf.mxu1  ;;  %4320 = vmatprep.mubr.bf16.mxu1 %v8222_v26 }
0x107f   : > { %v4160_v34 = vpop.f32.mrf.mxu1 }
0x1080   : > { %v4201_v63 = vmul.f32 %v4185_v36, %v4160_v34 }
0x1081   : > { %v4162_v11 = vpop.f32.mrf.mxu1 }
0x1082   : > { %v4210_v29 = vpack.c.bf16 %v4201_v63, %v4200_v50 }
0x1083   : > { %v4165_v8 = vpop.f32.mrf.mxu1 }
0x1084   : > { %4321 = vmatmul.mubr.bf16.gmra.mxu1 %v4210_v29  ;;  %v4202_v42 = vmul.f32 %v4186_v10, %v4165_v8 }
0x1085   : > { %v4167_v46 = vpop.f32.mrf.mxu1  ;;  %4330 = vmatprep.mubr.bf16.mxu1 %v8222_v26 }
0x1087   : > { %v4168_v52 = vpop.f32.mrf.mxu1 }
0x1088   : > { %v4203_v27 = vmul.f32 %v4187_v43, %v4168_v52 }
0x1089   : > { %v4170_v30 = vpop.f32.mrf.mxu1 }
0x108a   : > { %v4211_v18 = vpack.c.bf16 %v4203_v27, %v4202_v42 }
0x108c   : > { %4331 = vmatmul.mubr.bf16.gmra.mxu1 %v4211_v18 }
0x108d   : > { %4429 = vmatprep.mubr.bf16.mxu1 %v8222_v26 }
0x10d3   : > { %v2387_v35 = vpop.xlane.xlu0 %2386 }
0x10d4   : > { %v2388_v4 = vrot.slane %v2387_v35, 4 }
0x10d6   : > { %v2389_v41 = vadd.f32 %v2388_v4, %v2387_v35 }
0x10d8   : > { %v2390_v38 = vrot.slane %v2389_v41, 2 }
0x10da   : > { %v2391_v51 = vadd.f32 %v2390_v38, %v2389_v41 }
0x10db   : > { %v2419_v14 = vpop.permute.xlu0 %2418 }
0x10dc   : > { %v2392_v48 = vrot.slane %v2391_v51, 1 }
0x10de   : > { %v2393_v49 = vadd.f32 %v2392_v48, %v2391_v51 }
0x10df   : > { %v2451_v15 = vpop.permute.xlu0 %2450 }
0x10e0   : > { %4961 = vpush %v2393_v49 }
0x1111   : > { %s4962_s22 = spop %4961 }
0x1112   : > { %v2395_v9 = vstv %s4962_s22 }
0x1113   : > { %v2396_v5 = vmul.f32 0.00012207031, %v2395_v9 }
0x1114   : > { %v7813_v28 = vpop.f32.mrf.mxu1 }
0x1115   : > { %v2397_v44 = vadd.f32 1e-05, %v2396_v5 }
0x1116   : > { %v7815_v21 = vpop.f32.mrf.mxu1 }
0x1117   : > { %5433 = vrsqrt.f32 %v2397_v44 }
0x1118   : > { %v7817_v58 = vpop.f32.mrf.mxu1 }
0x1119   : > { %v4345_v54 = vpack.c.bf16 %v7817_v58, %v7813_v28 }
0x111a   : > { %v7821_v60 = vpop.f32.mrf.mxu1 }
0x111b   : > { %v4346_v53 = vpack.c.bf16 %v7821_v60, %v7815_v21 }
0x111c   : > { %v7825_v47 = vpop.f32.mrf.mxu1 }
0x111e   : > { %v7827_v19 = vpop.f32.mrf.mxu1 }
0x1120   : > { %v7829_v13 = vpop.f32.mrf.mxu1 }
0x1121   : > { %v4347_v2 = vpack.c.bf16 %v7829_v13, %v7825_v47  ;;  %v5064_v47 = vld [vmem:[%s8001_s6 + $0x8] sm:$0xff]  }
0x1122   : > { %v7833_v25 = vpop.f32.mrf.mxu1 }
0x1123   : > { %v4348_v39 = vpack.c.bf16 %v7833_v25, %v7827_v19 }
0x1124   : > { %v7837_v0 = vpop.eup %5433  ;;  %v4282_v16 = vpop.f32.mrf.mxu1 }
0x1125   : > { %v2401_v33 = vmul.f32 %v7837_v0, %v7692_v55  ;;  %v2402_v1 = vmul.f32 %v7837_v0, %v7695_v32 }
0x1126   : > { %v4284_v45 = vpop.f32.mrf.mxu1 }
0x1127   : > { %v2433_v40 = vmul.f32 %v2419_v14, %v2401_v33  ;;  %v2434_v6 = vmul.f32 %v2419_v14, %v2402_v1 }
0x1128   : > { %v4286_v17 = vpop.f32.mrf.mxu1 }
0x1129   : > { %v2465_v36 = vadd.f32 %v2451_v15, %v2433_v40  ;;  %v2466_v34 = vadd.f32 %v2451_v15, %v2434_v6  ;;  %v4349_v15 = vpack.c.bf16 %v4286_v17, %v4282_v16 }
0x112a   : > { %v4288_v62 = vpop.f32.mrf.mxu1 }
0x112b   : > { %v4834_v63 = vpack.c.bf16 %v2466_v34, %v2465_v36  ;;  %v4350_v6 = vpack.c.bf16 %v4288_v62, %v4284_v45  ;;  %v5063_v36 = vld [vmem:[%s8001_s6] sm:$0xff]  }
0x112c   : > { %v4292_v50 = vpop.f32.mrf.mxu1 }
0x112d   : > { %2496 = vst [vmem:[%s7846_s29 + $0x8] sm:$0xff] %v4834_v63 }
0x112e   : > { %v4294_v11 = vpop.f32.mrf.mxu1 }
0x1130   : > { %v4296_v55 = vpop.f32.mrf.mxu1 }
0x1131   : > { %v4351_v40 = vpack.c.bf16 %v4296_v55, %v4292_v50 }
0x1132   : > { %v4298_v29 = vpop.f32.mrf.mxu1 }
0x1133   : > { %v4352_v1 = vpack.c.bf16 %v4298_v29, %v4294_v11 }
0x1134   : > { %v4302_v8 = vpop.f32.mrf.mxu1 }
0x1136   : > { %v4304_v32 = vpop.f32.mrf.mxu1 }
0x1138   : > { %v4306_v10 = vpop.f32.mrf.mxu1 }
0x1139   : > { %v4353_v33 = vpack.c.bf16 %v4306_v10, %v4302_v8 }
0x113a   : > { %v4308_v46 = vpop.f32.mrf.mxu1 }
0x113b   : > { %v4354_v14 = vpack.c.bf16 %v4308_v46, %v4304_v32 }
0x113c   : > { %v4312_v43 = vpop.f32.mrf.mxu1 }
0x113e   : > { %v4314_v52 = vpop.f32.mrf.mxu1 }
0x1140   : > { %v4316_v42 = vpop.f32.mrf.mxu1 }
0x1141   : > { %v4355_v25 = vpack.c.bf16 %v4316_v42, %v4312_v43 }
0x1142   : > { %v4318_v27 = vpop.f32.mrf.mxu1 }
0x1143   : > { %v4356_v19 = vpack.c.bf16 %v4318_v27, %v4314_v52 }
0x1144   : > { %v4322_v30 = vpop.f32.mrf.mxu1 }
0x1146   : > { %v4324_v18 = vpop.f32.mrf.mxu1 }
0x1148   : > { %v4326_v35 = vpop.f32.mrf.mxu1 }
0x1149   : > { %v4357_v44 = vpack.c.bf16 %v4326_v35, %v4322_v30 }
0x114a   : > { %v4328_v4 = vpop.f32.mrf.mxu1 }
0x114b   : > { %v4358_v5 = vpack.c.bf16 %v4328_v4, %v4324_v18 }
0x114c   : > { %v4332_v41 = vpop.f32.mrf.mxu1 }
0x114e   : > { %v4334_v38 = vpop.f32.mrf.mxu1 }
0x1150   : > { %v4336_v51 = vpop.f32.mrf.mxu1 }
0x1151   : > { %v4359_v9 = vpack.c.bf16 %v4336_v51, %v4332_v41 }
0x1152   : > { %v4338_v48 = vpop.f32.mrf.mxu1 }
0x1153   : > { %v4360_v49 = vpack.c.bf16 %v4338_v48, %v4334_v38 }
0x1155   : > { %4397 = vmatprep.subr.bf16.mxu1 %v4360_v49 }
0x1156   : > { %4398 = vmatpush1.bf16.msra.mxu1 %v4359_v9 }
0x1157   : > { %4399 = vmatprep.subr.bf16.mxu1 %v4358_v5 }
0x115a   : > { %4400 = vmatpush1.bf16.msra.mxu1 %v4357_v44 }
0x115b   : > { %4401 = vmatprep.subr.bf16.mxu1 %v4356_v19 }
0x115e   : > { %4402 = vmatpush1.bf16.msra.mxu1 %v4355_v25 }
0x115f   : > { %4403 = vmatprep.subr.bf16.mxu1 %v4354_v14 }
0x1162   : > { %4404 = vmatpush1.bf16.msra.mxu1 %v4353_v33 }
0x1163   : > { %4405 = vmatprep.subr.bf16.mxu1 %v4352_v1 }
0x1166   : > { %4406 = vmatpush1.bf16.msra.mxu1 %v4351_v40 }
0x1167   : > { %4407 = vmatprep.subr.bf16.mxu1 %v4350_v6 }
0x116a   : > { %4408 = vmatpush1.bf16.msra.mxu1 %v4349_v15 }
0x116b   : > { %4409 = vmatprep.subr.bf16.mxu1 %v4348_v39 }
0x116e   : > { %4410 = vmatpush1.bf16.msra.mxu1 %v4347_v2 }
0x116f   : > { %4411 = vmatprep.subr.bf16.mxu1 %v4346_v53 }
0x1172   : > { %4412 = vmatpush1.bf16.msra.mxu1 %v4345_v54 }
0x1175   : > { %4430 = vmatmul.mubr.bf16.vlgmr.msra.gmra.mxu1 %v5063_v36 }
0x1176   : > { %4439 = vmatprep.mubr.bf16.mxu1 %v8222_v26 }
0x117d   : > { %4440 = vmatmul.mubr.bf16.gmra.mxu1 %v5064_v47 }
0x1235   : > { %v4431_v13 = vpop.f32.mrf.mxu1 }
0x1236   : > { %v4432_v21 = vadd.f32 %v4431_v13, %v7805_v7 }
0x1237   : > { %v4433_v2 = vpop.f32.mrf.mxu1 }
0x1238   : > { %v4434_v60 = vadd.f32 %v4433_v2, %v7805_v7  ;;  %v2410_v2 = vld [vmem:[%s8003_s8 + $0x18] sm:$0xff] }
0x1239   : > { %v4435_v53 = vpop.f32.mrf.mxu1 }
0x123a   : > { %v4450_v39 = vadd.f32 %v4434_v60, %v4432_v21  ;;  %v4436_v16 = vadd.f32 %v4435_v53, %v7807_v3  ;;  %v4519_v53 = vpop.permute.xlu0 %4518 }
0x123b   : > { %v4437_v28 = vpop.f32.mrf.mxu1 }
0x123c   : > { %v4451_v58 = vadd.f32 %v4450_v39, %v4436_v16  ;;  %v4438_v54 = vadd.f32 %v4437_v28, %v7807_v3 }
0x123d   : > { %v4441_v26 = vpop.f32.mrf.mxu1 }
0x123e   : > { %v4452_v45 = vadd.f32 %v4451_v58, %v4438_v54  ;;  %v4442_v17 = vadd.f32 %v4441_v26, %v7809_v20 }
0x123f   : > { %v4443_v62 = vpop.f32.mrf.mxu1 }
0x1240   : > { %v4453_v34 = vadd.f32 %v4452_v45, %v4442_v17  ;;  %v4444_v50 = vadd.f32 %v4443_v62, %v7809_v20  ;;  %v2406_v62 = vmul.f32 %v7837_v0, %v7717_v61  ;;  %v2403_v61 = vmul.f32 %v7837_v0, %v7702_v22 }
0x1241   : > { %v4445_v63 = vpop.f32.mrf.mxu1 }
0x1242   : > { %v4454_v11 = vadd.f32 %v4453_v34, %v4444_v50  ;;  %v4446_v7 = vadd.f32 %v4445_v63, %v7811_v12  ;;  %v2400_v63 = vmul.f32 %v7837_v0, %v7689_v59 }
0x1243   : > { %v4447_v55 = vpop.f32.mrf.mxu1 }
0x1244   : > { %v4455_v29 = vadd.f32 %v4454_v11, %v4446_v7  ;;  %v4448_v8 = vadd.f32 %v4447_v55, %v7811_v12 }
0x1246   : > { %v4456_v32 = vadd.f32 %v4455_v29, %v4448_v8 }
0x1248   : > { %4457 = vadd.xlane.f32.xlu1 %v4456_v32 }
0x12d1   : > { %v4458_v10 = vpop.xlane.xlu1 %4457 }
0x12d2   : > { %v4459_v3 = vrot.slane %v4458_v10, 4 }
0x12d4   : > { %v4460_v46 = vadd.f32 %v4459_v3, %v4458_v10 }
0x12d6   : > { %v4461_v43 = vrot.slane %v4460_v46, 2 }
0x12d8   : > { %v4462_v52 = vadd.f32 %v4461_v43, %v4460_v46 }
0x12da   : > { %v4463_v42 = vrot.slane %v4462_v52, 1 }
0x12dc   : > { %v4464_v27 = vadd.f32 %v4463_v42, %v4462_v52 }
0x12de   : > { %4963 = vpush %v4464_v27 }
0x130f   : > { %s4964_s16 = spop %4963 }
0x1310   : > { %v4466_v20 = vstv %s4964_s16  ;;  %s4842_s16 = sshll.u32 %s5586_s21, 10 }
0x1311   : > { %v4467_v30 = vmul.f32 0.00012207031, %v4466_v20  ;;  %s7945_s25 = scalar_lea.hbm %s8006_s11, %s4842_s16 }
0x1313   : > { %v7873_v18 = vsub.f32 %v4432_v21, %v4467_v30  ;;  %v7875_v35 = vsub.f32 %v4434_v60, %v4467_v30  ;;  %v7877_v4 = vsub.f32 %v4436_v16, %v4467_v30  ;;  %v7879_v12 = vsub.f32 %v4438_v54, %v4467_v30  ;;  %v2439_v21 = vld [vmem:[%s8004_s9] sm:$0xff]  ;;  %v2441_v60 = vld [vmem:[%s8004_s9 + $0x10] sm:$0xff]  ;;  %v4529_v54 = vpop.permute.xlu0 %4528 }
0x1314   : > { %v7885_v51 = vsub.f32 %v4442_v17, %v4467_v30  ;;  %v7889_v9 = vsub.f32 %v4444_v50, %v4467_v30  ;;  %v7893_v19 = vsub.f32 %v4446_v7, %v4467_v30  ;;  %v7897_v33 = vsub.f32 %v4448_v8, %v4467_v30 }
0x1315   : > { %v4476_v41 = vmul.f32 %v7873_v18, %v7873_v18  ;;  %v4477_v38 = vmul.f32 %v7875_v35, %v7875_v35  ;;  %v4478_v48 = vmul.f32 %v7877_v4, %v7877_v4  ;;  %v4479_v5 = vmul.f32 %v7879_v12, %v7879_v12 }
0x1316   : > { %v4480_v25 = vmul.f32 %v7885_v51, %v7885_v51  ;;  %v4481_v1 = vmul.f32 %v7889_v9, %v7889_v9  ;;  %v4482_v6 = vmul.f32 %v7893_v19, %v7893_v19  ;;  %v4483_v36 = vmul.f32 %v7897_v33, %v7897_v33 }
0x1317   : > { %v4484_v49 = vadd.f32 %v4477_v38, %v4476_v41  ;;  %v2405_v17 = vmul.f32 %v7837_v0, %v7712_v31  ;;  %v2399_v50 = vmul.f32 %v7837_v0, %v7686_v24  ;;  %v2461_v55 = vpop.permute.xlu0 %2460  ;;  %v2404_v24 = vmul.f32 %v7837_v0, %v7707_v56 }
0x1319   : > { %v4485_v44 = vadd.f32 %v4484_v49, %v4478_v48 }
0x131b   : > { %v4486_v14 = vadd.f32 %v4485_v44, %v4479_v5  ;;  %v4556_v0 = vpop.permute.xlu0 %4555 }
0x131d   : > { %v4487_v40 = vadd.f32 %v4486_v14, %v4480_v25 }
0x131f   : > { %v4488_v15 = vadd.f32 %v4487_v40, %v4481_v1 }
0x1321   : > { %v4489_v47 = vadd.f32 %v4488_v15, %v4482_v6 }
0x1323   : > { %v4490_v13 = vadd.f32 %v4489_v47, %v4483_v36 }
0x1325   : > { %4491 = vadd.xlane.f32.xlu1 %v4490_v13 }
0x1336   : > { %2413 = vperm.xlu1 %5012, %v7763_v23  }
0x133a   : > { %2423 = vperm.xlu1 %5012, %v7770_v37  }
0x133e   : > { %2428 = vperm.xlu1 %5012, %v2410_v2  }
0x1342   : > { %2445 = vperm.xlu1 %5012, %v2439_v21  }
0x1346   : > { %2455 = vperm.xlu1 %5012, %v2441_v60  }
0x134a   : > { %4523 = vperm.xlu1 %5012, %v7747_v57  }
0x134e   : > { %4533 = vperm.xlu1 %5012, %v2410_v2  }
0x1352   : > { %4550 = vperm.xlu1 %5012, %v2439_v21  }
0x1356   : > { %4560 = vperm.xlu1 %5012, %v2441_v60  }
0x13ae   : > { %v4492_v23 = vpop.xlane.xlu1 %4491 }
0x13af   : > { %v4493_v37 = vrot.slane %v4492_v23, 4 }
0x13b1   : > { %v4494_v39 = vadd.f32 %v4493_v37, %v4492_v23 }
0x13b2   : > { %v2414_v16 = vpop.permute.xlu1 %2413 }
0x13b3   : > { %v4495_v28 = vrot.slane %v4494_v39, 2  ;;  %v2431_v29 = vmul.f32 %v2414_v16, %v2399_v50  ;;  %v2432_v8 = vmul.f32 %v2414_v16, %v2400_v63 }
0x13b5   : > { %v4496_v58 = vadd.f32 %v4495_v28, %v4494_v39 }
0x13b6   : > { %v2424_v26 = vpop.permute.xlu1 %2423 }
0x13b7   : > { %v4497_v45 = vrot.slane %v4496_v58, 1  ;;  %v2435_v43 = vmul.f32 %v2424_v26, %v2403_v61  ;;  %v2436_v52 = vmul.f32 %v2424_v26, %v2404_v24 }
0x13b9   : > { %v4498_v57 = vadd.f32 %v4497_v45, %v4496_v58 }
0x13ba   : > { %v2429_v34 = vpop.permute.xlu1 %2428 }
0x13bb   : > { %v2437_v11 = vmul.f32 %v2429_v34, %v2405_v17  ;;  %v2438_v7 = vmul.f32 %v2429_v34, %v2406_v62  ;;  %4965 = vpush %v4498_v57 }
0x13bd   : > { %v2469_v31 = vadd.f32 %v2461_v55, %v2437_v11  ;;  %v2470_v32 = vadd.f32 %v2461_v55, %v2438_v7 }
0x13be   : > { %v2446_v10 = vpop.permute.xlu1 %2445 }
0x13bf   : > { %v4836_v3 = vpack.c.bf16 %v2470_v32, %v2469_v31  ;;  %v2463_v59 = vadd.f32 %v2446_v10, %v2431_v29  ;;  %v2464_v46 = vadd.f32 %v2446_v10, %v2432_v8 }
0x13c1   : > { %2498 = vst [vmem:[%s7846_s29 + $0x18] sm:$0xff] %v4836_v3  ;;  %v4833_v42 = vpack.c.bf16 %v2464_v46, %v2463_v59 }
0x13c2   : > { %v2456_v27 = vpop.permute.xlu1 %2455 }
0x13c3   : > { %2495 = vst [vmem:[%s7846_s29] sm:$0xff] %v4833_v42  ;;  %v2467_v20 = vadd.f32 %v2456_v27, %v2435_v43  ;;  %v2468_v30 = vadd.f32 %v2456_v27, %v2436_v52 }
0x13c5   : > { %v4835_v41 = vpack.c.bf16 %v2468_v30, %v2467_v20 }
0x13c6   : > { %v4524_v49 = vpop.permute.xlu1 %4523 }
0x13c7   : > { %2497 = vst [vmem:[%s7846_s29 + $0x10] sm:$0xff] %v4835_v41 }
0x13ca   : > { %v4534_v56 = vpop.permute.xlu1 %4533 }
0x13ce   : > { %v4551_v5 = vpop.permute.xlu1 %4550 }
0x13ec   : > { %s4966_s15 = spop %4965 }
0x13ed   : > { %v4500_v38 = vstv %s4966_s15  ;;  %s5441_s15 = sshll.u32 %s5502_s13, 4  ;;  %s5442_s15 = int_to_ptr.vmem [resolvable:$false] %s5441_s15 }
0x13ee   : > { %v4501_v22 = vmul.f32 0.00012207031, %v4500_v38  ;;  %s5443_s16 = scalar_lea.vmem %s5442_s15, 2048  ;;  %p5444_p0 = scmp.lt.s32.totalorder %s7947_s14, %s5442_s15 }
0x13ef   : > { %p5445_p1 = scmp.lt.s32.totalorder %s5443_s16, %s5437_s12 }
0x13f0   : > { %v4502_v48 = vadd.f32 1e-05, %v4501_v22 }
0x13f1   : > { %p5446_p2 = por %p5445_p1, %p5444_p0 }
0x13f2   : > { %5435 = vrsqrt.f32 %v4502_v48 }
0x13f3   : > { %p5447_p3 = pnand %p5446_p2, %p5440_p13 }
0x13ff   : > { %v5436_v44 = vpop.eup %5435 }
0x1400   : > { %v4504_v25 = vmul.f32 %v5436_v44, %v7873_v18  ;;  %v4505_v14 = vmul.f32 %v5436_v44, %v7875_v35  ;;  %v4506_v1 = vmul.f32 %v5436_v44, %v7877_v4  ;;  %v4507_v40 = vmul.f32 %v5436_v44, %v7879_v12  ;;  %v4566_v4 = vpop.permute.xlu0 %4565  ;;  %v4561_v12 = vpop.permute.xlu1 %4560 }
0x1401   : > { %v4508_v6 = vmul.f32 %v5436_v44, %v7885_v51  ;;  %v4509_v15 = vmul.f32 %v5436_v44, %v7889_v9  ;;  %v4510_v36 = vmul.f32 %v5436_v44, %v7893_v19  ;;  %v4511_v47 = vmul.f32 %v5436_v44, %v7897_v33 }
0x1402   : > { %v4536_v13 = vmul.f32 %v4519_v53, %v4504_v25  ;;  %v4537_v2 = vmul.f32 %v4519_v53, %v4505_v14  ;;  %v4538_v21 = vmul.f32 %v4524_v49, %v4506_v1  ;;  %v4539_v18 = vmul.f32 %v4524_v49, %v4507_v40 }
0x1403   : > { %v4540_v60 = vmul.f32 %v4529_v54, %v4508_v6  ;;  %v4541_v23 = vmul.f32 %v4529_v54, %v4509_v15  ;;  %v4542_v35 = vmul.f32 %v4534_v56, %v4510_v36  ;;  %v4543_v37 = vmul.f32 %v4534_v56, %v4511_v47 }
0x1404   : > { %v4568_v51 = vadd.f32 %v4551_v5, %v4536_v13  ;;  %v4569_v9 = vadd.f32 %v4551_v5, %v4537_v2  ;;  %v4570_v19 = vadd.f32 %v4556_v0, %v4538_v21  ;;  %v4571_v33 = vadd.f32 %v4556_v0, %v4539_v18 }
0x1405   : > { %v4572_v53 = vadd.f32 %v4561_v12, %v4540_v60  ;;  %v4573_v39 = vadd.f32 %v4561_v12, %v4541_v23  ;;  %v4574_v16 = vadd.f32 %v4566_v4, %v4542_v35  ;;  %v4575_v28 = vadd.f32 %v4566_v4, %v4543_v37 }
0x1406   : > { %v4837_v58 = vpack.c.bf16 %v4569_v9, %v4568_v51  ;;  %v4838_v54 = vpack.c.bf16 %v4571_v33, %v4570_v19 }
0x1407   : > { %v4839_v26 = vpack.c.bf16 %v4573_v39, %v4572_v53  ;;  %v4840_v45 = vpack.c.bf16 %v4575_v28, %v4574_v16 }
0x1408   : > { %4822 = vst [vmem:[%s7846_s29 + $0x20] sm:$0xff] %v4837_v58  ;;  %4823 = vst [vmem:[%s7846_s29 + $0x28] sm:$0xff] %v4838_v54 }
0x1409   : > { %4824 = vst [vmem:[%s7846_s29 + $0x30] sm:$0xff] %v4839_v26  ;;  %4825 = vst [vmem:[%s7846_s29 + $0x38] sm:$0xff] %v4840_v45 }
0x140a   : > { %5450 = shalt.err (!%p5447_p3)
}
0x140b   : > { %s5451_s24 = scalar_lea.hbm %s7945_s25, 1024  ;;  %s5455_s22 = scalar_lea.hbm %s8006_s11, 2048 }
0x140c   : > { %p5452_p4 = scmp.ne.s32.totalorder %s7945_s25, %s5451_s24  ;;  %p5456_p9 = scmp.lt.s32.totalorder %s7945_s25, %s8006_s11 }
0x140d   : > { %p5457_p10 = scmp.lt.s32.totalorder %s5455_s22, %s5451_s24 }
0x140e   : > { %p5453_p7 = pnand %p5452_p4, %p5603_p5 }
0x140f   : > { %p5458_p11 = por %p5457_p10, %p5456_p9 }
0x1410   : > { %p5454_p8 = pneg %p5453_p7 }
0x1412   : > { %p5459_p12 = pnand %p5458_p11, %p5454_p8 }
0x1414   : > { %5462 = shalt.err (!%p5459_p12)
}
0x1415   : > { %s5503_s12 = smov 128   ;;  %s5504_s15 = smov 8  }
0x1416   : > { %4967 = dma.vmem_to_hbm [thread:$0]  (%p5603_p5), %s7947_s14, 1024, %s7945_s25, %s7955_s30, %s5503_s12, %s5503_s12, %s5504_s15  }
0x1417 PF: > { %p4973_p13 = scmp.ge.s32.totalorder %s5497_s20, 2  ;;  %s4635_s16 = sand.u32 1, %s5485_s17  }
0x1418   : > { %s4636_s0 = scalar_lea.sflag [#allocation3], %s4635_s16 }
0x1419   : > { %p4970_p0 = pnand %p4973_p13, %p5607_p6 }
0x141b   : > { %p4971_p1 = pneg %p4970_p0 }
0x141d   : > { %5480 = dma.done.wait (%p4971_p1), %s4636_s0, 1024  }
0x141e   : > { %5482 = vsyncadd (%p4971_p1), %s4636_s0, 4294966272  ;;  %p21_p2 = scmp.ge.s32.totalorder %s5590_s23, 4   ;;  %s8223_s17 = smov %s5489_s18 }
0x141f   : > { %s8224_s18 = smov %s5493_s19  ;;  %s8225_s19 = smov %s5601_s26 }
0x1420   : > { %s8226_s20 = smov %s5590_s23  ;;  %23 = sbr.rel (!%p21_p2) target bundleno = 5 (0x5), region = 101 }
0x1425   :  { %4641 = vsyncpa [#allocation3], 1 }
0x1426   :  { %4643 = vsyncpa [#allocation3 + $0x1], 1 }

</bundles_post_ra>
